<compile_context>
chip_gen: v6e
topology: v6e:2x2x1
jax: 0.10.0
libtpu: 0.0.40
codegen_flags: <defaults>
</compile_context>

<pallas_src>
import jax
import jax.numpy as jnp
from jax.experimental import pallas as pl
from jax.experimental.pallas import tpu as pltpu


def _psa_kernel(p_ref, wconv_ref, w1_ref, b1_ref, w2_ref, b2_ref, o_ref):
    """One batch element per grid step.

    p_ref    : (1, H*W, Ktot)  im2col patches of all 4 branches (concatenated on K)
    wconv_ref: (Ktot, 4*C)     block-structured conv weights, reversed-branch columns
    w1_ref   : (4*C, 4*Cr)     SE fc1, replicated block-diagonally over branch slots
    b1_ref   : (1, 4*Cr)
    w2_ref   : (4*Cr, 4*C)     SE fc2, replicated block-diagonally
    b2_ref   : (1, 4*C)
    o_ref    : (1, H*W, 4*C)   attention-weighted concatenated features
    """
    C = o_ref.shape[2] // 4

    # ---- all four grouped convs fused into a single MXU matmul ----
    feats = jnp.dot(p_ref[0], wconv_ref[...],
                    preferred_element_type=jnp.float32)            # (H*W, 4C)

    # ---- SEWeightModule (shared weights) for all 4 branches at once ----
    z = jnp.mean(feats, axis=0, keepdims=True)                     # (1, 4C) avg pool
    h = jnp.maximum(
        jnp.dot(z, w1_ref[...], preferred_element_type=jnp.float32)
        + b1_ref[...], 0.0)                                        # (1, 4Cr)
    s = jnp.dot(h, w2_ref[...],
                preferred_element_type=jnp.float32) + b2_ref[...]  # (1, 4C)
    s = 1.0 / (1.0 + jnp.exp(-s))                                  # sigmoid

    # ---- softmax across the 4 branch slots, per channel ----
    s0 = s[:, 0 * C:1 * C]
    s1 = s[:, 1 * C:2 * C]
    s2 = s[:, 2 * C:3 * C]
    s3 = s[:, 3 * C:4 * C]
    m = jnp.maximum(jnp.maximum(s0, s1), jnp.maximum(s2, s3))
    e0 = jnp.exp(s0 - m)
    e1 = jnp.exp(s1 - m)
    e2 = jnp.exp(s2 - m)
    e3 = jnp.exp(s3 - m)
    denom = e0 + e1 + e2 + e3
    attn = jnp.concatenate(
        [e0 / denom, e1 / denom, e2 / denom, e3 / denom], axis=1)  # (1, 4C)

    # ---- apply attention and store (channel order already matches the module) ----
    o_ref[0] = (feats * attn).astype(o_ref.dtype)


def _im2col(x_nhwc, k):
    """(N,H,W,Cin) -> (N, H*W, k*k*Cin); tap order (dy, dx, cin), SAME padding."""
    N, H, W, Cin = x_nhwc.shape
    p = k // 2
    xp = jnp.pad(x_nhwc, ((0, 0), (p, p), (p, p), (0, 0)))
    cols = [xp[:, dy:dy + H, dx:dx + W, :] for dy in range(k) for dx in range(k)]
    return jnp.concatenate(cols, axis=-1).reshape(N, H * W, k * k * Cin)


def _grouped_to_dense(w_oihw, cin):
    """PyTorch grouped-conv weight (Cout, Cin//g, k, k) -> dense (k*k*Cin, Cout)."""
    cout, cin_g, k, _ = w_oihw.shape
    groups = cin // cin_g
    cout_g = cout // groups
    wd = jnp.zeros((k, k, cin, cout), w_oihw.dtype)
    for g in range(groups):
        blk = jnp.transpose(w_oihw[g * cout_g:(g + 1) * cout_g], (2, 3, 1, 0))
        wd = wd.at[:, :, g * cin_g:(g + 1) * cin_g,
                   g * cout_g:(g + 1) * cout_g].set(blk)
    return wd.reshape(k * k * cin, cout)


@jax.jit
def psa_module(x_nchw, w3, w5, w7, w9, fc1_w, fc1_b, fc2_w, fc2_b):
    """PSAModule forward.  x_nchw: (N, Cin, H, W) f32.  Returns (N, 4*C, H, W)."""
    N, Cin, H, W = x_nchw.shape
    C = w3.shape[0]              # planes // 4  (split_channel)
    Cr = fc1_w.shape[0]          # C // reduction
    x = jnp.transpose(x_nchw, (0, 2, 3, 1))                    # NHWC

    conv_ws = (w3, w5, w7, w9)
    ksizes = tuple(int(w.shape[2]) for w in conv_ws)

    # im2col for all branches, concatenated along the contraction axis.
    patches = jnp.concatenate([_im2col(x, k) for k in ksizes], axis=-1)
    Ktot = patches.shape[-1]                                   # (N, H*W, Ktot)

    # Block-structured conv weight: branch i occupies column slot (3 - i) so the
    # matmul directly emits the module's reversed concat order [x4|x3|x2|x1].
    wblocks = [_grouped_to_dense(w, Cin) for w in conv_ws]
    wconv = jnp.zeros((Ktot, 4 * C), jnp.float32)
    row = 0
    for i, wb in enumerate(wblocks):
        col = (3 - i) * C
        wconv = wconv.at[row:row + wb.shape[0], col:col + C].set(wb)
        row += wb.shape[0]

    # SE weights (shared module) replicated block-diagonally over branch slots.
    w1 = jnp.transpose(fc1_w[:, :, 0, 0])                      # (C, Cr)
    w2 = jnp.transpose(fc2_w[:, :, 0, 0])                      # (Cr, C)
    w1_big = jnp.zeros((4 * C, 4 * Cr), jnp.float32)
    w2_big = jnp.zeros((4 * Cr, 4 * C), jnp.float32)
    for b in range(4):
        w1_big = w1_big.at[b * C:(b + 1) * C, b * Cr:(b + 1) * Cr].set(w1)
        w2_big = w2_big.at[b * Cr:(b + 1) * Cr, b * C:(b + 1) * C].set(w2)
    b1_big = jnp.tile(fc1_b, 4).reshape(1, 4 * Cr)
    b2_big = jnp.tile(fc2_b, 4).reshape(1, 4 * C)

    out = pl.pallas_call(
        _psa_kernel,
        out_shape=jax.ShapeDtypeStruct((N, H * W, 4 * C), jnp.float32),
        grid_spec=pltpu.PrefetchScalarGridSpec(
            num_scalar_prefetch=0,
            grid=(N,),
            in_specs=[
                pl.BlockSpec((1, H * W, Ktot), lambda n: (n, 0, 0)),
                pl.BlockSpec((Ktot, 4 * C), lambda n: (0, 0)),
                pl.BlockSpec((4 * C, 4 * Cr), lambda n: (0, 0)),
                pl.BlockSpec((1, 4 * Cr), lambda n: (0, 0)),
                pl.BlockSpec((4 * Cr, 4 * C), lambda n: (0, 0)),
                pl.BlockSpec((1, 4 * C), lambda n: (0, 0)),
            ],
            out_specs=pl.BlockSpec((1, H * W, 4 * C), lambda n: (n, 0, 0)),
        ),
        compiler_params=pltpu.CompilerParams(
            dimension_semantics=("parallel",)),
    )(patches, wconv, w1_big, b1_big, w2_big, b2_big)

    # (N, H*W, 4C) -> (N, 4C, H, W); channel order already matches PyTorch output.
    return jnp.transpose(out.reshape(N, H, W, 4 * C), (0, 3, 1, 2))


def _reference(x, w3, w5, w7, w9, fc1_w, fc1_b, fc2_w, fc2_b):
    """Plain-JAX reference of PSAModule.forward (for the sanity check)."""
    def convk(inp, w):
        cin = inp.shape[1]
        g = cin // w.shape[1]
        k = w.shape[2]
        p = k // 2
        return jax.lax.conv_general_dilated(
            inp, w, window_strides=(1, 1), padding=((p, p), (p, p)),
            dimension_numbers=("NCHW", "OIHW", "NCHW"),
            feature_group_count=g)

    def se(t):
        z = jnp.mean(t, axis=(2, 3), keepdims=True)
        h = jax.lax.conv_general_dilated(
            z, fc1_w, (1, 1), "VALID",
            dimension_numbers=("NCHW", "OIHW", "NCHW")) + fc1_b[None, :, None, None]
        h = jnp.maximum(h, 0.0)
        s = jax.lax.conv_general_dilated(
            h, fc2_w, (1, 1), "VALID",
            dimension_numbers=("NCHW", "OIHW", "NCHW")) + fc2_b[None, :, None, None]
        return jax.nn.sigmoid(s)

    xs = [convk(x, w3), convk(x, w5), convk(x, w7), convk(x, w9)]
    feats = jnp.stack(xs, axis=1)                               # (N, 4, C, H, W)
    x_se = jnp.stack([se(t)[:, :, 0, 0] for t in xs], axis=1)   # (N, 4, C)
    attn = jax.nn.softmax(x_se, axis=1)[:, :, :, None, None]
    fw = feats * attn
    return jnp.concatenate([fw[:, 3], fw[:, 2], fw[:, 1], fw[:, 0]], axis=1)


if __name__ == "__main__":
    # Small shapes consistent with the module: conv_groups go up to 16, so both
    # inplans and planes//4 must be divisible by 16.
    N, Cin, planes, H, W = 2, 16, 64, 16, 16
    C = planes // 4           # split_channel = 16
    red = 4                   # SE reduction

    key = jax.random.PRNGKey(0)
    ks = jax.random.split(key, 10)

    x = jax.random.normal(ks[0], (N, Cin, H, W), jnp.float32)

    groups = (1, 4, 8, 16)
    ksizes = (3, 5, 7, 9)
    conv_ws = []
    for i, (k, g) in enumerate(zip(ksizes, groups)):
        conv_ws.append(
            0.1 * jax.random.normal(ks[1 + i], (C, Cin // g, k, k), jnp.float32))
    w3, w5, w7, w9 = conv_ws

    fc1_w = 0.2 * jax.random.normal(ks[5], (C // red, C, 1, 1), jnp.float32)
    fc1_b = 0.1 * jax.random.normal(ks[6], (C // red,), jnp.float32)
    fc2_w = 0.2 * jax.random.normal(ks[7], (C, C // red, 1, 1), jnp.float32)
    fc2_b = 0.1 * jax.random.normal(ks[8], (C,), jnp.float32)

    out = psa_module(x, w3, w5, w7, w9, fc1_w, fc1_b, fc2_w, fc2_b)
    out = jax.block_until_ready(out)

    ref = _reference(x, w3, w5, w7, w9, fc1_w, fc1_b, fc2_w, fc2_b)
    assert out.shape == (N, planes, H, W)
    err = float(jnp.max(jnp.abs(out - ref)))
    assert err < 2e-4, f"mismatch vs reference: {err}"

    print("KERNEL_OK")
</pallas_src>

<mosaic_0001>
module attributes {stable_mosaic.version = 11 : i64} {
  func.func @_psa_kernel(%arg0: i32, %arg1: memref<1x256x2624xf32, #tpu.memory_space<vmem>>, %arg2: memref<2624x64xf32, #tpu.memory_space<vmem>>, %arg3: memref<64x16xf32, #tpu.memory_space<vmem>>, %arg4: memref<1x16xf32, #tpu.memory_space<vmem>>, %arg5: memref<16x64xf32, #tpu.memory_space<vmem>>, %arg6: memref<1x64xf32, #tpu.memory_space<vmem>>, %arg7: memref<1x256x64xf32, #tpu.memory_space<vmem>>) attributes {dimension_semantics = [#tpu.dimension_semantics<parallel>], iteration_bounds = array<i64: 2>, scalar_prefetch = 0 : i64, scratch_operands = 0 : i64, tpu.core_type = #tpu.core_type<tc>, window_params = [{transform_indices = @transform_0, window_bounds = array<i64: 1, 256, 2624>}, {pipeline_mode = #tpu.pipeline_mode<synchronous>, transform_indices = @transform_1, window_bounds = array<i64: 2624, 64>}, {pipeline_mode = #tpu.pipeline_mode<synchronous>, transform_indices = @transform_2, window_bounds = array<i64: 64, 16>}, {pipeline_mode = #tpu.pipeline_mode<synchronous>, transform_indices = @transform_3, window_bounds = array<i64: 1, 16>}, {pipeline_mode = #tpu.pipeline_mode<synchronous>, transform_indices = @transform_4, window_bounds = array<i64: 16, 64>}, {pipeline_mode = #tpu.pipeline_mode<synchronous>, transform_indices = @transform_5, window_bounds = array<i64: 1, 64>}, {transform_indices = @transform_6, window_bounds = array<i64: 1, 256, 64>}]} {
    %c0 = arith.constant 0 : index
    %c0_0 = arith.constant 0 : index
    %c0_1 = arith.constant 0 : index
    %0 = vector.load %arg1[%c0, %c0_0, %c0_1] : memref<1x256x2624xf32, #tpu.memory_space<vmem>>, vector<1x256x2624xf32>
    %1 = vector.shape_cast %0 : vector<1x256x2624xf32> to vector<256x2624xf32>
    %c0_2 = arith.constant 0 : index
    %c0_3 = arith.constant 0 : index
    %2 = vector.load %arg2[%c0_2, %c0_3] : memref<2624x64xf32, #tpu.memory_space<vmem>>, vector<2624x64xf32>
    %cst = arith.constant dense<0.000000e+00> : vector<256x64xf32>
    %3 = tpu.matmul %1, %2, %cst {dimension_numbers = #tpu.dot_dimension_numbers<[1], [0], [0], [1], [0, 0, 1, 1], [], []>} : vector<256x2624xf32>, vector<2624x64xf32>, vector<256x64xf32> -> vector<256x64xf32>
    %cst_4 = arith.constant dense<0.000000e+00> : vector<64xf32>
    %4 = vector.multi_reduction <add>, %3, %cst_4 [0] : vector<256x64xf32> to vector<64xf32>
    %5 = vector.shape_cast %4 : vector<64xf32> to vector<1x64xf32>
    %cst_5 = arith.constant 2.560000e+02 : f32
    %6 = vector.broadcast %cst_5 : f32 to vector<1x64xf32>
    %7 = arith.divf %5, %6 : vector<1x64xf32>
    %c0_6 = arith.constant 0 : index
    %c0_7 = arith.constant 0 : index
    %8 = vector.load %arg3[%c0_6, %c0_7] : memref<64x16xf32, #tpu.memory_space<vmem>>, vector<64x16xf32>
    %cst_8 = arith.constant dense<0.000000e+00> : vector<1x16xf32>
    %9 = tpu.matmul %7, %8, %cst_8 {dimension_numbers = #tpu.dot_dimension_numbers<[1], [0], [0], [1], [0, 0, 1, 1], [], []>} : vector<1x64xf32>, vector<64x16xf32>, vector<1x16xf32> -> vector<1x16xf32>
    %c0_9 = arith.constant 0 : index
    %c0_10 = arith.constant 0 : index
    %10 = vector.load %arg4[%c0_9, %c0_10] : memref<1x16xf32, #tpu.memory_space<vmem>>, vector<1x16xf32>
    %11 = arith.addf %9, %10 : vector<1x16xf32>
    %cst_11 = arith.constant 0.000000e+00 : f32
    %12 = vector.broadcast %cst_11 : f32 to vector<1x16xf32>
    %13 = arith.maximumf %11, %12 : vector<1x16xf32>
    %c0_12 = arith.constant 0 : index
    %c0_13 = arith.constant 0 : index
    %14 = vector.load %arg5[%c0_12, %c0_13] : memref<16x64xf32, #tpu.memory_space<vmem>>, vector<16x64xf32>
    %cst_14 = arith.constant dense<0.000000e+00> : vector<1x64xf32>
    %15 = tpu.matmul %13, %14, %cst_14 {dimension_numbers = #tpu.dot_dimension_numbers<[1], [0], [0], [1], [0, 0, 1, 1], [], []>} : vector<1x16xf32>, vector<16x64xf32>, vector<1x64xf32> -> vector<1x64xf32>
    %c0_15 = arith.constant 0 : index
    %c0_16 = arith.constant 0 : index
    %16 = vector.load %arg6[%c0_15, %c0_16] : memref<1x64xf32, #tpu.memory_space<vmem>>, vector<1x64xf32>
    %17 = arith.addf %15, %16 : vector<1x64xf32>
    %cst_17 = arith.constant 0.000000e+00 : f32
    %18 = vector.broadcast %cst_17 : f32 to vector<1x64xf32>
    %19 = arith.subf %18, %17 : vector<1x64xf32>
    %20 = math.exp %19 : vector<1x64xf32>
    %cst_18 = arith.constant 1.000000e+00 : f32
    %21 = vector.broadcast %cst_18 : f32 to vector<1x64xf32>
    %22 = arith.addf %21, %20 : vector<1x64xf32>
    %cst_19 = arith.constant 1.000000e+00 : f32
    %23 = vector.broadcast %cst_19 : f32 to vector<1x64xf32>
    %24 = arith.divf %23, %22 : vector<1x64xf32>
    %25 = vector.extract_strided_slice %24 {offsets = [0, 0], sizes = [1, 16], strides = [1, 1]} : vector<1x64xf32> to vector<1x16xf32>
    %26 = vector.extract_strided_slice %24 {offsets = [0, 16], sizes = [1, 16], strides = [1, 1]} : vector<1x64xf32> to vector<1x16xf32>
    %27 = vector.extract_strided_slice %24 {offsets = [0, 32], sizes = [1, 16], strides = [1, 1]} : vector<1x64xf32> to vector<1x16xf32>
    %28 = vector.extract_strided_slice %24 {offsets = [0, 48], sizes = [1, 16], strides = [1, 1]} : vector<1x64xf32> to vector<1x16xf32>
    %29 = arith.maximumf %25, %26 : vector<1x16xf32>
    %30 = arith.maximumf %27, %28 : vector<1x16xf32>
    %31 = arith.maximumf %29, %30 : vector<1x16xf32>
    %32 = arith.subf %25, %31 : vector<1x16xf32>
    %33 = math.exp %32 : vector<1x16xf32>
    %34 = arith.subf %26, %31 : vector<1x16xf32>
    %35 = math.exp %34 : vector<1x16xf32>
    %36 = arith.subf %27, %31 : vector<1x16xf32>
    %37 = math.exp %36 : vector<1x16xf32>
    %38 = arith.subf %28, %31 : vector<1x16xf32>
    %39 = math.exp %38 : vector<1x16xf32>
    %40 = arith.addf %33, %35 : vector<1x16xf32>
    %41 = arith.addf %40, %37 : vector<1x16xf32>
    %42 = arith.addf %41, %39 : vector<1x16xf32>
    %43 = arith.divf %33, %42 : vector<1x16xf32>
    %44 = arith.divf %35, %42 : vector<1x16xf32>
    %45 = arith.divf %37, %42 : vector<1x16xf32>
    %46 = arith.divf %39, %42 : vector<1x16xf32>
    %47 = tpu.concatenate %43, %44, %45, %46 in 1 : vector<1x16xf32>, vector<1x16xf32>, vector<1x16xf32>, vector<1x16xf32> -> vector<1x64xf32>
    %48 = vector.broadcast %47 : vector<1x64xf32> to vector<256x64xf32>
    %49 = arith.mulf %3, %48 : vector<256x64xf32>
    %c0_20 = arith.constant 0 : index
    %c0_21 = arith.constant 0 : index
    %c0_22 = arith.constant 0 : index
    %50 = vector.load %arg7[%c0_20, %c0_21, %c0_22] : memref<1x256x64xf32, #tpu.memory_space<vmem>>, vector<1x256x64xf32>
    %51 = vector.shape_cast %50 : vector<1x256x64xf32> to vector<256x64xf32>
    %52 = vector.shape_cast %49 : vector<256x64xf32> to vector<1x256x64xf32>
    tpu.vector_store %arg7[%c0_20, %c0_21, %c0_22], %52 {strides = array<i32>} : memref<1x256x64xf32, #tpu.memory_space<vmem>>, vector<1x256x64xf32>,
    return
  }
  func.func @transform_0(%arg0: i32) -> (i32, i32, i32) {
    %c0_i32 = arith.constant 0 : i32
    %c0_i32_0 = arith.constant 0 : i32
    %c0_i32_1 = arith.constant 0 : i32
    return %arg0, %c0_i32, %c0_i32_0 : i32, i32, i32
  }
  func.func @transform_1(%arg0: i32) -> (i32, i32) {
    %c0_i32 = arith.constant 0 : i32
    %c0_i32_0 = arith.constant 0 : i32
    %c0_i32_1 = arith.constant 0 : i32
    return %c0_i32, %c0_i32_0 : i32, i32
  }
  func.func @transform_2(%arg0: i32) -> (i32, i32) {
    %c0_i32 = arith.constant 0 : i32
    %c0_i32_0 = arith.constant 0 : i32
    %c0_i32_1 = arith.constant 0 : i32
    return %c0_i32, %c0_i32_0 : i32, i32
  }
  func.func @transform_3(%arg0: i32) -> (i32, i32) {
    %c0_i32 = arith.constant 0 : i32
    %c0_i32_0 = arith.constant 0 : i32
    %c0_i32_1 = arith.constant 0 : i32
    return %c0_i32, %c0_i32_0 : i32, i32
  }
  func.func @transform_4(%arg0: i32) -> (i32, i32) {
    %c0_i32 = arith.constant 0 : i32
    %c0_i32_0 = arith.constant 0 : i32
    %c0_i32_1 = arith.constant 0 : i32
    return %c0_i32, %c0_i32_0 : i32, i32
  }
  func.func @transform_5(%arg0: i32) -> (i32, i32) {
    %c0_i32 = arith.constant 0 : i32
    %c0_i32_0 = arith.constant 0 : i32
    %c0_i32_1 = arith.constant 0 : i32
    return %c0_i32, %c0_i32_0 : i32, i32
  }
  func.func @transform_6(%arg0: i32) -> (i32, i32, i32) {
    %c0_i32 = arith.constant 0 : i32
    %c0_i32_0 = arith.constant 0 : i32
    %c0_i32_1 = arith.constant 0 : i32
    return %arg0, %c0_i32, %c0_i32_0 : i32, i32, i32
  }
}

</mosaic_0001>

<bundles_post_ra>
// kernel: tile.13
= control target key start
LH: loop header
LB: loop body
LE: loop exit
PB: predicated region body
PF: predicated region fallthrough
CT: control target
= control target key end

     0   :  { %s22_s0 = inlined_call_operand.vmem [shape: f32[4], index: 0, kind: input, shape index: {}]   ;;  %s23_s1 = inlined_call_operand.vmem [shape: f32[4,4], index: 1, kind: output, shape index: {}]  }
   0x1   :  { %v4_v0 = vld [vmem:[%s22_s0] ss:$0 sm:$0xff] }
   0x2   :  { %5 = vst [vmem:[%s23_s1] sm:$0xf] %v4_v0 }

// kernel: tile.14
= control target key start
LH: loop header
LB: loop body
LE: loop exit
PB: predicated region body
PF: predicated region fallthrough
CT: control target
= control target key end

     0   :  { %vm8_vm0 = vcmask 31744   ;;  %s40_s8 = smov 4   ;;  %s41_s9 = smov 8   ;;  %vm14_vm1 = vcmask 130144   ;;  %vm20_vm2 = vcmask 97344   ;;  %vm26_vm3 = vcmask 64544   ;;  %s58_s0 = inlined_call_operand.vmem [shape: f32[4,4], index: 0, kind: input, shape index: {}]   ;;  %s59_s1 = inlined_call_operand.vmem [shape: f32[1,16], index: 1, kind: output, shape index: {}]  }
   0x1   :  { %v5_v0 = vld [vmem:[%s58_s0] sm:$0xf]  ;;  %s39_s0 = smov 12  }
   0x2   :  { %6 = vst [vmem:[#allocation1] sm:$0xf] %v5_v0 }
   0x9   :  { %v11_v1 = vld [vmem:[#allocation1 + $0x3] sm:$0x1]   ;;  %v23_v2 = vld [vmem:[#allocation1 + $0x1] sm:$0x1]   ;;  %v7_v3 = vld [vmem:[#allocation1] sm:$0x1]  }
   0xa   :  { %12 = vrot.lane.b32.xlu0 %v11_v1, %s39_s0  ;;  %24 = vrot.lane.b32.xlu1 %v23_v2, %s40_s8  ;;  %v17_v4 = vld [vmem:[#allocation1 + $0x2] sm:$0x1]   ;;  %9 = vst.msk [vmem:[#allocation0] sm:$0x1] %vm8_vm0, %v7_v3  }
   0xe   :  { %18 = vrot.lane.b32.xlu0 %v17_v4, %s41_s9 }
  0x7c   :  { %v13_v5 = vpop.permute.xlu0 %12   ;;  %v25_v6 = vpop.permute.xlu1 %24  }
  0x7d   :  { %15 = vst.msk [vmem:[#allocation0] sm:$0x1] %vm14_vm1, %v13_v5  }
  0x80   :  { %v19_v7 = vpop.permute.xlu0 %18  }
  0x81   :  { %21 = vst.msk [vmem:[#allocation0] sm:$0x1] %vm20_vm2, %v19_v7  }
  0x82   :  { %27 = vst.msk [vmem:[#allocation0] sm:$0x1] %vm26_vm3, %v25_v6  }
  0x89   :  { %v32_v8 = vld [vmem:[#allocation0] sm:$0x1] }
  0x8a   :  { %35 = vst [vmem:[%s59_s1] sm:$0x1] %v32_v8 }

// kernel: tile.18
= control target key start
LH: loop header
LB: loop body
LE: loop exit
PB: predicated region body
PF: predicated region fallthrough
CT: control target
= control target key end

     0   :  { %s22_s0 = inlined_call_operand.vmem [shape: f32[16], index: 0, kind: input, shape index: {}]   ;;  %s23_s1 = inlined_call_operand.vmem [shape: f32[4,16], index: 1, kind: output, shape index: {}]  }
   0x1   :  { %v4_v0 = vld [vmem:[%s22_s0] ss:$0 sm:$0xff] }
   0x2   :  { %5 = vst [vmem:[%s23_s1] sm:$0xf] %v4_v0 }

// kernel: tile.19
= control target key start
LH: loop header
LB: loop body
LE: loop exit
PB: predicated region body
PF: predicated region fallthrough
CT: control target
= control target key end

     0   :  { %vm8_vm0 = vcmask 130048   ;;  %s40_s8 = smov 16   ;;  %s41_s9 = smov 32   ;;  %vm14_vm1 = vcmask 523648   ;;  %vm20_vm2 = vcmask 392448   ;;  %vm26_vm3 = vcmask 261248   ;;  %s58_s0 = inlined_call_operand.vmem [shape: f32[4,16], index: 0, kind: input, shape index: {}]   ;;  %s59_s1 = inlined_call_operand.vmem [shape: f32[1,64], index: 1, kind: output, shape index: {}]  }
   0x1   :  { %v5_v0 = vld [vmem:[%s58_s0] sm:$0xf]  ;;  %s39_s0 = smov 48  }
   0x2   :  { %6 = vst [vmem:[#allocation1] sm:$0xf] %v5_v0 }
   0x9   :  { %v11_v1 = vld [vmem:[#allocation1 + $0x3] sm:$0x1]   ;;  %v23_v2 = vld [vmem:[#allocation1 + $0x1] sm:$0x1]   ;;  %v7_v3 = vld [vmem:[#allocation1] sm:$0x1]  }
   0xa   :  { %12 = vrot.lane.b32.xlu0 %v11_v1, %s39_s0  ;;  %24 = vrot.lane.b32.xlu1 %v23_v2, %s40_s8  ;;  %v17_v4 = vld [vmem:[#allocation1 + $0x2] sm:$0x1]   ;;  %9 = vst.msk [vmem:[#allocation0] sm:$0x1] %vm8_vm0, %v7_v3  }
   0xe   :  { %18 = vrot.lane.b32.xlu0 %v17_v4, %s41_s9 }
  0x7c   :  { %v13_v5 = vpop.permute.xlu0 %12   ;;  %v25_v6 = vpop.permute.xlu1 %24  }
  0x7d   :  { %15 = vst.msk [vmem:[#allocation0] sm:$0x1] %vm14_vm1, %v13_v5  }
  0x80   :  { %v19_v7 = vpop.permute.xlu0 %18  }
  0x81   :  { %21 = vst.msk [vmem:[#allocation0] sm:$0x1] %vm20_vm2, %v19_v7  }
  0x82   :  { %27 = vst.msk [vmem:[#allocation0] sm:$0x1] %vm26_vm3, %v25_v6  }
  0x89   :  { %v32_v8 = vld [vmem:[#allocation0] sm:$0x1] }
  0x8a   :  { %35 = vst [vmem:[%s59_s1] sm:$0x1] %v32_v8 }

// kernel: psa_module.1
= control target key start
LH: loop header
LB: loop body
LE: loop exit
PB: predicated region body
PF: predicated region fallthrough
CT: control target
= control target key end

     0   :  { %11 = vsyncpa [#allocation3], 0  ;;  %s7543_s0 = inlined_call_operand.vmem [shape: f32[2,256,2624], index: 0, kind: input, shape index: {}]   ;;  %s7544_s1 = inlined_call_operand.vmem [shape: f32[2624,64], index: 1, kind: input, shape index: {}]   ;;  %s7545_s2 = inlined_call_operand.vmem [shape: f32[64,16], index: 2, kind: input, shape index: {}]   ;;  %s7546_s3 = inlined_call_operand.vmem [shape: f32[1,16], index: 3, kind: input, shape index: {}]   ;;  %s7547_s4 = inlined_call_operand.vmem [shape: f32[16,64], index: 4, kind: input, shape index: {}]   ;;  %s7548_s5 = inlined_call_operand.vmem [shape: f32[1,64], index: 5, kind: input, shape index: {}]   ;;  %s7549_s6 = inlined_call_operand.hbm [shape: f32[2,256,64], index: 6, kind: output, shape index: {}]  }
   0x1   :  { %13 = vsyncpa [#allocation3 + $0x1], 0  ;;  %s4655_s21 = smov 0   ;;  %s4657_s22 = smov 0  }
   0x2   :  { %s4659_s23 = smov 0   ;;  %s4661_s24 = smov 0  }
   0x3 LB: > { %s4676_s25 = sadd.s32 4294967295, %s4607_s24   ;;  %s4273_s26 = sadd.s32 4294967294, %s4607_s24   ;;  %s4607_s24 = sphi %s4661_s24, %s7555_s24   ;;  %s4603_s23 = sphi %s4659_s23, %s7554_s23   ;;  %s4599_s22 = sphi %s4657_s22, %s7553_s22   ;;  %s4595_s21 = sphi %s4655_s21, %s7552_s21  }
   0x4   : > { %s4680_s27 = sadd.s32 1, %s4607_s24   ;;  %s157_s28 = sadd.s32 1, %s4603_s23 }
   0x5   : > { %s154_s29 = ssub.s32 %s4607_s24, %s4680_s27  ;;  %p167_p0 = scmp.ne.s32.totalorder %s4603_s23, %s4599_s22 }
   0x6   : > { %p155_p1 = scmp.eq.s32.totalorder %s154_s29, 0  ;;  %p168_p2 = scmp.eq.s32.totalorder %s4676_s25, 1 }
   0x7   : > { %p173_p3 = scmp.ne.s32.totalorder %s4599_s22, %s4595_s21  ;;  %p174_p4 = scmp.eq.s32.totalorder %s4273_s26, 1 }
   0x8   : > { %s4691_s30 = scalar_select %p155_p1, %s4603_s23, %s157_s28  }
   0x9   : > { %p4693_p5 = por %p168_p2, %p167_p0  ;;  %p4697_p6 = por %p174_p4, %p173_p3 }
   0xa   : > { %p4276_p7 = scmp.ge.s32.totalorder %s4607_s24, 1  ;;  %p215_p8 = scmp.lt.s32.totalorder %s4607_s24, 3 }
   0xc   : > { %p216_p9 = pnand %p4276_p7, %p215_p8 }
   0xd   : > { %p245_p10 = scmp.lt.s32.totalorder (!%p216_p9), %s4676_s25, 1  ;;  %s4611_s11 = smov (!%p216_p9), 112  }
   0xe   : > { %219 = sbr.rel (%p216_p9) target bundleno = 2087 (0x827), region = 44  ;;  %s4612_s12 = smov (!%p216_p9), 96  }
   0xf   : > { %s4613_s14 = smov (!%p216_p9), 48   ;;  %s4614_s15 = smov (!%p216_p9), 16  }
  0x10   : > { %s4615_s16 = smov (!%p216_p9), 32   ;;  %s4616_s18 = smov (!%p216_p9), 80  }
  0x11   : > { %s4318_s20 = sshll.u32 (!%p216_p9), %s4676_s25, 12 }
  0x13   : > { %v937_v0 = vld [vmem:[%s7544_s1 + $0x78] sm:$0xff]  ;;  %v4609_v2 = vmov 0.0   ;;  %v936_v3 = vld [vmem:[%s7544_s1 + $0x70] sm:$0xff]  ;;  %v935_v5 = vld [vmem:[%s7544_s1 + $0x68] sm:$0xff]  ;;  %s246_s29 = scalar_select %p245_p10, %s4676_s25, 1  ;;  %vm1250_vm0 = vcmask 523264  }
  0x14   : > { %v969_v1 = vld [vmem:[%s7544_s1 + $0x178] sm:$0xff]  ;;  %1347 = vmatprep.subr.mxu0 %v4609_v2  ;;  %1572 = vmatprep.subr.mxu1 %v4609_v2  ;;  %v968_v4 = vld [vmem:[%s7544_s1 + $0x170] sm:$0xff]  ;;  %v967_v6 = vld [vmem:[%s7544_s1 + $0x168] sm:$0xff]  ;;  %vm4610_vm1 = vmmov 0   ;;  %vm3979_vm2 = vcmask 130048   ;;  %vm4125_vm3 = vcmask 261120  }
  0x15   : > { %1348 = vmatpush1.msra.mxu0 %v937_v0  ;;  %1573 = vmatpush1.msra.mxu1 %v969_v1  ;;  %v934_v7 = vld [vmem:[%s7544_s1 + $0x60] sm:$0xff]  ;;  %v933_v9 = vld [vmem:[%s7544_s1 + $0x58] sm:$0xff]  ;;  %v932_v11 = vld [vmem:[%s7544_s1 + $0x50] sm:$0xff]  ;;  %s4477_s17 = smul.u32 5376, %s246_s29  ;;  %vm4127_vm4 = vcmask 392192   ;;  %s7469_s29 = scalar_lea.hbm %s7549_s6, %s4318_s20 }
  0x16   : > { %1349 = vmatprep.subr.mxu0 %v4609_v2  ;;  %1574 = vmatprep.subr.mxu1 %v4609_v2  ;;  %v966_v8 = vld [vmem:[%s7544_s1 + $0x160] sm:$0xff]  ;;  %v965_v10 = vld [vmem:[%s7544_s1 + $0x158] sm:$0xff]  ;;  %v964_v12 = vld [vmem:[%s7544_s1 + $0x150] sm:$0xff] }
  0x17   : > { %1350 = vmatpush1.msra.mxu0 %v936_v3  ;;  %1575 = vmatpush1.msra.mxu1 %v968_v4  ;;  %v931_v13 = vld [vmem:[%s7544_s1 + $0x48] sm:$0xff]  ;;  %v930_v15 = vld [vmem:[%s7544_s1 + $0x40] sm:$0xff]  ;;  %v929_v17 = vld [vmem:[%s7544_s1 + $0x38] sm:$0xff]  ;;  %s4946_s13 = scalar_lea.vmem %s7543_s0, %s4477_s17 }
  0x18   : > { %1351 = vmatprep.subr.mxu0 %v4609_v2  ;;  %1576 = vmatprep.subr.mxu1 %v4609_v2  ;;  %v963_v14 = vld [vmem:[%s7544_s1 + $0x148] sm:$0xff]  ;;  %v962_v16 = vld [vmem:[%s7544_s1 + $0x140] sm:$0xff]  ;;  %v961_v18 = vld [vmem:[%s7544_s1 + $0x138] sm:$0xff] }
  0x19   : > { %1352 = vmatpush1.msra.mxu0 %v935_v5  ;;  %1577 = vmatpush1.msra.mxu1 %v967_v6  ;;  %v928_v19 = vld [vmem:[%s7544_s1 + $0x30] sm:$0xff]  ;;  %v927_v21 = vld [vmem:[%s7544_s1 + $0x28] sm:$0xff]  ;;  %v926_v23 = vld [vmem:[%s7544_s1 + $0x20] sm:$0xff] }
  0x1a   : > { %1353 = vmatprep.subr.mxu0 %v4609_v2  ;;  %1578 = vmatprep.subr.mxu1 %v4609_v2  ;;  %v960_v20 = vld [vmem:[%s7544_s1 + $0x130] sm:$0xff]  ;;  %v959_v22 = vld [vmem:[%s7544_s1 + $0x128] sm:$0xff]  ;;  %v958_v24 = vld [vmem:[%s7544_s1 + $0x120] sm:$0xff] }
  0x1b   : > { %1354 = vmatpush1.msra.mxu0 %v934_v7  ;;  %1579 = vmatpush1.msra.mxu1 %v966_v8  ;;  %v925_v25 = vld [vmem:[%s7544_s1 + $0x18] sm:$0xff]  ;;  %v924_v27 = vld [vmem:[%s7544_s1 + $0x10] sm:$0xff]  ;;  %v923_v29 = vld [vmem:[%s7544_s1 + $0x8] sm:$0xff] }
  0x1c   : > { %1355 = vmatprep.subr.mxu0 %v4609_v2  ;;  %1580 = vmatprep.subr.mxu1 %v4609_v2  ;;  %v957_v26 = vld [vmem:[%s7544_s1 + $0x118] sm:$0xff]  ;;  %v956_v28 = vld [vmem:[%s7544_s1 + $0x110] sm:$0xff]  ;;  %v955_v30 = vld [vmem:[%s7544_s1 + $0x108] sm:$0xff] }
  0x1d   : > { %1356 = vmatpush1.msra.mxu0 %v933_v9  ;;  %1581 = vmatpush1.msra.mxu1 %v965_v10  ;;  %v922_v31 = vld [vmem:[%s7544_s1] sm:$0xff]  ;;  %v953_v33 = vld [vmem:[%s7544_s1 + $0xf8] sm:$0xff]  ;;  %v952_v35 = vld [vmem:[%s7544_s1 + $0xf0] sm:$0xff] }
  0x1e   : > { %1357 = vmatprep.subr.mxu0 %v4609_v2  ;;  %1582 = vmatprep.subr.mxu1 %v4609_v2  ;;  %v954_v32 = vld [vmem:[%s7544_s1 + $0x100] sm:$0xff]  ;;  %v985_v34 = vld [vmem:[%s7544_s1 + $0x1f8] sm:$0xff]  ;;  %v984_v36 = vld [vmem:[%s7544_s1 + $0x1f0] sm:$0xff] }
  0x1f   : > { %1358 = vmatpush1.msra.mxu0 %v932_v11  ;;  %1583 = vmatpush1.msra.mxu1 %v964_v12  ;;  %v951_v37 = vld [vmem:[%s7544_s1 + $0xe8] sm:$0xff]  ;;  %v950_v39 = vld [vmem:[%s7544_s1 + $0xe0] sm:$0xff]  ;;  %v949_v41 = vld [vmem:[%s7544_s1 + $0xd8] sm:$0xff] }
  0x20   : > { %1359 = vmatprep.subr.mxu0 %v4609_v2  ;;  %1584 = vmatprep.subr.mxu1 %v4609_v2  ;;  %v983_v38 = vld [vmem:[%s7544_s1 + $0x1e8] sm:$0xff]  ;;  %v982_v40 = vld [vmem:[%s7544_s1 + $0x1e0] sm:$0xff]  ;;  %v981_v42 = vld [vmem:[%s7544_s1 + $0x1d8] sm:$0xff] }
  0x21   : > { %1360 = vmatpush1.msra.mxu0 %v931_v13  ;;  %1585 = vmatpush1.msra.mxu1 %v963_v14  ;;  %v948_v43 = vld [vmem:[%s7544_s1 + $0xd0] sm:$0xff]  ;;  %v947_v45 = vld [vmem:[%s7544_s1 + $0xc8] sm:$0xff]  ;;  %v946_v47 = vld [vmem:[%s7544_s1 + $0xc0] sm:$0xff] }
  0x22   : > { %1361 = vmatprep.subr.mxu0 %v4609_v2  ;;  %1586 = vmatprep.subr.mxu1 %v4609_v2  ;;  %v980_v44 = vld [vmem:[%s7544_s1 + $0x1d0] sm:$0xff]  ;;  %v979_v46 = vld [vmem:[%s7544_s1 + $0x1c8] sm:$0xff]  ;;  %v978_v48 = vld [vmem:[%s7544_s1 + $0x1c0] sm:$0xff] }
  0x23   : > { %1362 = vmatpush1.msra.mxu0 %v930_v15  ;;  %1587 = vmatpush1.msra.mxu1 %v962_v16  ;;  %v945_v49 = vld [vmem:[%s7544_s1 + $0xb8] sm:$0xff]  ;;  %v944_v51 = vld [vmem:[%s7544_s1 + $0xb0] sm:$0xff]  ;;  %v943_v53 = vld [vmem:[%s7544_s1 + $0xa8] sm:$0xff] }
  0x24   : > { %1363 = vmatprep.subr.mxu0 %v4609_v2  ;;  %1588 = vmatprep.subr.mxu1 %v4609_v2  ;;  %v977_v50 = vld [vmem:[%s7544_s1 + $0x1b8] sm:$0xff]  ;;  %v976_v52 = vld [vmem:[%s7544_s1 + $0x1b0] sm:$0xff]  ;;  %v975_v54 = vld [vmem:[%s7544_s1 + $0x1a8] sm:$0xff] }
  0x25   : > { %1364 = vmatpush1.msra.mxu0 %v929_v17  ;;  %1589 = vmatpush1.msra.mxu1 %v961_v18  ;;  %v942_v55 = vld [vmem:[%s7544_s1 + $0xa0] sm:$0xff]  ;;  %v941_v57 = vld [vmem:[%s7544_s1 + $0x98] sm:$0xff]  ;;  %v940_v59 = vld [vmem:[%s7544_s1 + $0x90] sm:$0xff] }
  0x26   : > { %1365 = vmatprep.subr.mxu0 %v4609_v2  ;;  %1590 = vmatprep.subr.mxu1 %v4609_v2  ;;  %v974_v56 = vld [vmem:[%s7544_s1 + $0x1a0] sm:$0xff]  ;;  %v973_v58 = vld [vmem:[%s7544_s1 + $0x198] sm:$0xff]  ;;  %v972_v60 = vld [vmem:[%s7544_s1 + $0x190] sm:$0xff] }
  0x27   : > { %1366 = vmatpush1.msra.mxu0 %v928_v19  ;;  %1591 = vmatpush1.msra.mxu1 %v960_v20  ;;  %v939_v61 = vld [vmem:[%s7544_s1 + $0x88] sm:$0xff]  ;;  %v938_v63 = vld [vmem:[%s7544_s1 + $0x80] sm:$0xff]  ;;  %v253_v3 = vld [vmem:[%s4946_s13 + $0x18] sm:$0xff] }
  0x28   : > { %1367 = vmatprep.subr.mxu0 %v4609_v2  ;;  %1592 = vmatprep.subr.mxu1 %v4609_v2  ;;  %v971_v62 = vld [vmem:[%s7544_s1 + $0x188] sm:$0xff]  ;;  %v970_v1 = vld [vmem:[%s7544_s1 + $0x180] sm:$0xff]  ;;  %v252_v5 = vld [vmem:[%s4946_s13 + $0x10] sm:$0xff] }
  0x29   : > { %1368 = vmatpush1.msra.mxu0 %v927_v21  ;;  %1593 = vmatpush1.msra.mxu1 %v959_v22  ;;  %v251_v0 = vld [vmem:[%s4946_s13 + $0x8] sm:$0xff]  ;;  %v250_v4 = vld [vmem:[%s4946_s13] sm:$0xff]  ;;  %v272_v6 = vld [vmem:[%s4946_s13 + $0xb0] sm:$0xff] }
  0x2a   : > { %1369 = vmatprep.subr.mxu0 %v4609_v2  ;;  %1594 = vmatprep.subr.mxu1 %v4609_v2  ;;  %v1001_v7 = vld [vmem:[%s7544_s1 + $0x278] sm:$0xff]  ;;  %v274_v8 = vld [vmem:[%s4946_s13 + $0xc0] sm:$0xff]  ;;  %v271_v9 = vld [vmem:[%s4946_s13 + $0xa8] sm:$0xff] }
  0x2b   : > { %1370 = vmatpush1.msra.mxu0 %v926_v23  ;;  %1595 = vmatpush1.msra.mxu1 %v958_v24  ;;  %v273_v10 = vld [vmem:[%s4946_s13 + $0xb8] sm:$0xff]  ;;  %v1000_v11 = vld [vmem:[%s7544_s1 + $0x270] sm:$0xff]  ;;  %v295_v13 = vld [vmem:[%s4946_s13 + $0x168] sm:$0xff] }
  0x2c   : > { %1371 = vmatprep.subr.mxu0 %v4609_v2  ;;  %1596 = vmatprep.subr.mxu1 %v4609_v2  ;;  %v293_v12 = vld [vmem:[%s4946_s13 + $0x158] sm:$0xff]  ;;  %v999_v14 = vld [vmem:[%s7544_s1 + $0x268] sm:$0xff]  ;;  %v292_v16 = vld [vmem:[%s4946_s13 + $0x150] sm:$0xff] }
  0x2d   : > { %1372 = vmatpush1.msra.mxu0 %v925_v25  ;;  %1597 = vmatpush1.msra.mxu1 %v957_v26  ;;  %v1033_v15 = vld [vmem:[%s7544_s1 + $0x378] sm:$0xff]  ;;  %v294_v17 = vld [vmem:[%s4946_s13 + $0x160] sm:$0xff]  ;;  %v316_v19 = vld [vmem:[%s4946_s13 + $0x210] sm:$0xff] }
  0x2e   : > { %1373 = vmatprep.subr.mxu0 %v4609_v2  ;;  %1598 = vmatprep.subr.mxu1 %v4609_v2  ;;  %v314_v18 = vld [vmem:[%s4946_s13 + $0x200] sm:$0xff]  ;;  %v1032_v21 = vld [vmem:[%s7544_s1 + $0x370] sm:$0xff]  ;;  %v313_v22 = vld [vmem:[%s4946_s13 + $0x1f8] sm:$0xff] }
  0x2f   : > { %1374 = vmatpush1.msra.mxu0 %v924_v27  ;;  %1599 = vmatpush1.msra.mxu1 %v956_v28  ;;  %v998_v20 = vld [vmem:[%s7544_s1 + $0x260] sm:$0xff]  ;;  %v315_v23 = vld [vmem:[%s4946_s13 + $0x208] sm:$0xff]  ;;  %v337_v25 = vld [vmem:[%s4946_s13 + $0x2b8] sm:$0xff] }
  0x30   : > { %1375 = vmatprep.subr.mxu0 %v4609_v2  ;;  %1600 = vmatprep.subr.mxu1 %v4609_v2  ;;  %v335_v24 = vld [vmem:[%s4946_s13 + $0x2a8] sm:$0xff]  ;;  %v997_v26 = vld [vmem:[%s7544_s1 + $0x258] sm:$0xff]  ;;  %v334_v28 = vld [vmem:[%s4946_s13 + $0x2a0] sm:$0xff] }
  0x31   : > { %1376 = vmatpush1.msra.mxu0 %v923_v29  ;;  %1601 = vmatpush1.msra.mxu1 %v955_v30  ;;  %v1031_v27 = vld [vmem:[%s7544_s1 + $0x368] sm:$0xff]  ;;  %v336_v29 = vld [vmem:[%s4946_s13 + $0x2b0] sm:$0xff] }
  0x32   : > { %1377 = vmatprep.subr.mxu0 %v4609_v2  ;;  %1602 = vmatprep.subr.mxu1 %v4609_v2  ;;  %v356_v30 = vld [vmem:[%s4946_s13 + $0x350] sm:$0xff] }
  0x33   : > { %1378 = vmatpush1.msra.mxu0 %v922_v31  ;;  %1603 = vmatpush1.msra.mxu1 %v954_v32  ;;  %v358_v31 = vld [vmem:[%s4946_s13 + $0x360] sm:$0xff]  ;;  %v996_v32 = vld [vmem:[%s7544_s1 + $0x250] sm:$0xff] }
  0x34   : > { %1379 = vmatprep.subr.mxu0 %v4609_v2  ;;  %1604 = vmatprep.subr.mxu1 %v4609_v2 }
  0x35   : > { %1380 = vmatpush2.msra.mxu0 %v953_v33  ;;  %1605 = vmatpush2.msra.mxu1 %v985_v34  ;;  %v1030_v33 = vld [vmem:[%s7544_s1 + $0x360] sm:$0xff]  ;;  %v355_v34 = vld [vmem:[%s4946_s13 + $0x348] sm:$0xff] }
  0x36   : > { %1381 = vmatprep.subr.mxu0 %v4609_v2  ;;  %1606 = vmatprep.subr.mxu1 %v4609_v2 }
  0x37   : > { %1382 = vmatpush2.msra.mxu0 %v952_v35  ;;  %1607 = vmatpush2.msra.mxu1 %v984_v36  ;;  %v357_v35 = vld [vmem:[%s4946_s13 + $0x358] sm:$0xff] }
  0x38   : > { %1383 = vmatprep.subr.mxu0 %v4609_v2  ;;  %1608 = vmatprep.subr.mxu1 %v4609_v2  ;;  %v377_v36 = vld [vmem:[%s4946_s13 + $0x3f8] sm:$0xff] }
  0x39   : > { %1384 = vmatpush2.msra.mxu0 %v951_v37  ;;  %1609 = vmatpush2.msra.mxu1 %v983_v38  ;;  %v379_v37 = vld [vmem:[%s4946_s13 + $0x408] sm:$0xff] }
  0x3a   : > { %1385 = vmatprep.subr.mxu0 %v4609_v2  ;;  %1610 = vmatprep.subr.mxu1 %v4609_v2  ;;  %v995_v38 = vld [vmem:[%s7544_s1 + $0x248] sm:$0xff] }
  0x3b   : > { %1386 = vmatpush2.msra.mxu0 %v950_v39  ;;  %1611 = vmatpush2.msra.mxu1 %v982_v40  ;;  %v1029_v39 = vld [vmem:[%s7544_s1 + $0x358] sm:$0xff]  ;;  %v376_v40 = vld [vmem:[%s4946_s13 + $0x3f0] sm:$0xff] }
  0x3c   : > { %1387 = vmatprep.subr.mxu0 %v4609_v2  ;;  %1612 = vmatprep.subr.mxu1 %v4609_v2 }
  0x3d   : > { %1388 = vmatpush2.msra.mxu0 %v949_v41  ;;  %1613 = vmatpush2.msra.mxu1 %v981_v42  ;;  %v378_v41 = vld [vmem:[%s4946_s13 + $0x400] sm:$0xff] }
  0x3e   : > { %1389 = vmatprep.subr.mxu0 %v4609_v2  ;;  %1614 = vmatprep.subr.mxu1 %v4609_v2  ;;  %v398_v42 = vld [vmem:[%s4946_s13 + $0x4a0] sm:$0xff] }
  0x3f   : > { %1390 = vmatpush2.msra.mxu0 %v948_v43  ;;  %1615 = vmatpush2.msra.mxu1 %v980_v44  ;;  %v400_v43 = vld [vmem:[%s4946_s13 + $0x4b0] sm:$0xff]  ;;  %v994_v44 = vld [vmem:[%s7544_s1 + $0x240] sm:$0xff] }
  0x40   : > { %1391 = vmatprep.subr.mxu0 %v4609_v2  ;;  %1616 = vmatprep.subr.mxu1 %v4609_v2 }
  0x41   : > { %1392 = vmatpush2.msra.mxu0 %v947_v45  ;;  %1617 = vmatpush2.msra.mxu1 %v979_v46  ;;  %v1028_v45 = vld [vmem:[%s7544_s1 + $0x350] sm:$0xff]  ;;  %v397_v46 = vld [vmem:[%s4946_s13 + $0x498] sm:$0xff] }
  0x42   : > { %1393 = vmatprep.subr.mxu0 %v4609_v2  ;;  %1618 = vmatprep.subr.mxu1 %v4609_v2 }
  0x43   : > { %1394 = vmatpush2.msra.mxu0 %v946_v47  ;;  %1619 = vmatpush2.msra.mxu1 %v978_v48  ;;  %v399_v47 = vld [vmem:[%s4946_s13 + $0x4a8] sm:$0xff] }
  0x44   : > { %1395 = vmatprep.subr.mxu0 %v4609_v2  ;;  %1620 = vmatprep.subr.mxu1 %v4609_v2  ;;  %v419_v48 = vld [vmem:[%s4946_s13 + $0x548] sm:$0xff] }
  0x45   : > { %1396 = vmatpush2.msra.mxu0 %v945_v49  ;;  %1621 = vmatpush2.msra.mxu1 %v977_v50  ;;  %v421_v49 = vld [vmem:[%s4946_s13 + $0x558] sm:$0xff] }
  0x46   : > { %1397 = vmatprep.subr.mxu0 %v4609_v2  ;;  %1622 = vmatprep.subr.mxu1 %v4609_v2  ;;  %v993_v50 = vld [vmem:[%s7544_s1 + $0x238] sm:$0xff] }
  0x47   : > { %1398 = vmatpush2.msra.mxu0 %v944_v51  ;;  %1623 = vmatpush2.msra.mxu1 %v976_v52  ;;  %v1027_v51 = vld [vmem:[%s7544_s1 + $0x348] sm:$0xff]  ;;  %v418_v52 = vld [vmem:[%s4946_s13 + $0x540] sm:$0xff] }
  0x48   : > { %1399 = vmatprep.subr.mxu0 %v4609_v2  ;;  %1624 = vmatprep.subr.mxu1 %v4609_v2 }
  0x49   : > { %1400 = vmatpush2.msra.mxu0 %v943_v53  ;;  %1625 = vmatpush2.msra.mxu1 %v975_v54  ;;  %v420_v53 = vld [vmem:[%s4946_s13 + $0x550] sm:$0xff] }
  0x4a   : > { %1401 = vmatprep.subr.mxu0 %v4609_v2  ;;  %1626 = vmatprep.subr.mxu1 %v4609_v2  ;;  %v440_v54 = vld [vmem:[%s4946_s13 + $0x5f0] sm:$0xff] }
  0x4b   : > { %1402 = vmatpush2.msra.mxu0 %v942_v55  ;;  %1627 = vmatpush2.msra.mxu1 %v974_v56  ;;  %v442_v55 = vld [vmem:[%s4946_s13 + $0x600] sm:$0xff]  ;;  %v992_v56 = vld [vmem:[%s7544_s1 + $0x230] sm:$0xff] }
  0x4c   : > { %1403 = vmatprep.subr.mxu0 %v4609_v2  ;;  %1628 = vmatprep.subr.mxu1 %v4609_v2 }
  0x4d   : > { %1404 = vmatpush2.msra.mxu0 %v941_v57  ;;  %1629 = vmatpush2.msra.mxu1 %v973_v58  ;;  %v1026_v57 = vld [vmem:[%s7544_s1 + $0x340] sm:$0xff]  ;;  %v439_v58 = vld [vmem:[%s4946_s13 + $0x5e8] sm:$0xff] }
  0x4e   : > { %1405 = vmatprep.subr.mxu0 %v4609_v2  ;;  %1630 = vmatprep.subr.mxu1 %v4609_v2 }
  0x4f   : > { %1406 = vmatpush2.msra.mxu0 %v940_v59  ;;  %1631 = vmatpush2.msra.mxu1 %v972_v60  ;;  %v441_v59 = vld [vmem:[%s4946_s13 + $0x5f8] sm:$0xff] }
  0x50   : > { %1407 = vmatprep.subr.mxu0 %v4609_v2  ;;  %1632 = vmatprep.subr.mxu1 %v4609_v2  ;;  %v461_v60 = vld [vmem:[%s4946_s13 + $0x698] sm:$0xff] }
  0x51   : > { %1408 = vmatpush2.msra.mxu0 %v939_v61  ;;  %1633 = vmatpush2.msra.mxu1 %v971_v62  ;;  %v463_v61 = vld [vmem:[%s4946_s13 + $0x6a8] sm:$0xff] }
  0x52   : > { %1409 = vmatprep.subr.mxu0 %v4609_v2  ;;  %1634 = vmatprep.subr.mxu1 %v4609_v2  ;;  %v991_v62 = vld [vmem:[%s7544_s1 + $0x228] sm:$0xff] }
  0x53   : > { %1410 = vmatpush2.msra.mxu0 %v938_v63  ;;  %1411 = vmatprep.mubr.f32.mxu0 %v251_v0  ;;  %v1025_v63 = vld [vmem:[%s7544_s1 + $0x338] sm:$0xff]  ;;  %v460_v0 = vld [vmem:[%s4946_s13 + $0x690] sm:$0xff] }
  0x54   : > { %1635 = vmatpush2.msra.mxu1 %v970_v1  ;;  %1636 = vmatprep.mubr.f32.mxu1 %v253_v3  ;;  %v462_v1 = vld [vmem:[%s4946_s13 + $0x6a0] sm:$0xff] }
  0x55   : > { %1412 = vmatmul.mubr.f32.vlgmr.msra.gmra.mxu0 %v250_v4  ;;  %1637 = vmatmul.mubr.f32.vlgmr.msra.gmra.mxu1 %v252_v5  ;;  %v482_v3 = vld [vmem:[%s4946_s13 + $0x740] sm:$0xff]  ;;  %v484_v4 = vld [vmem:[%s4946_s13 + $0x750] sm:$0xff] }
  0x56   : > { %1797 = vmatprep.subr.mxu0 %v4609_v2  ;;  %1416 = vmatprep.mubr.f32.mxu0 %v272_v6  ;;  %v990_v5 = vld [vmem:[%s7544_s1 + $0x220] sm:$0xff]  ;;  %v1024_v6 = vld [vmem:[%s7544_s1 + $0x330] sm:$0xff] }
  0x57   : > { %1798 = vmatpush1.msra.mxu0 %v1001_v7  ;;  %1641 = vmatprep.mubr.f32.mxu1 %v274_v8  ;;  %v481_v7 = vld [vmem:[%s4946_s13 + $0x738] sm:$0xff]  ;;  %v483_v8 = vld [vmem:[%s4946_s13 + $0x748] sm:$0xff] }
  0x58   : > { %1799 = vmatprep.subr.mxu0 %v4609_v2  ;;  %2022 = vmatprep.subr.mxu1 %v4609_v2 }
  0x59   : > { %1417 = vmatmul.mubr.f32.gmra.mxu0 %v271_v9  ;;  %1642 = vmatmul.mubr.f32.gmra.mxu1 %v273_v10  ;;  %v503_v9 = vld [vmem:[%s4946_s13 + $0x7e8] sm:$0xff]  ;;  %v505_v10 = vld [vmem:[%s4946_s13 + $0x7f8] sm:$0xff] }
  0x5a   : > { %1800 = vmatpush1.msra.mxu0 %v1000_v11  ;;  %1421 = vmatprep.mubr.f32.mxu0 %v293_v12  ;;  %v989_v11 = vld [vmem:[%s7544_s1 + $0x218] sm:$0xff]  ;;  %v1023_v12 = vld [vmem:[%s7544_s1 + $0x328] sm:$0xff] }
  0x5b   : > { %1646 = vmatprep.mubr.f32.mxu1 %v295_v13  ;;  %1801 = vmatprep.subr.mxu0 %v4609_v2  ;;  %v502_v13 = vld [vmem:[%s4946_s13 + $0x7e0] sm:$0xff] }
  0x5c   : > { %1802 = vmatpush1.msra.mxu0 %v999_v14  ;;  %2023 = vmatpush1.msra.mxu1 %v1033_v15  ;;  %v504_v14 = vld [vmem:[%s4946_s13 + $0x7f0] sm:$0xff] }
  0x5d   : > { %1422 = vmatmul.mubr.f32.gmra.mxu0 %v292_v16  ;;  %1647 = vmatmul.mubr.f32.gmra.mxu1 %v294_v17  ;;  %v524_v15 = vld [vmem:[%s4946_s13 + $0x890] sm:$0xff]  ;;  %v526_v16 = vld [vmem:[%s4946_s13 + $0x8a0] sm:$0xff] }
  0x5e   : > { %1426 = vmatprep.mubr.f32.mxu0 %v314_v18  ;;  %1651 = vmatprep.mubr.f32.mxu1 %v316_v19  ;;  %v988_v17 = vld [vmem:[%s7544_s1 + $0x210] sm:$0xff]  ;;  %v1022_v18 = vld [vmem:[%s7544_s1 + $0x320] sm:$0xff]  ;;  %v523_v19 = vld [vmem:[%s4946_s13 + $0x888] sm:$0xff] }
  0x5f   : > { %1803 = vmatprep.subr.mxu0 %v4609_v2  ;;  %2024 = vmatprep.subr.mxu1 %v4609_v2 }
  0x60   : > { %1804 = vmatpush1.msra.mxu0 %v998_v20  ;;  %2025 = vmatpush1.msra.mxu1 %v1032_v21  ;;  %v525_v20 = vld [vmem:[%s4946_s13 + $0x898] sm:$0xff] }
  0x61   : > { %1427 = vmatmul.mubr.f32.gmra.mxu0 %v313_v22  ;;  %1652 = vmatmul.mubr.f32.gmra.mxu1 %v315_v23  ;;  %v545_v21 = vld [vmem:[%s4946_s13 + $0x938] sm:$0xff]  ;;  %v547_v22 = vld [vmem:[%s4946_s13 + $0x948] sm:$0xff] }
  0x62   : > { %1431 = vmatprep.mubr.f32.mxu0 %v335_v24  ;;  %1656 = vmatprep.mubr.f32.mxu1 %v337_v25  ;;  %v987_v23 = vld [vmem:[%s7544_s1 + $0x208] sm:$0xff]  ;;  %v1021_v24 = vld [vmem:[%s7544_s1 + $0x318] sm:$0xff]  ;;  %v544_v25 = vld [vmem:[%s4946_s13 + $0x930] sm:$0xff] }
  0x63   : > { %1805 = vmatprep.subr.mxu0 %v4609_v2  ;;  %2026 = vmatprep.subr.mxu1 %v4609_v2 }
  0x64   : > { %1806 = vmatpush1.msra.mxu0 %v997_v26  ;;  %2027 = vmatpush1.msra.mxu1 %v1031_v27  ;;  %v546_v26 = vld [vmem:[%s4946_s13 + $0x940] sm:$0xff] }
  0x65   : > { %1432 = vmatmul.mubr.f32.gmra.mxu0 %v334_v28  ;;  %1657 = vmatmul.mubr.f32.gmra.mxu1 %v336_v29  ;;  %v566_v27 = vld [vmem:[%s4946_s13 + $0x9e0] sm:$0xff]  ;;  %v568_v28 = vld [vmem:[%s4946_s13 + $0x9f0] sm:$0xff] }
  0x66   : > { %1436 = vmatprep.mubr.f32.mxu0 %v356_v30  ;;  %1661 = vmatprep.mubr.f32.mxu1 %v358_v31  ;;  %v986_v29 = vld [vmem:[%s7544_s1 + $0x200] sm:$0xff]  ;;  %v1020_v30 = vld [vmem:[%s7544_s1 + $0x310] sm:$0xff]  ;;  %v565_v31 = vld [vmem:[%s4946_s13 + $0x9d8] sm:$0xff] }
  0x67   : > { %1807 = vmatprep.subr.mxu0 %v4609_v2  ;;  %2028 = vmatprep.subr.mxu1 %v4609_v2 }
  0x68   : > { %1808 = vmatpush1.msra.mxu0 %v996_v32  ;;  %2029 = vmatpush1.msra.mxu1 %v1030_v33  ;;  %v567_v32 = vld [vmem:[%s4946_s13 + $0x9e8] sm:$0xff] }
  0x69   : > { %1437 = vmatmul.mubr.f32.gmra.mxu0 %v355_v34  ;;  %1662 = vmatmul.mubr.f32.gmra.mxu1 %v357_v35  ;;  %v587_v33 = vld [vmem:[%s4946_s13 + $0xa88] sm:$0xff]  ;;  %v589_v34 = vld [vmem:[%s4946_s13 + $0xa98] sm:$0xff] }
  0x6a   : > { %1441 = vmatprep.mubr.f32.mxu0 %v377_v36  ;;  %1666 = vmatprep.mubr.f32.mxu1 %v379_v37  ;;  %v1017_v35 = vld [vmem:[%s7544_s1 + $0x2f8] sm:$0xff]  ;;  %v1019_v36 = vld [vmem:[%s7544_s1 + $0x308] sm:$0xff]  ;;  %v586_v37 = vld [vmem:[%s4946_s13 + $0xa80] sm:$0xff] }
  0x6b   : > { %1809 = vmatprep.subr.mxu0 %v4609_v2  ;;  %2030 = vmatprep.subr.mxu1 %v4609_v2 }
  0x6c   : > { %1810 = vmatpush1.msra.mxu0 %v995_v38  ;;  %2031 = vmatpush1.msra.mxu1 %v1029_v39  ;;  %v588_v38 = vld [vmem:[%s4946_s13 + $0xa90] sm:$0xff] }
  0x6d   : > { %1442 = vmatmul.mubr.f32.gmra.mxu0 %v376_v40  ;;  %1667 = vmatmul.mubr.f32.gmra.mxu1 %v378_v41  ;;  %v608_v39 = vld [vmem:[%s4946_s13 + $0xb30] sm:$0xff]  ;;  %v610_v40 = vld [vmem:[%s4946_s13 + $0xb40] sm:$0xff] }
  0x6e   : > { %1446 = vmatprep.mubr.f32.mxu0 %v398_v42  ;;  %1671 = vmatprep.mubr.f32.mxu1 %v400_v43  ;;  %v1016_v41 = vld [vmem:[%s7544_s1 + $0x2f0] sm:$0xff]  ;;  %v1018_v42 = vld [vmem:[%s7544_s1 + $0x300] sm:$0xff]  ;;  %v607_v43 = vld [vmem:[%s4946_s13 + $0xb28] sm:$0xff] }
  0x6f   : > { %1811 = vmatprep.subr.mxu0 %v4609_v2  ;;  %2032 = vmatprep.subr.mxu1 %v4609_v2 }
  0x70   : > { %1812 = vmatpush1.msra.mxu0 %v994_v44  ;;  %2033 = vmatpush1.msra.mxu1 %v1028_v45  ;;  %v609_v44 = vld [vmem:[%s4946_s13 + $0xb38] sm:$0xff] }
  0x71   : > { %1447 = vmatmul.mubr.f32.gmra.mxu0 %v397_v46  ;;  %1672 = vmatmul.mubr.f32.gmra.mxu1 %v399_v47  ;;  %v629_v45 = vld [vmem:[%s4946_s13 + $0xbd8] sm:$0xff]  ;;  %v631_v46 = vld [vmem:[%s4946_s13 + $0xbe8] sm:$0xff] }
  0x72   : > { %1451 = vmatprep.mubr.f32.mxu0 %v419_v48  ;;  %1676 = vmatprep.mubr.f32.mxu1 %v421_v49  ;;  %v1015_v47 = vld [vmem:[%s7544_s1 + $0x2e8] sm:$0xff]  ;;  %v1049_v48 = vld [vmem:[%s7544_s1 + $0x3f8] sm:$0xff]  ;;  %v628_v49 = vld [vmem:[%s4946_s13 + $0xbd0] sm:$0xff] }
  0x73   : > { %1813 = vmatprep.subr.mxu0 %v4609_v2  ;;  %2034 = vmatprep.subr.mxu1 %v4609_v2 }
  0x74   : > { %1814 = vmatpush1.msra.mxu0 %v993_v50  ;;  %2035 = vmatpush1.msra.mxu1 %v1027_v51  ;;  %v630_v50 = vld [vmem:[%s4946_s13 + $0xbe0] sm:$0xff] }
  0x75   : > { %1452 = vmatmul.mubr.f32.gmra.mxu0 %v418_v52  ;;  %1677 = vmatmul.mubr.f32.gmra.mxu1 %v420_v53  ;;  %v650_v51 = vld [vmem:[%s4946_s13 + $0xc80] sm:$0xff]  ;;  %v652_v52 = vld [vmem:[%s4946_s13 + $0xc90] sm:$0xff] }
  0x76   : > { %1456 = vmatprep.mubr.f32.mxu0 %v440_v54  ;;  %1681 = vmatprep.mubr.f32.mxu1 %v442_v55  ;;  %v1014_v53 = vld [vmem:[%s7544_s1 + $0x2e0] sm:$0xff]  ;;  %v1048_v54 = vld [vmem:[%s7544_s1 + $0x3f0] sm:$0xff]  ;;  %v649_v55 = vld [vmem:[%s4946_s13 + $0xc78] sm:$0xff] }
  0x77   : > { %1815 = vmatprep.subr.mxu0 %v4609_v2  ;;  %2036 = vmatprep.subr.mxu1 %v4609_v2 }
  0x78   : > { %1816 = vmatpush1.msra.mxu0 %v992_v56  ;;  %2037 = vmatpush1.msra.mxu1 %v1026_v57  ;;  %v651_v56 = vld [vmem:[%s4946_s13 + $0xc88] sm:$0xff] }
  0x79   : > { %1457 = vmatmul.mubr.f32.gmra.mxu0 %v439_v58  ;;  %1682 = vmatmul.mubr.f32.gmra.mxu1 %v441_v59  ;;  %v671_v57 = vld [vmem:[%s4946_s13 + $0xd28] sm:$0xff]  ;;  %v673_v58 = vld [vmem:[%s4946_s13 + $0xd38] sm:$0xff] }
  0x7a   : > { %1461 = vmatprep.mubr.f32.mxu0 %v461_v60  ;;  %1686 = vmatprep.mubr.f32.mxu1 %v463_v61  ;;  %v1013_v59 = vld [vmem:[%s7544_s1 + $0x2d8] sm:$0xff]  ;;  %v1047_v60 = vld [vmem:[%s7544_s1 + $0x3e8] sm:$0xff]  ;;  %v670_v61 = vld [vmem:[%s4946_s13 + $0xd20] sm:$0xff] }
  0x7b   : > { %1817 = vmatprep.subr.mxu0 %v4609_v2  ;;  %2038 = vmatprep.subr.mxu1 %v4609_v2 }
  0x7c   : > { %1818 = vmatpush1.msra.mxu0 %v991_v62  ;;  %2039 = vmatpush1.msra.mxu1 %v1025_v63  ;;  %v672_v62 = vld [vmem:[%s4946_s13 + $0xd30] sm:$0xff] }
  0x7d   : > { %1462 = vmatmul.mubr.f32.gmra.mxu0 %v460_v0  ;;  %1687 = vmatmul.mubr.f32.gmra.mxu1 %v462_v1  ;;  %v692_v63 = vld [vmem:[%s4946_s13 + $0xdd0] sm:$0xff]  ;;  %v694_v0 = vld [vmem:[%s4946_s13 + $0xde0] sm:$0xff] }
  0x7e   : > { %1466 = vmatprep.mubr.f32.mxu0 %v482_v3  ;;  %1691 = vmatprep.mubr.f32.mxu1 %v484_v4  ;;  %v1012_v1 = vld [vmem:[%s7544_s1 + $0x2d0] sm:$0xff]  ;;  %v1046_v3 = vld [vmem:[%s7544_s1 + $0x3e0] sm:$0xff]  ;;  %v691_v4 = vld [vmem:[%s4946_s13 + $0xdc8] sm:$0xff] }
  0x7f   : > { %1819 = vmatprep.subr.mxu0 %v4609_v2  ;;  %2040 = vmatprep.subr.mxu1 %v4609_v2 }
  0x80   : > { %1820 = vmatpush1.msra.mxu0 %v990_v5  ;;  %2041 = vmatpush1.msra.mxu1 %v1024_v6  ;;  %v693_v5 = vld [vmem:[%s4946_s13 + $0xdd8] sm:$0xff] }
  0x81   : > { %1467 = vmatmul.mubr.f32.gmra.mxu0 %v481_v7  ;;  %1692 = vmatmul.mubr.f32.gmra.mxu1 %v483_v8  ;;  %v713_v6 = vld [vmem:[%s4946_s13 + $0xe78] sm:$0xff]  ;;  %v715_v7 = vld [vmem:[%s4946_s13 + $0xe88] sm:$0xff] }
  0x82   : > { %1471 = vmatprep.mubr.f32.mxu0 %v503_v9  ;;  %1696 = vmatprep.mubr.f32.mxu1 %v505_v10  ;;  %v1011_v8 = vld [vmem:[%s7544_s1 + $0x2c8] sm:$0xff]  ;;  %v1045_v9 = vld [vmem:[%s7544_s1 + $0x3d8] sm:$0xff]  ;;  %v712_v10 = vld [vmem:[%s4946_s13 + $0xe70] sm:$0xff] }
  0x83   : > { %1821 = vmatprep.subr.mxu0 %v4609_v2  ;;  %2042 = vmatprep.subr.mxu1 %v4609_v2 }
  0x84   : > { %1822 = vmatpush1.msra.mxu0 %v989_v11  ;;  %2043 = vmatpush1.msra.mxu1 %v1023_v12  ;;  %v714_v11 = vld [vmem:[%s4946_s13 + $0xe80] sm:$0xff] }
  0x85   : > { %1472 = vmatmul.mubr.f32.gmra.mxu0 %v502_v13  ;;  %1697 = vmatmul.mubr.f32.gmra.mxu1 %v504_v14  ;;  %v734_v12 = vld [vmem:[%s4946_s13 + $0xf20] sm:$0xff]  ;;  %v736_v13 = vld [vmem:[%s4946_s13 + $0xf30] sm:$0xff] }
  0x86   : > { %1476 = vmatprep.mubr.f32.mxu0 %v524_v15  ;;  %1701 = vmatprep.mubr.f32.mxu1 %v526_v16  ;;  %v1010_v14 = vld [vmem:[%s7544_s1 + $0x2c0] sm:$0xff]  ;;  %v1044_v15 = vld [vmem:[%s7544_s1 + $0x3d0] sm:$0xff]  ;;  %v733_v16 = vld [vmem:[%s4946_s13 + $0xf18] sm:$0xff] }
  0x87   : > { %1823 = vmatprep.subr.mxu0 %v4609_v2  ;;  %2044 = vmatprep.subr.mxu1 %v4609_v2 }
  0x88   : > { %1824 = vmatpush1.msra.mxu0 %v988_v17  ;;  %2045 = vmatpush1.msra.mxu1 %v1022_v18  ;;  %v735_v17 = vld [vmem:[%s4946_s13 + $0xf28] sm:$0xff] }
  0x89   : > { %1477 = vmatmul.mubr.f32.gmra.mxu0 %v523_v19  ;;  %1702 = vmatmul.mubr.f32.gmra.mxu1 %v525_v20  ;;  %v755_v18 = vld [vmem:[%s4946_s13 + $0xfc8] sm:$0xff]  ;;  %v757_v19 = vld [vmem:[%s4946_s13 + $0xfd8] sm:$0xff] }
  0x8a   : > { %1481 = vmatprep.mubr.f32.mxu0 %v545_v21  ;;  %1706 = vmatprep.mubr.f32.mxu1 %v547_v22  ;;  %v1009_v20 = vld [vmem:[%s7544_s1 + $0x2b8] sm:$0xff]  ;;  %v1043_v21 = vld [vmem:[%s7544_s1 + $0x3c8] sm:$0xff]  ;;  %v754_v22 = vld [vmem:[%s4946_s13 + $0xfc0] sm:$0xff] }
  0x8b   : > { %1825 = vmatprep.subr.mxu0 %v4609_v2  ;;  %2046 = vmatprep.subr.mxu1 %v4609_v2 }
  0x8c   : > { %1826 = vmatpush1.msra.mxu0 %v987_v23  ;;  %2047 = vmatpush1.msra.mxu1 %v1021_v24  ;;  %v756_v23 = vld [vmem:[%s4946_s13 + $0xfd0] sm:$0xff] }
  0x8d   : > { %1482 = vmatmul.mubr.f32.gmra.mxu0 %v544_v25  ;;  %1707 = vmatmul.mubr.f32.gmra.mxu1 %v546_v26  ;;  %v776_v24 = vld [vmem:[%s4946_s13 + $0x1070] sm:$0xff]  ;;  %v778_v25 = vld [vmem:[%s4946_s13 + $0x1080] sm:$0xff] }
  0x8e   : > { %1486 = vmatprep.mubr.f32.mxu0 %v566_v27  ;;  %1711 = vmatprep.mubr.f32.mxu1 %v568_v28  ;;  %v1008_v26 = vld [vmem:[%s7544_s1 + $0x2b0] sm:$0xff]  ;;  %v1042_v27 = vld [vmem:[%s7544_s1 + $0x3c0] sm:$0xff]  ;;  %v775_v28 = vld [vmem:[%s4946_s13 + $0x1068] sm:$0xff] }
  0x8f   : > { %1827 = vmatprep.subr.mxu0 %v4609_v2  ;;  %2048 = vmatprep.subr.mxu1 %v4609_v2 }
  0x90   : > { %1828 = vmatpush1.msra.mxu0 %v986_v29  ;;  %2049 = vmatpush1.msra.mxu1 %v1020_v30  ;;  %v777_v29 = vld [vmem:[%s4946_s13 + $0x1078] sm:$0xff] }
  0x91   : > { %1487 = vmatmul.mubr.f32.gmra.mxu0 %v565_v31  ;;  %1712 = vmatmul.mubr.f32.gmra.mxu1 %v567_v32  ;;  %v797_v30 = vld [vmem:[%s4946_s13 + $0x1118] sm:$0xff]  ;;  %v799_v31 = vld [vmem:[%s4946_s13 + $0x1128] sm:$0xff] }
  0x92   : > { %1491 = vmatprep.mubr.f32.mxu0 %v587_v33  ;;  %1716 = vmatprep.mubr.f32.mxu1 %v589_v34  ;;  %v1007_v32 = vld [vmem:[%s7544_s1 + $0x2a8] sm:$0xff]  ;;  %v1041_v33 = vld [vmem:[%s7544_s1 + $0x3b8] sm:$0xff]  ;;  %v796_v34 = vld [vmem:[%s4946_s13 + $0x1110] sm:$0xff] }
  0x93   : > { %1829 = vmatprep.subr.mxu0 %v4609_v2  ;;  %2050 = vmatprep.subr.mxu1 %v4609_v2 }
  0x94   : > { %1830 = vmatpush2.msra.mxu0 %v1017_v35  ;;  %2051 = vmatpush1.msra.mxu1 %v1019_v36  ;;  %v798_v35 = vld [vmem:[%s4946_s13 + $0x1120] sm:$0xff] }
  0x95   : > { %1492 = vmatmul.mubr.f32.gmra.mxu0 %v586_v37  ;;  %1717 = vmatmul.mubr.f32.gmra.mxu1 %v588_v38  ;;  %v818_v36 = vld [vmem:[%s4946_s13 + $0x11c0] sm:$0xff]  ;;  %v820_v37 = vld [vmem:[%s4946_s13 + $0x11d0] sm:$0xff] }
  0x96   : > { %1496 = vmatprep.mubr.f32.mxu0 %v608_v39  ;;  %1721 = vmatprep.mubr.f32.mxu1 %v610_v40  ;;  %v1006_v38 = vld [vmem:[%s7544_s1 + $0x2a0] sm:$0xff]  ;;  %v1040_v39 = vld [vmem:[%s7544_s1 + $0x3b0] sm:$0xff]  ;;  %v817_v40 = vld [vmem:[%s4946_s13 + $0x11b8] sm:$0xff] }
  0x97   : > { %1831 = vmatprep.subr.mxu0 %v4609_v2  ;;  %2052 = vmatprep.subr.mxu1 %v4609_v2 }
  0x98   : > { %1832 = vmatpush2.msra.mxu0 %v1016_v41  ;;  %2053 = vmatpush1.msra.mxu1 %v1018_v42  ;;  %v819_v41 = vld [vmem:[%s4946_s13 + $0x11c8] sm:$0xff] }
  0x99   : > { %1497 = vmatmul.mubr.f32.gmra.mxu0 %v607_v43  ;;  %1722 = vmatmul.mubr.f32.gmra.mxu1 %v609_v44  ;;  %v839_v42 = vld [vmem:[%s4946_s13 + $0x1268] sm:$0xff]  ;;  %v841_v43 = vld [vmem:[%s4946_s13 + $0x1278] sm:$0xff] }
  0x9a   : > { %1501 = vmatprep.mubr.f32.mxu0 %v629_v45  ;;  %1726 = vmatprep.mubr.f32.mxu1 %v631_v46  ;;  %v1005_v44 = vld [vmem:[%s7544_s1 + $0x298] sm:$0xff]  ;;  %v1039_v45 = vld [vmem:[%s7544_s1 + $0x3a8] sm:$0xff]  ;;  %v838_v46 = vld [vmem:[%s4946_s13 + $0x1260] sm:$0xff] }
  0x9b   : > { %1833 = vmatprep.subr.mxu0 %v4609_v2  ;;  %2054 = vmatprep.subr.mxu1 %v4609_v2 }
  0x9c   : > { %1834 = vmatpush2.msra.mxu0 %v1015_v47  ;;  %2055 = vmatpush2.msra.mxu1 %v1049_v48  ;;  %v840_v47 = vld [vmem:[%s4946_s13 + $0x1270] sm:$0xff] }
  0x9d   : > { %1502 = vmatmul.mubr.f32.gmra.mxu0 %v628_v49  ;;  %1727 = vmatmul.mubr.f32.gmra.mxu1 %v630_v50  ;;  %v860_v48 = vld [vmem:[%s4946_s13 + $0x1310] sm:$0xff]  ;;  %v862_v49 = vld [vmem:[%s4946_s13 + $0x1320] sm:$0xff] }
  0x9e   : > { %1506 = vmatprep.mubr.f32.mxu0 %v650_v51  ;;  %1731 = vmatprep.mubr.f32.mxu1 %v652_v52  ;;  %v1004_v50 = vld [vmem:[%s7544_s1 + $0x290] sm:$0xff]  ;;  %v1038_v51 = vld [vmem:[%s7544_s1 + $0x3a0] sm:$0xff]  ;;  %v859_v52 = vld [vmem:[%s4946_s13 + $0x1308] sm:$0xff] }
  0x9f   : > { %1835 = vmatprep.subr.mxu0 %v4609_v2  ;;  %2056 = vmatprep.subr.mxu1 %v4609_v2 }
  0xa0   : > { %1836 = vmatpush2.msra.mxu0 %v1014_v53  ;;  %2057 = vmatpush2.msra.mxu1 %v1048_v54  ;;  %v861_v53 = vld [vmem:[%s4946_s13 + $0x1318] sm:$0xff] }
  0xa1   : > { %1507 = vmatmul.mubr.f32.gmra.mxu0 %v649_v55  ;;  %1732 = vmatmul.mubr.f32.gmra.mxu1 %v651_v56  ;;  %v881_v54 = vld [vmem:[%s4946_s13 + $0x13b8] sm:$0xff]  ;;  %v883_v55 = vld [vmem:[%s4946_s13 + $0x13c8] sm:$0xff] }
  0xa2   : > { %1511 = vmatprep.mubr.f32.mxu0 %v671_v57  ;;  %1736 = vmatprep.mubr.f32.mxu1 %v673_v58  ;;  %v1003_v56 = vld [vmem:[%s7544_s1 + $0x288] sm:$0xff]  ;;  %v1037_v57 = vld [vmem:[%s7544_s1 + $0x398] sm:$0xff]  ;;  %v880_v58 = vld [vmem:[%s4946_s13 + $0x13b0] sm:$0xff] }
  0xa3   : > { %1837 = vmatprep.subr.mxu0 %v4609_v2  ;;  %2058 = vmatprep.subr.mxu1 %v4609_v2 }
  0xa4   : > { %1838 = vmatpush2.msra.mxu0 %v1013_v59  ;;  %2059 = vmatpush2.msra.mxu1 %v1047_v60  ;;  %v882_v59 = vld [vmem:[%s4946_s13 + $0x13c0] sm:$0xff] }
  0xa5   : > { %1512 = vmatmul.mubr.f32.gmra.mxu0 %v670_v61  ;;  %1737 = vmatmul.mubr.f32.gmra.mxu1 %v672_v62  ;;  %v902_v60 = vld [vmem:[%s4946_s13 + $0x1460] sm:$0xff]  ;;  %v904_v61 = vld [vmem:[%s4946_s13 + $0x1470] sm:$0xff] }
  0xa6   : > { %1516 = vmatprep.mubr.f32.mxu0 %v692_v63  ;;  %1741 = vmatprep.mubr.f32.mxu1 %v694_v0  ;;  %v1036_v62 = vld [vmem:[%s7544_s1 + $0x390] sm:$0xff]  ;;  %v901_v63 = vld [vmem:[%s4946_s13 + $0x1458] sm:$0xff]  ;;  %v903_v0 = vld [vmem:[%s4946_s13 + $0x1468] sm:$0xff] }
  0xa7   : > { %1839 = vmatprep.subr.mxu0 %v4609_v2  ;;  %2060 = vmatprep.subr.mxu1 %v4609_v2 }
  0xa8   : > { %1840 = vmatpush2.msra.mxu0 %v1012_v1  ;;  %2061 = vmatpush2.msra.mxu1 %v1046_v3  ;;  %v1002_v1 = vld [vmem:[%s7544_s1 + $0x280] sm:$0xff]  ;;  %v1035_v3 = vld [vmem:[%s7544_s1 + $0x388] sm:$0xff] }
  0xa9   : > { %1517 = vmatmul.mubr.f32.gmra.mxu0 %v691_v4  ;;  %1742 = vmatmul.mubr.f32.gmra.mxu1 %v693_v5  ;;  %v255_v4 = vld [vmem:[%s4946_s13 + $0x28] sm:$0xff]  ;;  %v1034_v5 = vld [vmem:[%s7544_s1 + $0x380] sm:$0xff] }
  0xaa   : > { %1521 = vmatprep.mubr.f32.mxu0 %v713_v6  ;;  %1746 = vmatprep.mubr.f32.mxu1 %v715_v7  ;;  %v257_v6 = vld [vmem:[%s4946_s13 + $0x38] sm:$0xff]  ;;  %v254_v7 = vld [vmem:[%s4946_s13 + $0x20] sm:$0xff] }
  0xab   : > { %1841 = vmatprep.subr.mxu0 %v4609_v2  ;;  %2062 = vmatprep.subr.mxu1 %v4609_v2 }
  0xac   : > { %1842 = vmatpush2.msra.mxu0 %v1011_v8  ;;  %2063 = vmatpush2.msra.mxu1 %v1045_v9  ;;  %v256_v8 = vld [vmem:[%s4946_s13 + $0x30] sm:$0xff] }
  0xad   : > { %1522 = vmatmul.mubr.f32.gmra.mxu0 %v712_v10  ;;  %1747 = vmatmul.mubr.f32.gmra.mxu1 %v714_v11  ;;  %v276_v9 = vld [vmem:[%s4946_s13 + $0xd0] sm:$0xff]  ;;  %v1065_v10 = vld [vmem:[%s7544_s1 + $0x478] sm:$0xff]  ;;  %v278_v11 = vld [vmem:[%s4946_s13 + $0xe0] sm:$0xff] }
  0xae   : > { %1526 = vmatprep.mubr.f32.mxu0 %v734_v12  ;;  %1751 = vmatprep.mubr.f32.mxu1 %v736_v13  ;;  %v275_v12 = vld [vmem:[%s4946_s13 + $0xc8] sm:$0xff]  ;;  %v277_v13 = vld [vmem:[%s4946_s13 + $0xd8] sm:$0xff] }
  0xaf   : > { %1843 = vmatprep.subr.mxu0 %v4609_v2  ;;  %2064 = vmatprep.subr.mxu1 %v4609_v2 }
  0xb0   : > { %1844 = vmatpush2.msra.mxu0 %v1010_v14  ;;  %2065 = vmatpush2.msra.mxu1 %v1044_v15  ;;  %v1064_v14 = vld [vmem:[%s7544_s1 + $0x470] sm:$0xff]  ;;  %v297_v15 = vld [vmem:[%s4946_s13 + $0x178] sm:$0xff] }
  0xb1   : > { %1527 = vmatmul.mubr.f32.gmra.mxu0 %v733_v16  ;;  %1752 = vmatmul.mubr.f32.gmra.mxu1 %v735_v17  ;;  %v299_v16 = vld [vmem:[%s4946_s13 + $0x188] sm:$0xff] }
  0xb2   : > { %1531 = vmatprep.mubr.f32.mxu0 %v755_v18  ;;  %1756 = vmatprep.mubr.f32.mxu1 %v757_v19  ;;  %v1063_v17 = vld [vmem:[%s7544_s1 + $0x468] sm:$0xff]  ;;  %v1097_v18 = vld [vmem:[%s7544_s1 + $0x578] sm:$0xff]  ;;  %v296_v19 = vld [vmem:[%s4946_s13 + $0x170] sm:$0xff] }
  0xb3   : > { %1845 = vmatprep.subr.mxu0 %v4609_v2  ;;  %2066 = vmatprep.subr.mxu1 %v4609_v2 }
  0xb4   : > { %1846 = vmatpush2.msra.mxu0 %v1009_v20  ;;  %2067 = vmatpush2.msra.mxu1 %v1043_v21  ;;  %v298_v20 = vld [vmem:[%s4946_s13 + $0x180] sm:$0xff] }
  0xb5   : > { %1532 = vmatmul.mubr.f32.gmra.mxu0 %v754_v22  ;;  %1757 = vmatmul.mubr.f32.gmra.mxu1 %v756_v23  ;;  %v318_v21 = vld [vmem:[%s4946_s13 + $0x220] sm:$0xff]  ;;  %v320_v22 = vld [vmem:[%s4946_s13 + $0x230] sm:$0xff] }
  0xb6   : > { %1536 = vmatprep.mubr.f32.mxu0 %v776_v24  ;;  %1761 = vmatprep.mubr.f32.mxu1 %v778_v25  ;;  %v1062_v23 = vld [vmem:[%s7544_s1 + $0x460] sm:$0xff]  ;;  %v1096_v24 = vld [vmem:[%s7544_s1 + $0x570] sm:$0xff]  ;;  %v317_v25 = vld [vmem:[%s4946_s13 + $0x218] sm:$0xff] }
  0xb7   : > { %1847 = vmatprep.subr.mxu0 %v4609_v2  ;;  %2068 = vmatprep.subr.mxu1 %v4609_v2 }
  0xb8   : > { %1848 = vmatpush2.msra.mxu0 %v1008_v26  ;;  %2069 = vmatpush2.msra.mxu1 %v1042_v27  ;;  %v319_v26 = vld [vmem:[%s4946_s13 + $0x228] sm:$0xff] }
  0xb9   : > { %1537 = vmatmul.mubr.f32.gmra.mxu0 %v775_v28  ;;  %1762 = vmatmul.mubr.f32.gmra.mxu1 %v777_v29  ;;  %v339_v27 = vld [vmem:[%s4946_s13 + $0x2c8] sm:$0xff]  ;;  %v341_v28 = vld [vmem:[%s4946_s13 + $0x2d8] sm:$0xff] }
  0xba   : > { %1541 = vmatprep.mubr.f32.mxu0 %v797_v30  ;;  %1766 = vmatprep.mubr.f32.mxu1 %v799_v31  ;;  %v1061_v29 = vld [vmem:[%s7544_s1 + $0x458] sm:$0xff]  ;;  %v1095_v30 = vld [vmem:[%s7544_s1 + $0x568] sm:$0xff]  ;;  %v338_v31 = vld [vmem:[%s4946_s13 + $0x2c0] sm:$0xff] }
  0xbb   : > { %1849 = vmatprep.subr.mxu0 %v4609_v2  ;;  %2070 = vmatprep.subr.mxu1 %v4609_v2 }
  0xbc   : > { %1850 = vmatpush2.msra.mxu0 %v1007_v32  ;;  %2071 = vmatpush2.msra.mxu1 %v1041_v33  ;;  %v340_v32 = vld [vmem:[%s4946_s13 + $0x2d0] sm:$0xff] }
  0xbd   : > { %1542 = vmatmul.mubr.f32.gmra.mxu0 %v796_v34  ;;  %1767 = vmatmul.mubr.f32.gmra.mxu1 %v798_v35  ;;  %v360_v33 = vld [vmem:[%s4946_s13 + $0x370] sm:$0xff]  ;;  %v362_v34 = vld [vmem:[%s4946_s13 + $0x380] sm:$0xff] }
  0xbe   : > { %1546 = vmatprep.mubr.f32.mxu0 %v818_v36  ;;  %1771 = vmatprep.mubr.f32.mxu1 %v820_v37  ;;  %v1060_v35 = vld [vmem:[%s7544_s1 + $0x450] sm:$0xff]  ;;  %v1094_v36 = vld [vmem:[%s7544_s1 + $0x560] sm:$0xff]  ;;  %v359_v37 = vld [vmem:[%s4946_s13 + $0x368] sm:$0xff] }
  0xbf   : > { %1851 = vmatprep.subr.mxu0 %v4609_v2  ;;  %2072 = vmatprep.subr.mxu1 %v4609_v2 }
  0xc0   : > { %1852 = vmatpush2.msra.mxu0 %v1006_v38  ;;  %2073 = vmatpush2.msra.mxu1 %v1040_v39  ;;  %v361_v38 = vld [vmem:[%s4946_s13 + $0x378] sm:$0xff] }
  0xc1   : > { %1547 = vmatmul.mubr.f32.gmra.mxu0 %v817_v40  ;;  %1772 = vmatmul.mubr.f32.gmra.mxu1 %v819_v41  ;;  %v381_v39 = vld [vmem:[%s4946_s13 + $0x418] sm:$0xff]  ;;  %v383_v40 = vld [vmem:[%s4946_s13 + $0x428] sm:$0xff] }
  0xc2   : > { %1551 = vmatprep.mubr.f32.mxu0 %v839_v42  ;;  %1776 = vmatprep.mubr.f32.mxu1 %v841_v43  ;;  %v1059_v41 = vld [vmem:[%s7544_s1 + $0x448] sm:$0xff]  ;;  %v1093_v42 = vld [vmem:[%s7544_s1 + $0x558] sm:$0xff]  ;;  %v380_v43 = vld [vmem:[%s4946_s13 + $0x410] sm:$0xff] }
  0xc3   : > { %1853 = vmatprep.subr.mxu0 %v4609_v2  ;;  %2074 = vmatprep.subr.mxu1 %v4609_v2 }
  0xc4   : > { %1854 = vmatpush2.msra.mxu0 %v1005_v44  ;;  %2075 = vmatpush2.msra.mxu1 %v1039_v45  ;;  %v382_v44 = vld [vmem:[%s4946_s13 + $0x420] sm:$0xff] }
  0xc5   : > { %1552 = vmatmul.mubr.f32.gmra.mxu0 %v838_v46  ;;  %1777 = vmatmul.mubr.f32.gmra.mxu1 %v840_v47  ;;  %v402_v45 = vld [vmem:[%s4946_s13 + $0x4c0] sm:$0xff]  ;;  %v404_v46 = vld [vmem:[%s4946_s13 + $0x4d0] sm:$0xff] }
  0xc6   : > { %1556 = vmatprep.mubr.f32.mxu0 %v860_v48  ;;  %1781 = vmatprep.mubr.f32.mxu1 %v862_v49  ;;  %v1058_v47 = vld [vmem:[%s7544_s1 + $0x440] sm:$0xff]  ;;  %v1092_v48 = vld [vmem:[%s7544_s1 + $0x550] sm:$0xff]  ;;  %v401_v49 = vld [vmem:[%s4946_s13 + $0x4b8] sm:$0xff] }
  0xc7   : > { %1855 = vmatprep.subr.mxu0 %v4609_v2  ;;  %2076 = vmatprep.subr.mxu1 %v4609_v2 }
  0xc8   : > { %1856 = vmatpush2.msra.mxu0 %v1004_v50  ;;  %2077 = vmatpush2.msra.mxu1 %v1038_v51  ;;  %v403_v50 = vld [vmem:[%s4946_s13 + $0x4c8] sm:$0xff] }
  0xc9   : > { %1557 = vmatmul.mubr.f32.gmra.mxu0 %v859_v52  ;;  %1782 = vmatmul.mubr.f32.gmra.mxu1 %v861_v53  ;;  %v423_v51 = vld [vmem:[%s4946_s13 + $0x568] sm:$0xff]  ;;  %v425_v52 = vld [vmem:[%s4946_s13 + $0x578] sm:$0xff] }
  0xca   : > { %1561 = vmatprep.mubr.f32.mxu0 %v881_v54  ;;  %1786 = vmatprep.mubr.f32.mxu1 %v883_v55  ;;  %v1057_v53 = vld [vmem:[%s7544_s1 + $0x438] sm:$0xff]  ;;  %v1091_v54 = vld [vmem:[%s7544_s1 + $0x548] sm:$0xff]  ;;  %v422_v55 = vld [vmem:[%s4946_s13 + $0x560] sm:$0xff] }
  0xcb   : > { %1857 = vmatprep.subr.mxu0 %v4609_v2  ;;  %2078 = vmatprep.subr.mxu1 %v4609_v2 }
  0xcc   : > { %1858 = vmatpush2.msra.mxu0 %v1003_v56  ;;  %2079 = vmatpush2.msra.mxu1 %v1037_v57  ;;  %v424_v56 = vld [vmem:[%s4946_s13 + $0x570] sm:$0xff] }
  0xcd   : > { %1562 = vmatmul.mubr.f32.gmra.mxu0 %v880_v58  ;;  %1787 = vmatmul.mubr.f32.gmra.mxu1 %v882_v59  ;;  %v444_v57 = vld [vmem:[%s4946_s13 + $0x610] sm:$0xff]  ;;  %v446_v58 = vld [vmem:[%s4946_s13 + $0x620] sm:$0xff] }
  0xce   : > { %2080 = vmatprep.subr.mxu1 %v4609_v2  ;;  %1566 = vmatprep.mubr.f32.mxu0 %v902_v60  ;;  %v1056_v59 = vld [vmem:[%s7544_s1 + $0x430] sm:$0xff]  ;;  %v1090_v60 = vld [vmem:[%s7544_s1 + $0x540] sm:$0xff] }
  0xcf   : > { %1791 = vmatprep.mubr.f32.mxu1 %v904_v61  ;;  %2081 = vmatpush2.msra.mxu1 %v1036_v62  ;;  %v443_v61 = vld [vmem:[%s4946_s13 + $0x608] sm:$0xff]  ;;  %v445_v62 = vld [vmem:[%s4946_s13 + $0x618] sm:$0xff] }
  0xd0   : > { %1859 = vmatprep.subr.mxu0 %v4609_v2  ;;  %2082 = vmatprep.subr.mxu1 %v4609_v2 }
  0xd1   : > { %1567 = vmatmul.mubr.f32.gmra.mxu0 %v901_v63  ;;  %1792 = vmatmul.mubr.f32.gmra.mxu1 %v903_v0  ;;  %v465_v63 = vld [vmem:[%s4946_s13 + $0x6b8] sm:$0xff]  ;;  %v467_v0 = vld [vmem:[%s4946_s13 + $0x6c8] sm:$0xff] }
  0xd2   : > { %1860 = vmatpush2.msra.mxu0 %v1002_v1  ;;  %2083 = vmatpush2.msra.mxu1 %v1035_v3  ;;  %v1055_v1 = vld [vmem:[%s7544_s1 + $0x428] sm:$0xff]  ;;  %v1089_v3 = vld [vmem:[%s7544_s1 + $0x538] sm:$0xff] }
  0xd3   : > { %2084 = vmatprep.subr.mxu1 %v4609_v2  ;;  %1861 = vmatprep.mubr.f32.mxu0 %v255_v4  ;;  %v464_v4 = vld [vmem:[%s4946_s13 + $0x6b0] sm:$0xff] }
  0xd4   : > { %2085 = vmatpush2.msra.mxu1 %v1034_v5  ;;  %2086 = vmatprep.mubr.f32.mxu1 %v257_v6  ;;  %v466_v5 = vld [vmem:[%s4946_s13 + $0x6c0] sm:$0xff] }
  0xd5   : > { %1862 = vmatmul.mubr.f32.vlgmr.msra.gmra.mxu0 %v254_v7  ;;  %2087 = vmatmul.mubr.f32.vlgmr.msra.gmra.mxu1 %v256_v8  ;;  %v486_v6 = vld [vmem:[%s4946_s13 + $0x760] sm:$0xff]  ;;  %v488_v7 = vld [vmem:[%s4946_s13 + $0x770] sm:$0xff] }
  0xd6   : > { %2247 = vmatprep.subr.mxu0 %v4609_v2  ;;  %1866 = vmatprep.mubr.f32.mxu0 %v276_v9  ;;  %v1054_v8 = vld [vmem:[%s7544_s1 + $0x420] sm:$0xff]  ;;  %v1088_v9 = vld [vmem:[%s7544_s1 + $0x530] sm:$0xff] }
  0xd7   : > { %2248 = vmatpush1.msra.mxu0 %v1065_v10  ;;  %2091 = vmatprep.mubr.f32.mxu1 %v278_v11  ;;  %v485_v10 = vld [vmem:[%s4946_s13 + $0x758] sm:$0xff]  ;;  %v487_v11 = vld [vmem:[%s4946_s13 + $0x768] sm:$0xff] }
  0xd8   : > { %2249 = vmatprep.subr.mxu0 %v4609_v2  ;;  %2472 = vmatprep.subr.mxu1 %v4609_v2 }
  0xd9   : > { %1867 = vmatmul.mubr.f32.gmra.mxu0 %v275_v12  ;;  %2092 = vmatmul.mubr.f32.gmra.mxu1 %v277_v13  ;;  %v507_v12 = vld [vmem:[%s4946_s13 + $0x808] sm:$0xff]  ;;  %v509_v13 = vld [vmem:[%s4946_s13 + $0x818] sm:$0xff] }
  0xda   : > { %2250 = vmatpush1.msra.mxu0 %v1064_v14  ;;  %1871 = vmatprep.mubr.f32.mxu0 %v297_v15  ;;  %v1053_v14 = vld [vmem:[%s7544_s1 + $0x418] sm:$0xff]  ;;  %v1087_v15 = vld [vmem:[%s7544_s1 + $0x528] sm:$0xff] }
  0xdb   : > { %2096 = vmatprep.mubr.f32.mxu1 %v299_v16  ;;  %2251 = vmatprep.subr.mxu0 %v4609_v2  ;;  %v506_v16 = vld [vmem:[%s4946_s13 + $0x800] sm:$0xff] }
  0xdc   : > { %2252 = vmatpush1.msra.mxu0 %v1063_v17  ;;  %2473 = vmatpush1.msra.mxu1 %v1097_v18  ;;  %v508_v17 = vld [vmem:[%s4946_s13 + $0x810] sm:$0xff] }
  0xdd   : > { %1872 = vmatmul.mubr.f32.gmra.mxu0 %v296_v19  ;;  %2097 = vmatmul.mubr.f32.gmra.mxu1 %v298_v20  ;;  %v528_v18 = vld [vmem:[%s4946_s13 + $0x8b0] sm:$0xff]  ;;  %v530_v19 = vld [vmem:[%s4946_s13 + $0x8c0] sm:$0xff] }
  0xde   : > { %1876 = vmatprep.mubr.f32.mxu0 %v318_v21  ;;  %2101 = vmatprep.mubr.f32.mxu1 %v320_v22  ;;  %v1052_v20 = vld [vmem:[%s7544_s1 + $0x410] sm:$0xff]  ;;  %v1086_v21 = vld [vmem:[%s7544_s1 + $0x520] sm:$0xff]  ;;  %v527_v22 = vld [vmem:[%s4946_s13 + $0x8a8] sm:$0xff] }
  0xdf   : > { %2253 = vmatprep.subr.mxu0 %v4609_v2  ;;  %2474 = vmatprep.subr.mxu1 %v4609_v2 }
  0xe0   : > { %2254 = vmatpush1.msra.mxu0 %v1062_v23  ;;  %2475 = vmatpush1.msra.mxu1 %v1096_v24  ;;  %v529_v23 = vld [vmem:[%s4946_s13 + $0x8b8] sm:$0xff] }
  0xe1   : > { %1877 = vmatmul.mubr.f32.gmra.mxu0 %v317_v25  ;;  %2102 = vmatmul.mubr.f32.gmra.mxu1 %v319_v26  ;;  %v549_v24 = vld [vmem:[%s4946_s13 + $0x958] sm:$0xff]  ;;  %v551_v25 = vld [vmem:[%s4946_s13 + $0x968] sm:$0xff] }
  0xe2   : > { %1881 = vmatprep.mubr.f32.mxu0 %v339_v27  ;;  %2106 = vmatprep.mubr.f32.mxu1 %v341_v28  ;;  %v1051_v26 = vld [vmem:[%s7544_s1 + $0x408] sm:$0xff]  ;;  %v1085_v27 = vld [vmem:[%s7544_s1 + $0x518] sm:$0xff]  ;;  %v548_v28 = vld [vmem:[%s4946_s13 + $0x950] sm:$0xff] }
  0xe3   : > { %2255 = vmatprep.subr.mxu0 %v4609_v2  ;;  %2476 = vmatprep.subr.mxu1 %v4609_v2 }
  0xe4   : > { %2256 = vmatpush1.msra.mxu0 %v1061_v29  ;;  %2477 = vmatpush1.msra.mxu1 %v1095_v30  ;;  %v550_v29 = vld [vmem:[%s4946_s13 + $0x960] sm:$0xff] }
  0xe5   : > { %1882 = vmatmul.mubr.f32.gmra.mxu0 %v338_v31  ;;  %2107 = vmatmul.mubr.f32.gmra.mxu1 %v340_v32  ;;  %v570_v30 = vld [vmem:[%s4946_s13 + $0xa00] sm:$0xff]  ;;  %v572_v31 = vld [vmem:[%s4946_s13 + $0xa10] sm:$0xff] }
  0xe6   : > { %1886 = vmatprep.mubr.f32.mxu0 %v360_v33  ;;  %2111 = vmatprep.mubr.f32.mxu1 %v362_v34  ;;  %v1050_v32 = vld [vmem:[%s7544_s1 + $0x400] sm:$0xff]  ;;  %v1084_v33 = vld [vmem:[%s7544_s1 + $0x510] sm:$0xff]  ;;  %v569_v34 = vld [vmem:[%s4946_s13 + $0x9f8] sm:$0xff] }
  0xe7   : > { %2257 = vmatprep.subr.mxu0 %v4609_v2  ;;  %2478 = vmatprep.subr.mxu1 %v4609_v2 }
  0xe8   : > { %2258 = vmatpush1.msra.mxu0 %v1060_v35  ;;  %2479 = vmatpush1.msra.mxu1 %v1094_v36  ;;  %v571_v35 = vld [vmem:[%s4946_s13 + $0xa08] sm:$0xff] }
  0xe9   : > { %1887 = vmatmul.mubr.f32.gmra.mxu0 %v359_v37  ;;  %2112 = vmatmul.mubr.f32.gmra.mxu1 %v361_v38  ;;  %v591_v36 = vld [vmem:[%s4946_s13 + $0xaa8] sm:$0xff]  ;;  %v593_v37 = vld [vmem:[%s4946_s13 + $0xab8] sm:$0xff] }
  0xea   : > { %1891 = vmatprep.mubr.f32.mxu0 %v381_v39  ;;  %2116 = vmatprep.mubr.f32.mxu1 %v383_v40  ;;  %v1081_v38 = vld [vmem:[%s7544_s1 + $0x4f8] sm:$0xff]  ;;  %v1083_v39 = vld [vmem:[%s7544_s1 + $0x508] sm:$0xff]  ;;  %v590_v40 = vld [vmem:[%s4946_s13 + $0xaa0] sm:$0xff] }
  0xeb   : > { %2259 = vmatprep.subr.mxu0 %v4609_v2  ;;  %2480 = vmatprep.subr.mxu1 %v4609_v2 }
  0xec   : > { %2260 = vmatpush1.msra.mxu0 %v1059_v41  ;;  %2481 = vmatpush1.msra.mxu1 %v1093_v42  ;;  %v592_v41 = vld [vmem:[%s4946_s13 + $0xab0] sm:$0xff] }
  0xed   : > { %1892 = vmatmul.mubr.f32.gmra.mxu0 %v380_v43  ;;  %2117 = vmatmul.mubr.f32.gmra.mxu1 %v382_v44  ;;  %v612_v42 = vld [vmem:[%s4946_s13 + $0xb50] sm:$0xff]  ;;  %v614_v43 = vld [vmem:[%s4946_s13 + $0xb60] sm:$0xff] }
  0xee   : > { %1896 = vmatprep.mubr.f32.mxu0 %v402_v45  ;;  %2121 = vmatprep.mubr.f32.mxu1 %v404_v46  ;;  %v1080_v46 = vld [vmem:[%s7544_s1 + $0x4f0] sm:$0xff] }
  0xef   : > { %2261 = vmatprep.subr.mxu0 %v4609_v2  ;;  %2482 = vmatprep.subr.mxu1 %v4609_v2 }
  0xf0   : > { %2262 = vmatpush1.msra.mxu0 %v1058_v47  ;;  %2483 = vmatpush1.msra.mxu1 %v1092_v48  ;;  %v1082_v47 = vld [vmem:[%s7544_s1 + $0x500] sm:$0xff] }
  0xf1   : > { %1897 = vmatmul.mubr.f32.gmra.mxu0 %v401_v49  ;;  %2122 = vmatmul.mubr.f32.gmra.mxu1 %v403_v50  ;;  %v611_v49 = vld [vmem:[%s4946_s13 + $0xb48] sm:$0xff]  ;;  %v613_v50 = vld [vmem:[%s4946_s13 + $0xb58] sm:$0xff] }
  0xf2   : > { %1901 = vmatprep.mubr.f32.mxu0 %v423_v51  ;;  %2126 = vmatprep.mubr.f32.mxu1 %v425_v52 }
  0xf3   : > { %2263 = vmatprep.subr.mxu0 %v4609_v2  ;;  %2484 = vmatprep.subr.mxu1 %v4609_v2 }
  0xf4   : > { %2264 = vmatpush1.msra.mxu0 %v1057_v53  ;;  %2485 = vmatpush1.msra.mxu1 %v1091_v54  ;;  %v633_v53 = vld [vmem:[%s4946_s13 + $0xbf8] sm:$0xff]  ;;  %v635_v54 = vld [vmem:[%s4946_s13 + $0xc08] sm:$0xff] }
  0xf5   : > { %1902 = vmatmul.mubr.f32.gmra.mxu0 %v422_v55  ;;  %2127 = vmatmul.mubr.f32.gmra.mxu1 %v424_v56 }
  0xf6   : > { %1906 = vmatprep.mubr.f32.mxu0 %v444_v57  ;;  %2131 = vmatprep.mubr.f32.mxu1 %v446_v58  ;;  %v1079_v57 = vld [vmem:[%s7544_s1 + $0x4e8] sm:$0xff]  ;;  %v1113_v58 = vld [vmem:[%s7544_s1 + $0x5f8] sm:$0xff] }
  0xf7   : > { %2265 = vmatprep.subr.mxu0 %v4609_v2  ;;  %2486 = vmatprep.subr.mxu1 %v4609_v2 }
  0xf8   : > { %2266 = vmatpush1.msra.mxu0 %v1056_v59  ;;  %2487 = vmatpush1.msra.mxu1 %v1090_v60  ;;  %v632_v60 = vld [vmem:[%s4946_s13 + $0xbf0] sm:$0xff] }
  0xf9   : > { %1907 = vmatmul.mubr.f32.gmra.mxu0 %v443_v61  ;;  %2132 = vmatmul.mubr.f32.gmra.mxu1 %v445_v62  ;;  %v634_v61 = vld [vmem:[%s4946_s13 + $0xc00] sm:$0xff] }
  0xfa   : > { %1911 = vmatprep.mubr.f32.mxu0 %v465_v63  ;;  %2136 = vmatprep.mubr.f32.mxu1 %v467_v0  ;;  %v654_v0 = vld [vmem:[%s4946_s13 + $0xca0] sm:$0xff] }
  0xfb   : > { %2267 = vmatprep.subr.mxu0 %v4609_v2  ;;  %2488 = vmatprep.subr.mxu1 %v4609_v2 }
  0xfc   : > { %2268 = vmatpush1.msra.mxu0 %v1055_v1  ;;  %2489 = vmatpush1.msra.mxu1 %v1089_v3  ;;  %v656_v1 = vld [vmem:[%s4946_s13 + $0xcb0] sm:$0xff] }
  0xfd   : > { %1912 = vmatmul.mubr.f32.gmra.mxu0 %v464_v4  ;;  %2137 = vmatmul.mubr.f32.gmra.mxu1 %v466_v5  ;;  %v1078_v5 = vld [vmem:[%s7544_s1 + $0x4e0] sm:$0xff] }
  0xfe   : > { %1916 = vmatprep.mubr.f32.mxu0 %v486_v6  ;;  %2141 = vmatprep.mubr.f32.mxu1 %v488_v7  ;;  %v1112_v6 = vld [vmem:[%s7544_s1 + $0x5f0] sm:$0xff] }
  0xff   : > { %2269 = vmatprep.subr.mxu0 %v4609_v2  ;;  %2490 = vmatprep.subr.mxu1 %v4609_v2 }
 0x100   : > { %2270 = vmatpush1.msra.mxu0 %v1054_v8  ;;  %2491 = vmatpush1.msra.mxu1 %v1088_v9  ;;  %v653_v8 = vld [vmem:[%s4946_s13 + $0xc98] sm:$0xff]  ;;  %v655_v9 = vld [vmem:[%s4946_s13 + $0xca8] sm:$0xff] }
 0x101   : > { %1917 = vmatmul.mubr.f32.gmra.mxu0 %v485_v10  ;;  %2142 = vmatmul.mubr.f32.gmra.mxu1 %v487_v11 }
 0x102   : > { %1921 = vmatprep.mubr.f32.mxu0 %v507_v12  ;;  %2146 = vmatprep.mubr.f32.mxu1 %v509_v13  ;;  %v675_v12 = vld [vmem:[%s4946_s13 + $0xd48] sm:$0xff]  ;;  %v677_v13 = vld [vmem:[%s4946_s13 + $0xd58] sm:$0xff] }
 0x103   : > { %2271 = vmatprep.subr.mxu0 %v4609_v2  ;;  %2492 = vmatprep.subr.mxu1 %v4609_v2 }
 0x104   : > { %2272 = vmatpush1.msra.mxu0 %v1053_v14  ;;  %2493 = vmatpush1.msra.mxu1 %v1087_v15 }
 0x105   : > { %1922 = vmatmul.mubr.f32.gmra.mxu0 %v506_v16  ;;  %2147 = vmatmul.mubr.f32.gmra.mxu1 %v508_v17  ;;  %v1077_v16 = vld [vmem:[%s7544_s1 + $0x4d8] sm:$0xff]  ;;  %v1111_v17 = vld [vmem:[%s7544_s1 + $0x5e8] sm:$0xff] }
 0x106   : > { %1926 = vmatprep.mubr.f32.mxu0 %v528_v18  ;;  %2151 = vmatprep.mubr.f32.mxu1 %v530_v19  ;;  %v674_v19 = vld [vmem:[%s4946_s13 + $0xd40] sm:$0xff] }
 0x107   : > { %2273 = vmatprep.subr.mxu0 %v4609_v2  ;;  %2494 = vmatprep.subr.mxu1 %v4609_v2 }
 0x108   : > { %2274 = vmatpush1.msra.mxu0 %v1052_v20  ;;  %2495 = vmatpush1.msra.mxu1 %v1086_v21  ;;  %v676_v20 = vld [vmem:[%s4946_s13 + $0xd50] sm:$0xff] }
 0x109   : > { %1927 = vmatmul.mubr.f32.gmra.mxu0 %v527_v22  ;;  %2152 = vmatmul.mubr.f32.gmra.mxu1 %v529_v23  ;;  %v696_v23 = vld [vmem:[%s4946_s13 + $0xdf0] sm:$0xff] }
 0x10a   : > { %1931 = vmatprep.mubr.f32.mxu0 %v549_v24  ;;  %2156 = vmatprep.mubr.f32.mxu1 %v551_v25  ;;  %v698_v24 = vld [vmem:[%s4946_s13 + $0xe00] sm:$0xff] }
 0x10b   : > { %2275 = vmatprep.subr.mxu0 %v4609_v2  ;;  %2496 = vmatprep.subr.mxu1 %v4609_v2 }
 0x10c   : > { %2276 = vmatpush1.msra.mxu0 %v1051_v26  ;;  %2497 = vmatpush1.msra.mxu1 %v1085_v27  ;;  %v1076_v27 = vld [vmem:[%s7544_s1 + $0x4d0] sm:$0xff] }
 0x10d   : > { %1932 = vmatmul.mubr.f32.gmra.mxu0 %v548_v28  ;;  %2157 = vmatmul.mubr.f32.gmra.mxu1 %v550_v29  ;;  %v1110_v28 = vld [vmem:[%s7544_s1 + $0x5e0] sm:$0xff] }
 0x10e   : > { %1936 = vmatprep.mubr.f32.mxu0 %v570_v30  ;;  %2161 = vmatprep.mubr.f32.mxu1 %v572_v31  ;;  %v695_v30 = vld [vmem:[%s4946_s13 + $0xde8] sm:$0xff]  ;;  %v697_v31 = vld [vmem:[%s4946_s13 + $0xdf8] sm:$0xff] }
 0x10f   : > { %2277 = vmatprep.subr.mxu0 %v4609_v2  ;;  %2498 = vmatprep.subr.mxu1 %v4609_v2 }
 0x110   : > { %2278 = vmatpush1.msra.mxu0 %v1050_v32  ;;  %2499 = vmatpush1.msra.mxu1 %v1084_v33 }
 0x111   : > { %1937 = vmatmul.mubr.f32.gmra.mxu0 %v569_v34  ;;  %2162 = vmatmul.mubr.f32.gmra.mxu1 %v571_v35  ;;  %v717_v34 = vld [vmem:[%s4946_s13 + $0xe98] sm:$0xff]  ;;  %v719_v35 = vld [vmem:[%s4946_s13 + $0xea8] sm:$0xff] }
 0x112   : > { %1941 = vmatprep.mubr.f32.mxu0 %v591_v36  ;;  %2166 = vmatprep.mubr.f32.mxu1 %v593_v37 }
 0x113   : > { %2279 = vmatprep.subr.mxu0 %v4609_v2  ;;  %2500 = vmatprep.subr.mxu1 %v4609_v2 }
 0x114   : > { %2280 = vmatpush2.msra.mxu0 %v1081_v38  ;;  %2501 = vmatpush1.msra.mxu1 %v1083_v39  ;;  %v1075_v38 = vld [vmem:[%s7544_s1 + $0x4c8] sm:$0xff]  ;;  %v1109_v39 = vld [vmem:[%s7544_s1 + $0x5d8] sm:$0xff] }
 0x115   : > { %v1413_v44 = vpop.f32.mrf.mxu0  ;;  %v1638_v45 = vpop.f32.mrf.mxu1  ;;  %1942 = vmatmul.mubr.f32.gmra.mxu0 %v590_v40  ;;  %2167 = vmatmul.mubr.f32.gmra.mxu1 %v592_v41  ;;  %v716_v41 = vld [vmem:[%s4946_s13 + $0xe90] sm:$0xff] }
 0x116   : > { %v5554_v48 = vadd.f32 %v1638_v45, %v1413_v44  ;;  %1946 = vmatprep.mubr.f32.mxu0 %v612_v42  ;;  %2171 = vmatprep.mubr.f32.mxu1 %v614_v43  ;;  %v718_v42 = vld [vmem:[%s4946_s13 + $0xea0] sm:$0xff] }
 0x117   : > { %v1415_v51 = vpop.f32.mrf.mxu0  ;;  %v1640_v52 = vpop.f32.mrf.mxu1  ;;  %2281 = vmatprep.subr.mxu0 %v4609_v2  ;;  %2502 = vmatprep.subr.mxu1 %v4609_v2  ;;  %v738_v45 = vld [vmem:[%s4946_s13 + $0xf40] sm:$0xff] }
 0x118   : > { %2282 = vmatpush2.msra.mxu0 %v1080_v46  ;;  %2503 = vmatpush1.msra.mxu1 %v1082_v47  ;;  %v740_v46 = vld [vmem:[%s4946_s13 + $0xf50] sm:$0xff] }
 0x119   : > { %v1418_v55 = vpop.f32.mrf.mxu0  ;;  %v1643_v56 = vpop.f32.mrf.mxu1  ;;  %1947 = vmatmul.mubr.f32.gmra.mxu0 %v611_v49  ;;  %2172 = vmatmul.mubr.f32.gmra.mxu1 %v613_v50  ;;  %v1074_v50 = vld [vmem:[%s7544_s1 + $0x4c0] sm:$0xff]  ;;  %v1108_v51 = vld [vmem:[%s7544_s1 + $0x5d0] sm:$0xff] }
 0x11a   : > { %v5568_v59 = vadd.f32 %v1643_v56, %v1418_v55  ;;  %1951 = vmatprep.mubr.f32.mxu0 %v633_v53  ;;  %2176 = vmatprep.mubr.f32.mxu1 %v635_v54  ;;  %v737_v53 = vld [vmem:[%s4946_s13 + $0xf38] sm:$0xff]  ;;  %v739_v54 = vld [vmem:[%s4946_s13 + $0xf48] sm:$0xff] }
 0x11b   : > { %v1420_v62 = vpop.f32.mrf.mxu0  ;;  %v1645_v63 = vpop.f32.mrf.mxu1  ;;  %2283 = vmatprep.subr.mxu0 %v4609_v2  ;;  %2504 = vmatprep.subr.mxu1 %v4609_v2 }
 0x11c   : > { %2284 = vmatpush2.msra.mxu0 %v1079_v57  ;;  %2505 = vmatpush2.msra.mxu1 %v1113_v58  ;;  %v759_v57 = vld [vmem:[%s4946_s13 + $0xfe8] sm:$0xff]  ;;  %v761_v58 = vld [vmem:[%s4946_s13 + $0xff8] sm:$0xff] }
 0x11d   : > { %v1423_v3 = vpop.f32.mrf.mxu0  ;;  %v1648_v4 = vpop.f32.mrf.mxu1  ;;  %1952 = vmatmul.mubr.f32.gmra.mxu0 %v632_v60  ;;  %2177 = vmatmul.mubr.f32.gmra.mxu1 %v634_v61  ;;  %v1073_v62 = vld [vmem:[%s7544_s1 + $0x4b8] sm:$0xff]  ;;  %v1107_v63 = vld [vmem:[%s7544_s1 + $0x5c8] sm:$0xff] }
 0x11e   : > { %v5582_v7 = vadd.f32 %v1648_v4, %v1423_v3  ;;  %1956 = vmatprep.mubr.f32.mxu0 %v654_v0  ;;  %2181 = vmatprep.mubr.f32.mxu1 %v656_v1  ;;  %v758_v1 = vld [vmem:[%s4946_s13 + $0xfe0] sm:$0xff]  ;;  %v760_v3 = vld [vmem:[%s4946_s13 + $0xff0] sm:$0xff] }
 0x11f   : > { %v1425_v10 = vpop.f32.mrf.mxu0  ;;  %v1650_v11 = vpop.f32.mrf.mxu1  ;;  %2285 = vmatprep.subr.mxu0 %v4609_v2  ;;  %2506 = vmatprep.subr.mxu1 %v4609_v2 }
 0x120   : > { %2286 = vmatpush2.msra.mxu0 %v1078_v5  ;;  %2507 = vmatpush2.msra.mxu1 %v1112_v6  ;;  %v780_v6 = vld [vmem:[%s4946_s13 + $0x1090] sm:$0xff] }
 0x121   : > { %v1428_v14 = vpop.f32.mrf.mxu0  ;;  %v1653_v15 = vpop.f32.mrf.mxu1  ;;  %1957 = vmatmul.mubr.f32.gmra.mxu0 %v653_v8  ;;  %2182 = vmatmul.mubr.f32.gmra.mxu1 %v655_v9  ;;  %v782_v8 = vld [vmem:[%s4946_s13 + $0x10a0] sm:$0xff]  ;;  %v1072_v11 = vld [vmem:[%s7544_s1 + $0x4b0] sm:$0xff] }
 0x122   : > { %v5596_v18 = vadd.f32 %v1653_v15, %v1428_v14  ;;  %1961 = vmatprep.mubr.f32.mxu0 %v675_v12  ;;  %2186 = vmatprep.mubr.f32.mxu1 %v677_v13  ;;  %v1106_v12 = vld [vmem:[%s7544_s1 + $0x5c0] sm:$0xff]  ;;  %v779_v14 = vld [vmem:[%s4946_s13 + $0x1088] sm:$0xff]  ;;  %v781_v15 = vld [vmem:[%s4946_s13 + $0x1098] sm:$0xff] }
 0x123   : > { %v1430_v21 = vpop.f32.mrf.mxu0  ;;  %v1655_v22 = vpop.f32.mrf.mxu1  ;;  %2287 = vmatprep.subr.mxu0 %v4609_v2  ;;  %2508 = vmatprep.subr.mxu1 %v4609_v2 }
 0x124   : > { %2288 = vmatpush2.msra.mxu0 %v1077_v16  ;;  %2509 = vmatpush2.msra.mxu1 %v1111_v17 }
 0x125   : > { %v1433_v25 = vpop.f32.mrf.mxu0  ;;  %v1658_v26 = vpop.f32.mrf.mxu1  ;;  %1962 = vmatmul.mubr.f32.gmra.mxu0 %v674_v19  ;;  %2187 = vmatmul.mubr.f32.gmra.mxu1 %v676_v20  ;;  %v801_v19 = vld [vmem:[%s4946_s13 + $0x1138] sm:$0xff]  ;;  %v803_v20 = vld [vmem:[%s4946_s13 + $0x1148] sm:$0xff] }
 0x126   : > { %v5610_v29 = vadd.f32 %v1658_v26, %v1433_v25  ;;  %1966 = vmatprep.mubr.f32.mxu0 %v696_v23  ;;  %2191 = vmatprep.mubr.f32.mxu1 %v698_v24  ;;  %v1071_v23 = vld [vmem:[%s7544_s1 + $0x4a8] sm:$0xff]  ;;  %v1105_v24 = vld [vmem:[%s7544_s1 + $0x5b8] sm:$0xff]  ;;  %v800_v26 = vld [vmem:[%s4946_s13 + $0x1130] sm:$0xff] }
 0x127   : > { %v1435_v32 = vpop.f32.mrf.mxu0  ;;  %v1660_v33 = vpop.f32.mrf.mxu1  ;;  %2289 = vmatprep.subr.mxu0 %v4609_v2  ;;  %2510 = vmatprep.subr.mxu1 %v4609_v2 }
 0x128   : > { %2290 = vmatpush2.msra.mxu0 %v1076_v27  ;;  %2511 = vmatpush2.msra.mxu1 %v1110_v28  ;;  %v802_v27 = vld [vmem:[%s4946_s13 + $0x1140] sm:$0xff]  ;;  %v824_v32 = vld [vmem:[%s4946_s13 + $0x11f0] sm:$0xff] }
 0x129   : > { %v1438_v36 = vpop.f32.mrf.mxu0  ;;  %v1663_v37 = vpop.f32.mrf.mxu1  ;;  %1967 = vmatmul.mubr.f32.gmra.mxu0 %v695_v30  ;;  %2192 = vmatmul.mubr.f32.gmra.mxu1 %v697_v31  ;;  %v822_v31 = vld [vmem:[%s4946_s13 + $0x11e0] sm:$0xff] }
 0x12a   : > { %v5624_v40 = vadd.f32 %v1663_v37, %v1438_v36  ;;  %1971 = vmatprep.mubr.f32.mxu0 %v717_v34  ;;  %2196 = vmatprep.mubr.f32.mxu1 %v719_v35  ;;  %v1070_v35 = vld [vmem:[%s7544_s1 + $0x4a0] sm:$0xff]  ;;  %v1104_v36 = vld [vmem:[%s7544_s1 + $0x5b0] sm:$0xff] }
 0x12b   : > { %v1440_v43 = vpop.f32.mrf.mxu0  ;;  %v1665_v44 = vpop.f32.mrf.mxu1  ;;  %2291 = vmatprep.subr.mxu0 %v4609_v2  ;;  %2512 = vmatprep.subr.mxu1 %v4609_v2 }
 0x12c   : > { %2292 = vmatpush2.msra.mxu0 %v1075_v38  ;;  %2513 = vmatpush2.msra.mxu1 %v1109_v39  ;;  %v821_v38 = vld [vmem:[%s4946_s13 + $0x11d8] sm:$0xff]  ;;  %v823_v39 = vld [vmem:[%s4946_s13 + $0x11e8] sm:$0xff] }
 0x12d   : > { %v1443_v47 = vpop.f32.mrf.mxu0  ;;  %v1668_v49 = vpop.f32.mrf.mxu1  ;;  %1972 = vmatmul.mubr.f32.gmra.mxu0 %v716_v41  ;;  %2197 = vmatmul.mubr.f32.gmra.mxu1 %v718_v42  ;;  %v843_v43 = vld [vmem:[%s4946_s13 + $0x1288] sm:$0xff]  ;;  %v845_v44 = vld [vmem:[%s4946_s13 + $0x1298] sm:$0xff] }
 0x12e   : > { %v5638_v52 = vadd.f32 %v1668_v49, %v1443_v47  ;;  %1976 = vmatprep.mubr.f32.mxu0 %v738_v45  ;;  %2201 = vmatprep.mubr.f32.mxu1 %v740_v46  ;;  %v1069_v47 = vld [vmem:[%s7544_s1 + $0x498] sm:$0xff]  ;;  %v1103_v49 = vld [vmem:[%s7544_s1 + $0x5a8] sm:$0xff] }
 0x12f   : > { %v1445_v55 = vpop.f32.mrf.mxu0  ;;  %v1670_v56 = vpop.f32.mrf.mxu1  ;;  %2293 = vmatprep.subr.mxu0 %v4609_v2  ;;  %2514 = vmatprep.subr.mxu1 %v4609_v2 }
 0x130   : > { %2294 = vmatpush2.msra.mxu0 %v1074_v50  ;;  %2515 = vmatpush2.msra.mxu1 %v1108_v51  ;;  %v842_v51 = vld [vmem:[%s4946_s13 + $0x1280] sm:$0xff]  ;;  %v864_v56 = vld [vmem:[%s4946_s13 + $0x1330] sm:$0xff] }
 0x131   : > { %v1448_v60 = vpop.f32.mrf.mxu0  ;;  %v1673_v61 = vpop.f32.mrf.mxu1  ;;  %1977 = vmatmul.mubr.f32.gmra.mxu0 %v737_v53  ;;  %2202 = vmatmul.mubr.f32.gmra.mxu1 %v739_v54  ;;  %v844_v53 = vld [vmem:[%s4946_s13 + $0x1290] sm:$0xff] }
 0x132   : > { %v5652_v0 = vadd.f32 %v1673_v61, %v1448_v60  ;;  %1981 = vmatprep.mubr.f32.mxu0 %v759_v57  ;;  %2206 = vmatprep.mubr.f32.mxu1 %v761_v58  ;;  %v866_v57 = vld [vmem:[%s4946_s13 + $0x1340] sm:$0xff]  ;;  %v1068_v61 = vld [vmem:[%s7544_s1 + $0x490] sm:$0xff] }
 0x133   : > { %v1450_v4 = vpop.f32.mrf.mxu0  ;;  %v1675_v5 = vpop.f32.mrf.mxu1  ;;  %2295 = vmatprep.subr.mxu0 %v4609_v2  ;;  %2516 = vmatprep.subr.mxu1 %v4609_v2 }
 0x134   : > { %2296 = vmatpush2.msra.mxu0 %v1073_v62  ;;  %2517 = vmatpush2.msra.mxu1 %v1107_v63  ;;  %v1102_v62 = vld [vmem:[%s7544_s1 + $0x5a0] sm:$0xff] }
 0x135   : > { %v1453_v9 = vpop.f32.mrf.mxu0  ;;  %v1678_v10 = vpop.f32.mrf.mxu1  ;;  %1982 = vmatmul.mubr.f32.gmra.mxu0 %v758_v1  ;;  %2207 = vmatmul.mubr.f32.gmra.mxu1 %v760_v3  ;;  %v863_v1 = vld [vmem:[%s4946_s13 + $0x1328] sm:$0xff]  ;;  %v865_v3 = vld [vmem:[%s4946_s13 + $0x1338] sm:$0xff] }
 0x136   : > { %v5666_v13 = vadd.f32 %v1678_v10, %v1453_v9  ;;  %1986 = vmatprep.mubr.f32.mxu0 %v780_v6  ;;  %2211 = vmatprep.mubr.f32.mxu1 %v782_v8  ;;  %v885_v6 = vld [vmem:[%s4946_s13 + $0x13d8] sm:$0xff]  ;;  %v887_v8 = vld [vmem:[%s4946_s13 + $0x13e8] sm:$0xff] }
 0x137   : > { %v1455_v16 = vpop.f32.mrf.mxu0  ;;  %v1680_v17 = vpop.f32.mrf.mxu1  ;;  %2297 = vmatprep.subr.mxu0 %v4609_v2  ;;  %2518 = vmatprep.subr.mxu1 %v4609_v2 }
 0x138   : > { %2298 = vmatpush2.msra.mxu0 %v1072_v11  ;;  %2519 = vmatpush2.msra.mxu1 %v1106_v12  ;;  %v1067_v11 = vld [vmem:[%s7544_s1 + $0x488] sm:$0xff]  ;;  %v1101_v12 = vld [vmem:[%s7544_s1 + $0x598] sm:$0xff]  ;;  %v886_v16 = vld [vmem:[%s4946_s13 + $0x13e0] sm:$0xff] }
 0x139   : > { %v1458_v21 = vpop.f32.mrf.mxu0  ;;  %v1683_v22 = vpop.f32.mrf.mxu1  ;;  %1987 = vmatmul.mubr.f32.gmra.mxu0 %v779_v14  ;;  %2212 = vmatmul.mubr.f32.gmra.mxu1 %v781_v15  ;;  %v884_v15 = vld [vmem:[%s4946_s13 + $0x13d0] sm:$0xff] }
 0x13a   : > { %v5680_v25 = vadd.f32 %v1683_v22, %v1458_v21  ;;  %1991 = vmatprep.mubr.f32.mxu0 %v801_v19  ;;  %2216 = vmatprep.mubr.f32.mxu1 %v803_v20  ;;  %v906_v20 = vld [vmem:[%s4946_s13 + $0x1480] sm:$0xff]  ;;  %v908_v21 = vld [vmem:[%s4946_s13 + $0x1490] sm:$0xff] }
 0x13b   : > { %v1460_v28 = vpop.f32.mrf.mxu0  ;;  %v1685_v30 = vpop.f32.mrf.mxu1  ;;  %2299 = vmatprep.subr.mxu0 %v4609_v2  ;;  %2520 = vmatprep.subr.mxu1 %v4609_v2  ;;  %v1100_v22 = vld [vmem:[%s7544_s1 + $0x590] sm:$0xff] }
 0x13c   : > { %2300 = vmatpush2.msra.mxu0 %v1071_v23  ;;  %2521 = vmatpush2.msra.mxu1 %v1105_v24  ;;  %v907_v28 = vld [vmem:[%s4946_s13 + $0x1488] sm:$0xff] }
 0x13d   : > { %v1463_v33 = vpop.f32.mrf.mxu0  ;;  %v1688_v34 = vpop.f32.mrf.mxu1  ;;  %1992 = vmatmul.mubr.f32.gmra.mxu0 %v800_v26  ;;  %2217 = vmatmul.mubr.f32.gmra.mxu1 %v802_v27  ;;  %v905_v27 = vld [vmem:[%s4946_s13 + $0x1478] sm:$0xff] }
 0x13e   : > { %v5694_v37 = vadd.f32 %v1688_v34, %v1463_v33  ;;  %1996 = vmatprep.mubr.f32.mxu0 %v822_v31  ;;  %2221 = vmatprep.mubr.f32.mxu1 %v824_v32  ;;  %v1066_v32 = vld [vmem:[%s7544_s1 + $0x480] sm:$0xff]  ;;  %v1099_v33 = vld [vmem:[%s7544_s1 + $0x588] sm:$0xff] }
 0x13f   : > { %v1465_v41 = vpop.f32.mrf.mxu0  ;;  %v1690_v42 = vpop.f32.mrf.mxu1  ;;  %2301 = vmatprep.subr.mxu0 %v4609_v2  ;;  %2522 = vmatprep.subr.mxu1 %v4609_v2  ;;  %v259_v34 = vld [vmem:[%s4946_s13 + $0x48] sm:$0xff] }
 0x140   : > { %2302 = vmatpush2.msra.mxu0 %v1070_v35  ;;  %2523 = vmatpush2.msra.mxu1 %v1104_v36  ;;  %v258_v42 = vld [vmem:[%s4946_s13 + $0x40] sm:$0xff] }
 0x141   : > { %v1468_v45 = vpop.f32.mrf.mxu0  ;;  %v1693_v46 = vpop.f32.mrf.mxu1  ;;  %1997 = vmatmul.mubr.f32.gmra.mxu0 %v821_v38  ;;  %2222 = vmatmul.mubr.f32.gmra.mxu1 %v823_v39  ;;  %v1098_v38 = vld [vmem:[%s7544_s1 + $0x580] sm:$0xff]  ;;  %v261_v39 = vld [vmem:[%s4946_s13 + $0x58] sm:$0xff] }
 0x142   : > { %v5708_v50 = vadd.f32 %v1693_v46, %v1468_v45  ;;  %2001 = vmatprep.mubr.f32.mxu0 %v843_v43  ;;  %2226 = vmatprep.mubr.f32.mxu1 %v845_v44  ;;  %v260_v43 = vld [vmem:[%s4946_s13 + $0x50] sm:$0xff] }
 0x143   : > { %v1470_v54 = vpop.f32.mrf.mxu0  ;;  %v1695_v55 = vpop.f32.mrf.mxu1  ;;  %2303 = vmatprep.subr.mxu0 %v4609_v2  ;;  %2524 = vmatprep.subr.mxu1 %v4609_v2  ;;  %v280_v46 = vld [vmem:[%s4946_s13 + $0xf0] sm:$0xff] }
 0x144   : > { %2304 = vmatpush2.msra.mxu0 %v1069_v47  ;;  %2525 = vmatpush2.msra.mxu1 %v1103_v49  ;;  %v1129_v47 = vld [vmem:[%s7544_s1 + $0x678] sm:$0xff]  ;;  %v282_v49 = vld [vmem:[%s4946_s13 + $0x100] sm:$0xff]  ;;  %v279_v55 = vld [vmem:[%s4946_s13 + $0xe8] sm:$0xff] }
 0x145   : > { %v1473_v58 = vpop.f32.mrf.mxu0  ;;  %v1698_v60 = vpop.f32.mrf.mxu1  ;;  %2002 = vmatmul.mubr.f32.gmra.mxu0 %v842_v51  ;;  %2227 = vmatmul.mubr.f32.gmra.mxu1 %v844_v53 }
 0x146   : > { %v5722_v63 = vadd.f32 %v1698_v60, %v1473_v58  ;;  %2006 = vmatprep.mubr.f32.mxu0 %v864_v56  ;;  %2231 = vmatprep.mubr.f32.mxu1 %v866_v57  ;;  %v281_v56 = vld [vmem:[%s4946_s13 + $0xf8] sm:$0xff]  ;;  %v1128_v60 = vld [vmem:[%s7544_s1 + $0x670] sm:$0xff] }
 0x147   : > { %v1475_v4 = vpop.f32.mrf.mxu0  ;;  %v1700_v5 = vpop.f32.mrf.mxu1  ;;  %2305 = vmatprep.subr.mxu0 %v4609_v2  ;;  %2526 = vmatprep.subr.mxu1 %v4609_v2 }
 0x148   : > { %2306 = vmatpush2.msra.mxu0 %v1068_v61  ;;  %2527 = vmatpush2.msra.mxu1 %v1102_v62  ;;  %v301_v61 = vld [vmem:[%s4946_s13 + $0x198] sm:$0xff]  ;;  %v303_v62 = vld [vmem:[%s4946_s13 + $0x1a8] sm:$0xff] }
 0x149   : > { %v1478_v9 = vpop.f32.mrf.mxu0  ;;  %v1703_v10 = vpop.f32.mrf.mxu1  ;;  %2007 = vmatmul.mubr.f32.gmra.mxu0 %v863_v1  ;;  %2232 = vmatmul.mubr.f32.gmra.mxu1 %v865_v3  ;;  %v1127_v4 = vld [vmem:[%s7544_s1 + $0x668] sm:$0xff]  ;;  %v1161_v5 = vld [vmem:[%s7544_s1 + $0x778] sm:$0xff] }
 0x14a   : > { %v5736_v14 = vadd.f32 %v1703_v10, %v1478_v9  ;;  %2011 = vmatprep.mubr.f32.mxu0 %v885_v6  ;;  %2236 = vmatprep.mubr.f32.mxu1 %v887_v8  ;;  %v300_v8 = vld [vmem:[%s4946_s13 + $0x190] sm:$0xff]  ;;  %v302_v9 = vld [vmem:[%s4946_s13 + $0x1a0] sm:$0xff] }
 0x14b   : > { %v1480_v17 = vpop.f32.mrf.mxu0  ;;  %v1705_v19 = vpop.f32.mrf.mxu1  ;;  %2307 = vmatprep.subr.mxu0 %v4609_v2  ;;  %2528 = vmatprep.subr.mxu1 %v4609_v2 }
 0x14c   : > { %2308 = vmatpush2.msra.mxu0 %v1067_v11  ;;  %2529 = vmatpush2.msra.mxu1 %v1101_v12  ;;  %v322_v12 = vld [vmem:[%s4946_s13 + $0x240] sm:$0xff] }
 0x14d   : > { %v1483_v23 = vpop.f32.mrf.mxu0  ;;  %v1708_v24 = vpop.f32.mrf.mxu1  ;;  %2012 = vmatmul.mubr.f32.gmra.mxu0 %v884_v15  ;;  %2237 = vmatmul.mubr.f32.gmra.mxu1 %v886_v16  ;;  %v324_v15 = vld [vmem:[%s4946_s13 + $0x250] sm:$0xff]  ;;  %v1126_v19 = vld [vmem:[%s7544_s1 + $0x660] sm:$0xff] }
 0x14e   : > { %v5747_v26 = vadd.f32 %v1708_v24, %v1483_v23  ;;  %2530 = vmatprep.subr.mxu1 %v4609_v2  ;;  %2016 = vmatprep.mubr.f32.mxu0 %v906_v20  ;;  %v1160_v20 = vld [vmem:[%s7544_s1 + $0x770] sm:$0xff]  ;;  %v323_v23 = vld [vmem:[%s4946_s13 + $0x248] sm:$0xff] }
 0x14f   : > { %v1485_v30 = vpop.f32.mrf.mxu0  ;;  %v1710_v31 = vpop.f32.mrf.mxu1  ;;  %2241 = vmatprep.mubr.f32.mxu1 %v908_v21  ;;  %2531 = vmatpush2.msra.mxu1 %v1100_v22  ;;  %v321_v22 = vld [vmem:[%s4946_s13 + $0x238] sm:$0xff] }
 0x150   : > { %2309 = vmatprep.subr.mxu0 %v4609_v2  ;;  %2532 = vmatprep.subr.mxu1 %v4609_v2  ;;  %v345_v30 = vld [vmem:[%s4946_s13 + $0x2f8] sm:$0xff] }
 0x151   : > { %v1488_v35 = vpop.f32.mrf.mxu0  ;;  %v1713_v36 = vpop.f32.mrf.mxu1  ;;  %2017 = vmatmul.mubr.f32.gmra.mxu0 %v905_v27  ;;  %2242 = vmatmul.mubr.f32.gmra.mxu1 %v907_v28  ;;  %v343_v28 = vld [vmem:[%s4946_s13 + $0x2e8] sm:$0xff] }
 0x152   : > { %v5765_v41 = vadd.f32 %v1713_v36, %v1488_v35  ;;  %2310 = vmatpush2.msra.mxu0 %v1066_v32  ;;  %2533 = vmatpush2.msra.mxu1 %v1099_v33  ;;  %v1125_v33 = vld [vmem:[%s7544_s1 + $0x658] sm:$0xff]  ;;  %v342_v36 = vld [vmem:[%s4946_s13 + $0x2e0] sm:$0xff] }
 0x153   : > { %v1490_v44 = vpop.f32.mrf.mxu0  ;;  %v1715_v45 = vpop.f32.mrf.mxu1  ;;  %2534 = vmatprep.subr.mxu1 %v4609_v2  ;;  %2311 = vmatprep.mubr.f32.mxu0 %v259_v34  ;;  %v1159_v34 = vld [vmem:[%s7544_s1 + $0x768] sm:$0xff] }
 0x154   : > { %2535 = vmatpush2.msra.mxu1 %v1098_v38  ;;  %2536 = vmatprep.mubr.f32.mxu1 %v261_v39  ;;  %v344_v38 = vld [vmem:[%s4946_s13 + $0x2f0] sm:$0xff]  ;;  %v366_v44 = vld [vmem:[%s4946_s13 + $0x3a0] sm:$0xff] }
 0x155   : > { %v1493_v51 = vpop.f32.mrf.mxu0  ;;  %v1718_v53 = vpop.f32.mrf.mxu1  ;;  %2312 = vmatmul.mubr.f32.vlgmr.msra.gmra.mxu0 %v258_v42  ;;  %2537 = vmatmul.mubr.f32.vlgmr.msra.gmra.mxu1 %v260_v43  ;;  %v364_v43 = vld [vmem:[%s4946_s13 + $0x390] sm:$0xff] }
 0x156   : > { %v5775_v54 = vadd.f32 %v1718_v53, %v1493_v51  ;;  %2697 = vmatprep.subr.mxu0 %v4609_v2  ;;  %2316 = vmatprep.mubr.f32.mxu0 %v280_v46  ;;  %v363_v53 = vld [vmem:[%s4946_s13 + $0x388] sm:$0xff] }
 0x157   : > { %2698 = vmatpush1.msra.mxu0 %v1129_v47  ;;  %v1495_v57 = vpop.f32.mrf.mxu0  ;;  %v1720_v58 = vpop.f32.mrf.mxu1  ;;  %2541 = vmatprep.mubr.f32.mxu1 %v282_v49  ;;  %v1124_v47 = vld [vmem:[%s7544_s1 + $0x650] sm:$0xff]  ;;  %v1158_v49 = vld [vmem:[%s7544_s1 + $0x760] sm:$0xff] }
 0x158   : > { %2699 = vmatprep.subr.mxu0 %v4609_v2  ;;  %2922 = vmatprep.subr.mxu1 %v4609_v2  ;;  %v385_v58 = vld [vmem:[%s4946_s13 + $0x438] sm:$0xff] }
 0x159   : > { %v1498_v1 = vpop.f32.mrf.mxu0  ;;  %v1723_v3 = vpop.f32.mrf.mxu1  ;;  %2317 = vmatmul.mubr.f32.gmra.mxu0 %v279_v55  ;;  %2542 = vmatmul.mubr.f32.gmra.mxu1 %v281_v56  ;;  %v365_v55 = vld [vmem:[%s4946_s13 + $0x398] sm:$0xff] }
 0x15a   : > { %v5793_v6 = vadd.f32 %v1723_v3, %v1498_v1  ;;  %2700 = vmatpush1.msra.mxu0 %v1128_v60  ;;  %2321 = vmatprep.mubr.f32.mxu0 %v301_v61  ;;  %v387_v60 = vld [vmem:[%s4946_s13 + $0x448] sm:$0xff]  ;;  %v1157_v3 = vld [vmem:[%s7544_s1 + $0x758] sm:$0xff] }
 0x15b   : > { %v1500_v10 = vpop.f32.mrf.mxu0  ;;  %v1725_v11 = vpop.f32.mrf.mxu1  ;;  %2546 = vmatprep.mubr.f32.mxu1 %v303_v62  ;;  %2701 = vmatprep.subr.mxu0 %v4609_v2  ;;  %v1123_v1 = vld [vmem:[%s7544_s1 + $0x648] sm:$0xff] }
 0x15c   : > { %2702 = vmatpush1.msra.mxu0 %v1127_v4  ;;  %2923 = vmatpush1.msra.mxu1 %v1161_v5  ;;  %v384_v5 = vld [vmem:[%s4946_s13 + $0x430] sm:$0xff]  ;;  %v406_v11 = vld [vmem:[%s4946_s13 + $0x4e0] sm:$0xff] }
 0x15d   : > { %v1503_v16 = vpop.f32.mrf.mxu0  ;;  %v1728_v17 = vpop.f32.mrf.mxu1  ;;  %2322 = vmatmul.mubr.f32.gmra.mxu0 %v300_v8  ;;  %2547 = vmatmul.mubr.f32.gmra.mxu1 %v302_v9  ;;  %v386_v8 = vld [vmem:[%s4946_s13 + $0x440] sm:$0xff] }
 0x15e   : > { %v5806_v21 = vadd.f32 %v1728_v17, %v1503_v16  ;;  %2326 = vmatprep.mubr.f32.mxu0 %v322_v12  ;;  %2551 = vmatprep.mubr.f32.mxu1 %v324_v15  ;;  %v408_v12 = vld [vmem:[%s4946_s13 + $0x4f0] sm:$0xff]  ;;  %v1122_v17 = vld [vmem:[%s7544_s1 + $0x640] sm:$0xff] }
 0x15f   : > { %v1505_v24 = vpop.f32.mrf.mxu0  ;;  %v1730_v27 = vpop.f32.mrf.mxu1  ;;  %2703 = vmatprep.subr.mxu0 %v4609_v2  ;;  %2924 = vmatprep.subr.mxu1 %v4609_v2 }
 0x160   : > { %2704 = vmatpush1.msra.mxu0 %v1126_v19  ;;  %2925 = vmatpush1.msra.mxu1 %v1160_v20  ;;  %v1156_v19 = vld [vmem:[%s7544_s1 + $0x750] sm:$0xff] }
 0x161   : > { %v1508_v31 = vpop.f32.mrf.mxu0  ;;  %v1733_v32 = vpop.f32.mrf.mxu1  ;;  %2327 = vmatmul.mubr.f32.gmra.mxu0 %v321_v22  ;;  %2552 = vmatmul.mubr.f32.gmra.mxu1 %v323_v23  ;;  %v405_v22 = vld [vmem:[%s4946_s13 + $0x4d8] sm:$0xff]  ;;  %v407_v23 = vld [vmem:[%s4946_s13 + $0x4e8] sm:$0xff] }
 0x162   : > { %v5820_v35 = vadd.f32 %v1733_v32, %v1508_v31  ;;  %2331 = vmatprep.mubr.f32.mxu0 %v343_v28  ;;  %2556 = vmatprep.mubr.f32.mxu1 %v345_v30  ;;  %v427_v28 = vld [vmem:[%s4946_s13 + $0x588] sm:$0xff]  ;;  %v429_v30 = vld [vmem:[%s4946_s13 + $0x598] sm:$0xff] }
 0x163   : > { %v1510_v39 = vpop.f32.mrf.mxu0  ;;  %v1735_v42 = vpop.f32.mrf.mxu1  ;;  %2705 = vmatprep.subr.mxu0 %v4609_v2  ;;  %2926 = vmatprep.subr.mxu1 %v4609_v2 }
 0x164   : > { %2706 = vmatpush1.msra.mxu0 %v1125_v33  ;;  %2927 = vmatpush1.msra.mxu1 %v1159_v34  ;;  %v1121_v33 = vld [vmem:[%s7544_s1 + $0x638] sm:$0xff]  ;;  %v1155_v34 = vld [vmem:[%s7544_s1 + $0x748] sm:$0xff]  ;;  %v428_v39 = vld [vmem:[%s4946_s13 + $0x590] sm:$0xff] }
 0x165   : > { %v1513_v45 = vpop.f32.mrf.mxu0  ;;  %v1738_v46 = vpop.f32.mrf.mxu1  ;;  %2332 = vmatmul.mubr.f32.gmra.mxu0 %v342_v36  ;;  %2557 = vmatmul.mubr.f32.gmra.mxu1 %v344_v38  ;;  %v426_v38 = vld [vmem:[%s4946_s13 + $0x580] sm:$0xff] }
 0x166   : > { %v5834_v51 = vadd.f32 %v1738_v46, %v1513_v45  ;;  %2336 = vmatprep.mubr.f32.mxu0 %v364_v43  ;;  %2561 = vmatprep.mubr.f32.mxu1 %v366_v44  ;;  %v448_v44 = vld [vmem:[%s4946_s13 + $0x630] sm:$0xff]  ;;  %v450_v45 = vld [vmem:[%s4946_s13 + $0x640] sm:$0xff] }
 0x167   : > { %v1515_v56 = vpop.f32.mrf.mxu0  ;;  %v1740_v57 = vpop.f32.mrf.mxu1  ;;  %2707 = vmatprep.subr.mxu0 %v4609_v2  ;;  %2928 = vmatprep.subr.mxu1 %v4609_v2 }
 0x168   : > { %2708 = vmatpush1.msra.mxu0 %v1124_v47  ;;  %2929 = vmatpush1.msra.mxu1 %v1158_v49  ;;  %v1120_v49 = vld [vmem:[%s7544_s1 + $0x630] sm:$0xff]  ;;  %v447_v56 = vld [vmem:[%s4946_s13 + $0x628] sm:$0xff]  ;;  %v449_v57 = vld [vmem:[%s4946_s13 + $0x638] sm:$0xff] }
 0x169   : > { %v1518_v61 = vpop.f32.mrf.mxu0  ;;  %v1743_v62 = vpop.f32.mrf.mxu1  ;;  %2337 = vmatmul.mubr.f32.gmra.mxu0 %v363_v53  ;;  %2562 = vmatmul.mubr.f32.gmra.mxu1 %v365_v55  ;;  %v1154_v53 = vld [vmem:[%s7544_s1 + $0x740] sm:$0xff] }
 0x16a   : > { %v5848_v4 = vadd.f32 %v1743_v62, %v1518_v61  ;;  %2341 = vmatprep.mubr.f32.mxu0 %v385_v58  ;;  %2566 = vmatprep.mubr.f32.mxu1 %v387_v60  ;;  %v469_v61 = vld [vmem:[%s4946_s13 + $0x6d8] sm:$0xff]  ;;  %v471_v62 = vld [vmem:[%s4946_s13 + $0x6e8] sm:$0xff] }
 0x16b   : > { %v1520_v9 = vpop.f32.mrf.mxu0  ;;  %v1745_v10 = vpop.f32.mrf.mxu1  ;;  %2709 = vmatprep.subr.mxu0 %v4609_v2  ;;  %2930 = vmatprep.subr.mxu1 %v4609_v2 }
 0x16c   : > { %2710 = vmatpush1.msra.mxu0 %v1123_v1  ;;  %2931 = vmatpush1.msra.mxu1 %v1157_v3  ;;  %v468_v10 = vld [vmem:[%s4946_s13 + $0x6d0] sm:$0xff] }
 0x16d   : > { %v1523_v15 = vpop.f32.mrf.mxu0  ;;  %v1748_v16 = vpop.f32.mrf.mxu1  ;;  %2342 = vmatmul.mubr.f32.gmra.mxu0 %v384_v5  ;;  %2567 = vmatmul.mubr.f32.gmra.mxu1 %v386_v8  ;;  %v1119_v5 = vld [vmem:[%s7544_s1 + $0x628] sm:$0xff]  ;;  %v1153_v8 = vld [vmem:[%s7544_s1 + $0x738] sm:$0xff] }
 0x16e   : > { %v5862_v20 = vadd.f32 %v1748_v16, %v1523_v15  ;;  %2346 = vmatprep.mubr.f32.mxu0 %v406_v11  ;;  %2571 = vmatprep.mubr.f32.mxu1 %v408_v12  ;;  %v470_v11 = vld [vmem:[%s4946_s13 + $0x6e0] sm:$0xff] }
 0x16f   : > { %v1525_v24 = vpop.f32.mrf.mxu0  ;;  %v1750_v27 = vpop.f32.mrf.mxu1  ;;  %2711 = vmatprep.subr.mxu0 %v4609_v2  ;;  %2932 = vmatprep.subr.mxu1 %v4609_v2  ;;  %v490_v16 = vld [vmem:[%s4946_s13 + $0x780] sm:$0xff] }
 0x170   : > { %2712 = vmatpush1.msra.mxu0 %v1122_v17  ;;  %2933 = vmatpush1.msra.mxu1 %v1156_v19  ;;  %v492_v17 = vld [vmem:[%s4946_s13 + $0x790] sm:$0xff] }
 0x171   : > { %v1528_v31 = vpop.f32.mrf.mxu0  ;;  %v1753_v32 = vpop.f32.mrf.mxu1  ;;  %2347 = vmatmul.mubr.f32.gmra.mxu0 %v405_v22  ;;  %2572 = vmatmul.mubr.f32.gmra.mxu1 %v407_v23  ;;  %v1118_v23 = vld [vmem:[%s7544_s1 + $0x620] sm:$0xff]  ;;  %v1152_v24 = vld [vmem:[%s7544_s1 + $0x730] sm:$0xff] }
 0x172   : > { %v5876_v36 = vadd.f32 %v1753_v32, %v1528_v31  ;;  %2351 = vmatprep.mubr.f32.mxu0 %v427_v28  ;;  %2576 = vmatprep.mubr.f32.mxu1 %v429_v30  ;;  %v489_v28 = vld [vmem:[%s4946_s13 + $0x778] sm:$0xff]  ;;  %v491_v30 = vld [vmem:[%s4946_s13 + $0x788] sm:$0xff] }
 0x173   : > { %v1530_v42 = vpop.f32.mrf.mxu0  ;;  %v1755_v43 = vpop.f32.mrf.mxu1  ;;  %2713 = vmatprep.subr.mxu0 %v4609_v2  ;;  %2934 = vmatprep.subr.mxu1 %v4609_v2 }
 0x174   : > { %2714 = vmatpush1.msra.mxu0 %v1121_v33  ;;  %2935 = vmatpush1.msra.mxu1 %v1155_v34  ;;  %v511_v33 = vld [vmem:[%s4946_s13 + $0x828] sm:$0xff]  ;;  %v513_v34 = vld [vmem:[%s4946_s13 + $0x838] sm:$0xff] }
 0x175   : > { %v1533_v46 = vpop.f32.mrf.mxu0  ;;  %v1758_v47 = vpop.f32.mrf.mxu1  ;;  %2352 = vmatmul.mubr.f32.gmra.mxu0 %v426_v38  ;;  %2577 = vmatmul.mubr.f32.gmra.mxu1 %v428_v39  ;;  %v1117_v42 = vld [vmem:[%s7544_s1 + $0x618] sm:$0xff]  ;;  %v1151_v43 = vld [vmem:[%s7544_s1 + $0x728] sm:$0xff] }
 0x176   : > { %v5890_v55 = vadd.f32 %v1758_v47, %v1533_v46  ;;  %2356 = vmatprep.mubr.f32.mxu0 %v448_v44  ;;  %2581 = vmatprep.mubr.f32.mxu1 %v450_v45  ;;  %v510_v45 = vld [vmem:[%s4946_s13 + $0x820] sm:$0xff]  ;;  %v512_v46 = vld [vmem:[%s4946_s13 + $0x830] sm:$0xff] }
 0x177   : > { %v1535_v58 = vpop.f32.mrf.mxu0  ;;  %v1760_v60 = vpop.f32.mrf.mxu1  ;;  %2715 = vmatprep.subr.mxu0 %v4609_v2  ;;  %2936 = vmatprep.subr.mxu1 %v4609_v2 }
 0x178   : > { %2716 = vmatpush1.msra.mxu0 %v1120_v49  ;;  %2937 = vmatpush1.msra.mxu1 %v1154_v53  ;;  %v532_v53 = vld [vmem:[%s4946_s13 + $0x8d0] sm:$0xff] }
 0x179   : > { %v1538_v1 = vpop.f32.mrf.mxu0  ;;  %v1763_v3 = vpop.f32.mrf.mxu1  ;;  %2357 = vmatmul.mubr.f32.gmra.mxu0 %v447_v56  ;;  %2582 = vmatmul.mubr.f32.gmra.mxu1 %v449_v57  ;;  %v534_v56 = vld [vmem:[%s4946_s13 + $0x8e0] sm:$0xff]  ;;  %v1116_v60 = vld [vmem:[%s7544_s1 + $0x610] sm:$0xff] }
 0x17a   : > { %v5904_v9 = vadd.f32 %v1763_v3, %v1538_v1  ;;  %2361 = vmatprep.mubr.f32.mxu0 %v469_v61  ;;  %2586 = vmatprep.mubr.f32.mxu1 %v471_v62  ;;  %v1150_v61 = vld [vmem:[%s7544_s1 + $0x720] sm:$0xff]  ;;  %v531_v1 = vld [vmem:[%s4946_s13 + $0x8c8] sm:$0xff]  ;;  %v533_v3 = vld [vmem:[%s4946_s13 + $0x8d8] sm:$0xff] }
 0x17b   : > { %v1540_v12 = vpop.f32.mrf.mxu0  ;;  %v1765_v15 = vpop.f32.mrf.mxu1  ;;  %2717 = vmatprep.subr.mxu0 %v4609_v2  ;;  %2938 = vmatprep.subr.mxu1 %v4609_v2 }
 0x17c   : > { %2718 = vmatpush1.msra.mxu0 %v1119_v5  ;;  %2939 = vmatpush1.msra.mxu1 %v1153_v8 }
 0x17d   : > { %v1543_v19 = vpop.f32.mrf.mxu0  ;;  %v1768_v22 = vpop.f32.mrf.mxu1  ;;  %2362 = vmatmul.mubr.f32.gmra.mxu0 %v468_v10  ;;  %2587 = vmatmul.mubr.f32.gmra.mxu1 %v470_v11  ;;  %v553_v10 = vld [vmem:[%s4946_s13 + $0x978] sm:$0xff]  ;;  %v555_v11 = vld [vmem:[%s4946_s13 + $0x988] sm:$0xff] }
 0x17e   : > { %v5918_v27 = vadd.f32 %v1768_v22, %v1543_v19  ;;  %2366 = vmatprep.mubr.f32.mxu0 %v490_v16  ;;  %2591 = vmatprep.mubr.f32.mxu1 %v492_v17  ;;  %v1115_v16 = vld [vmem:[%s7544_s1 + $0x608] sm:$0xff]  ;;  %v1149_v17 = vld [vmem:[%s7544_s1 + $0x718] sm:$0xff]  ;;  %v552_v22 = vld [vmem:[%s4946_s13 + $0x970] sm:$0xff] }
 0x17f   : > { %v1545_v31 = vpop.f32.mrf.mxu0  ;;  %v1770_v32 = vpop.f32.mrf.mxu1  ;;  %2719 = vmatprep.subr.mxu0 %v4609_v2  ;;  %2940 = vmatprep.subr.mxu1 %v4609_v2 }
 0x180   : > { %2720 = vmatpush1.msra.mxu0 %v1118_v23  ;;  %2941 = vmatpush1.msra.mxu1 %v1152_v24  ;;  %v554_v23 = vld [vmem:[%s4946_s13 + $0x980] sm:$0xff]  ;;  %v576_v31 = vld [vmem:[%s4946_s13 + $0xa30] sm:$0xff] }
 0x181   : > { %v1548_v38 = vpop.f32.mrf.mxu0  ;;  %v1773_v39 = vpop.f32.mrf.mxu1  ;;  %2367 = vmatmul.mubr.f32.gmra.mxu0 %v489_v28  ;;  %2592 = vmatmul.mubr.f32.gmra.mxu1 %v491_v30  ;;  %v574_v30 = vld [vmem:[%s4946_s13 + $0xa20] sm:$0xff] }
 0x182   : > { %v5932_v44 = vadd.f32 %v1773_v39, %v1548_v38  ;;  %2371 = vmatprep.mubr.f32.mxu0 %v511_v33  ;;  %2596 = vmatprep.mubr.f32.mxu1 %v513_v34  ;;  %v1114_v34 = vld [vmem:[%s7544_s1 + $0x600] sm:$0xff]  ;;  %v1148_v38 = vld [vmem:[%s7544_s1 + $0x710] sm:$0xff] }
 0x183   : > { %v1550_v47 = vpop.f32.mrf.mxu0  ;;  %v1775_v49 = vpop.f32.mrf.mxu1  ;;  %2721 = vmatprep.subr.mxu0 %v4609_v2  ;;  %2942 = vmatprep.subr.mxu1 %v4609_v2 }
 0x184   : > { %2722 = vmatpush1.msra.mxu0 %v1117_v42  ;;  %2943 = vmatpush1.msra.mxu1 %v1151_v43  ;;  %v573_v42 = vld [vmem:[%s4946_s13 + $0xa18] sm:$0xff]  ;;  %v575_v43 = vld [vmem:[%s4946_s13 + $0xa28] sm:$0xff] }
 0x185   : > { %v1553_v57 = vpop.f32.mrf.mxu0  ;;  %v1778_v58 = vpop.f32.mrf.mxu1  ;;  %2372 = vmatmul.mubr.f32.gmra.mxu0 %v510_v45  ;;  %2597 = vmatmul.mubr.f32.gmra.mxu1 %v512_v46  ;;  %v595_v47 = vld [vmem:[%s4946_s13 + $0xac8] sm:$0xff]  ;;  %v597_v49 = vld [vmem:[%s4946_s13 + $0xad8] sm:$0xff] }
 0x186   : > { %v5946_v62 = vadd.f32 %v1778_v58, %v1553_v57  ;;  %2376 = vmatprep.mubr.f32.mxu0 %v532_v53  ;;  %2601 = vmatprep.mubr.f32.mxu1 %v534_v56  ;;  %v1145_v57 = vld [vmem:[%s7544_s1 + $0x6f8] sm:$0xff]  ;;  %v1147_v58 = vld [vmem:[%s7544_s1 + $0x708] sm:$0xff] }
 0x187   : > { %v1555_v5 = vpop.f32.mrf.mxu0  ;;  %v1780_v8 = vpop.f32.mrf.mxu1  ;;  %2723 = vmatprep.subr.mxu0 %v4609_v2  ;;  %2944 = vmatprep.subr.mxu1 %v4609_v2 }
 0x188   : > { %2724 = vmatpush1.msra.mxu0 %v1116_v60  ;;  %2945 = vmatpush1.msra.mxu1 %v1150_v61  ;;  %v594_v61 = vld [vmem:[%s4946_s13 + $0xac0] sm:$0xff]  ;;  %v616_v8 = vld [vmem:[%s4946_s13 + $0xb70] sm:$0xff] }
 0x189   : > { %v1558_v12 = vpop.f32.mrf.mxu0  ;;  %v1783_v15 = vpop.f32.mrf.mxu1  ;;  %2377 = vmatmul.mubr.f32.gmra.mxu0 %v531_v1  ;;  %2602 = vmatmul.mubr.f32.gmra.mxu1 %v533_v3  ;;  %v596_v1 = vld [vmem:[%s4946_s13 + $0xad0] sm:$0xff] }
 0x18a   : > { %v5960_v19 = vadd.f32 %v1783_v15, %v1558_v12  ;;  %2381 = vmatprep.mubr.f32.mxu0 %v553_v10  ;;  %2606 = vmatprep.mubr.f32.mxu1 %v555_v11  ;;  %v618_v10 = vld [vmem:[%s4946_s13 + $0xb80] sm:$0xff]  ;;  %v1144_v15 = vld [vmem:[%s7544_s1 + $0x6f0] sm:$0xff] }
 0x18b   : > { %v1560_v24 = vpop.f32.mrf.mxu0  ;;  %v1785_v28 = vpop.f32.mrf.mxu1  ;;  %2725 = vmatprep.subr.mxu0 %v4609_v2  ;;  %2946 = vmatprep.subr.mxu1 %v4609_v2 }
 0x18c   : > { %2726 = vmatpush1.msra.mxu0 %v1115_v16  ;;  %2947 = vmatpush1.msra.mxu1 %v1149_v17  ;;  %v1146_v16 = vld [vmem:[%s7544_s1 + $0x700] sm:$0xff] }
 0x18d   : > { %v1563_v32 = vpop.f32.mrf.mxu0  ;;  %v1788_v33 = vpop.f32.mrf.mxu1  ;;  %2382 = vmatmul.mubr.f32.gmra.mxu0 %v552_v22  ;;  %2607 = vmatmul.mubr.f32.gmra.mxu1 %v554_v23  ;;  %v615_v22 = vld [vmem:[%s4946_s13 + $0xb68] sm:$0xff]  ;;  %v617_v23 = vld [vmem:[%s4946_s13 + $0xb78] sm:$0xff] }
 0x18e   : > { %v5974_v39 = vadd.f32 %v1788_v33, %v1563_v32  ;;  %2386 = vmatprep.mubr.f32.mxu0 %v574_v30  ;;  %2611 = vmatprep.mubr.f32.mxu1 %v576_v31  ;;  %v637_v30 = vld [vmem:[%s4946_s13 + $0xc18] sm:$0xff]  ;;  %v639_v31 = vld [vmem:[%s4946_s13 + $0xc28] sm:$0xff] }
 0x18f   : > { %v1565_v45 = vpop.f32.mrf.mxu0  ;;  %v1790_v46 = vpop.f32.mrf.mxu1  ;;  %2727 = vmatprep.subr.mxu0 %v4609_v2  ;;  %2948 = vmatprep.subr.mxu1 %v4609_v2 }
 0x190   : > { %2728 = vmatpush1.msra.mxu0 %v1114_v34  ;;  %2949 = vmatpush1.msra.mxu1 %v1148_v38  ;;  %v1143_v34 = vld [vmem:[%s7544_s1 + $0x6e8] sm:$0xff]  ;;  %v1177_v38 = vld [vmem:[%s7544_s1 + $0x7f8] sm:$0xff]  ;;  %v638_v45 = vld [vmem:[%s4946_s13 + $0xc20] sm:$0xff] }
 0x191   : > { %v1568_v53 = vpop.f32.mrf.mxu0  ;;  %v1793_v56 = vpop.f32.mrf.mxu1  ;;  %2387 = vmatmul.mubr.f32.gmra.mxu0 %v573_v42  ;;  %2612 = vmatmul.mubr.f32.gmra.mxu1 %v575_v43  ;;  %v636_v43 = vld [vmem:[%s4946_s13 + $0xc10] sm:$0xff] }
 0x192   : > { %v5988_v60 = vadd.f32 %v1793_v56, %v1568_v53  ;;  %2391 = vmatprep.mubr.f32.mxu0 %v595_v47  ;;  %2616 = vmatprep.mubr.f32.mxu1 %v597_v49  ;;  %v658_v49 = vld [vmem:[%s4946_s13 + $0xcc0] sm:$0xff]  ;;  %v660_v53 = vld [vmem:[%s4946_s13 + $0xcd0] sm:$0xff] }
 0x193   : > { %v1570_v3 = vpop.f32.mrf.mxu0  ;;  %v1795_v5 = vpop.f32.mrf.mxu1  ;;  %2729 = vmatprep.subr.mxu0 %v4609_v2  ;;  %2950 = vmatprep.subr.mxu1 %v4609_v2 }
 0x194   : > { %2730 = vmatpush2.msra.mxu0 %v1145_v57  ;;  %2951 = vmatpush1.msra.mxu1 %v1147_v58  ;;  %v1142_v58 = vld [vmem:[%s7544_s1 + $0x6e0] sm:$0xff]  ;;  %v657_v3 = vld [vmem:[%s4946_s13 + $0xcb8] sm:$0xff]  ;;  %v659_v5 = vld [vmem:[%s4946_s13 + $0xcc8] sm:$0xff] }
 0x195   : > { %v1863_v11 = vpop.f32.mrf.mxu0  ;;  %v2088_v12 = vpop.f32.mrf.mxu1  ;;  %2392 = vmatmul.mubr.f32.gmra.mxu0 %v594_v61  ;;  %2617 = vmatmul.mubr.f32.gmra.mxu1 %v596_v1  ;;  %v1176_v61 = vld [vmem:[%s7544_s1 + $0x7f0] sm:$0xff] }
 0x196   : > { %v1864_v17 = vadd.f32 %v1863_v11, %v5554_v48  ;;  %2396 = vmatprep.mubr.f32.mxu0 %v616_v8  ;;  %2621 = vmatprep.mubr.f32.mxu1 %v618_v10  ;;  %v679_v11 = vld [vmem:[%s4946_s13 + $0xd68] sm:$0xff] }
 0x197   : > { %v1865_v24 = vpop.f32.mrf.mxu0  ;;  %v2090_v28 = vpop.f32.mrf.mxu1  ;;  %2731 = vmatprep.subr.mxu0 %v4609_v2  ;;  %2952 = vmatprep.subr.mxu1 %v4609_v2 }
 0x198   : > { %v6009_v32 = vadd.f32 %v2088_v12, %v1864_v17  ;;  %2732 = vmatpush2.msra.mxu0 %v1144_v15  ;;  %2953 = vmatpush1.msra.mxu1 %v1146_v16  ;;  %v681_v12 = vld [vmem:[%s4946_s13 + $0xd78] sm:$0xff]  ;;  %v678_v24 = vld [vmem:[%s4946_s13 + $0xd60] sm:$0xff]  ;;  %v680_v28 = vld [vmem:[%s4946_s13 + $0xd70] sm:$0xff] }
 0x199   : > { %v1868_v48 = vpop.f32.mrf.mxu0  ;;  %v2093_v33 = vpop.f32.mrf.mxu1  ;;  %2397 = vmatmul.mubr.f32.gmra.mxu0 %v615_v22  ;;  %2622 = vmatmul.mubr.f32.gmra.mxu1 %v617_v23  ;;  %v1141_v17 = vld [vmem:[%s7544_s1 + $0x6d8] sm:$0xff]  ;;  %v1175_v22 = vld [vmem:[%s7544_s1 + $0x7e8] sm:$0xff] }
 0x19a   : > { %v1869_v42 = vadd.f32 %v1868_v48, %v5568_v59  ;;  %2401 = vmatprep.mubr.f32.mxu0 %v637_v30  ;;  %2626 = vmatprep.mubr.f32.mxu1 %v639_v31  ;;  %v700_v48 = vld [vmem:[%s4946_s13 + $0xe10] sm:$0xff] }
 0x19b   : > { %v1870_v46 = vpop.f32.mrf.mxu0  ;;  %v2095_v47 = vpop.f32.mrf.mxu1  ;;  %2733 = vmatprep.subr.mxu0 %v4609_v2  ;;  %2954 = vmatprep.subr.mxu1 %v4609_v2 }
 0x19c   : > { %v6024_v56 = vadd.f32 %v2093_v33, %v1869_v42  ;;  %2734 = vmatpush2.msra.mxu0 %v1143_v34  ;;  %2955 = vmatpush2.msra.mxu1 %v1177_v38  ;;  %v702_v33 = vld [vmem:[%s4946_s13 + $0xe20] sm:$0xff]  ;;  %v1140_v42 = vld [vmem:[%s7544_s1 + $0x6d0] sm:$0xff]  ;;  %v699_v46 = vld [vmem:[%s4946_s13 + $0xe08] sm:$0xff] }
 0x19d   : > { %v1873_v59 = vpop.f32.mrf.mxu0  ;;  %v2098_v57 = vpop.f32.mrf.mxu1  ;;  %2402 = vmatmul.mubr.f32.gmra.mxu0 %v636_v43  ;;  %2627 = vmatmul.mubr.f32.gmra.mxu1 %v638_v45  ;;  %v1174_v43 = vld [vmem:[%s7544_s1 + $0x7e0] sm:$0xff]  ;;  %v701_v47 = vld [vmem:[%s4946_s13 + $0xe18] sm:$0xff] }
 0x19e   : > { %v1874_v1 = vadd.f32 %v1873_v59, %v5582_v7  ;;  %2406 = vmatprep.mubr.f32.mxu0 %v658_v49  ;;  %2631 = vmatprep.mubr.f32.mxu1 %v660_v53  ;;  %v721_v59 = vld [vmem:[%s4946_s13 + $0xeb8] sm:$0xff] }
 0x19f   : > { %v1875_v8 = vpop.f32.mrf.mxu0  ;;  %v2100_v10 = vpop.f32.mrf.mxu1  ;;  %2735 = vmatprep.subr.mxu0 %v4609_v2  ;;  %2956 = vmatprep.subr.mxu1 %v4609_v2 }
 0x1a0   : > { %v6039_v15 = vadd.f32 %v2098_v57, %v1874_v1  ;;  %2736 = vmatpush2.msra.mxu0 %v1142_v58  ;;  %2957 = vmatpush2.msra.mxu1 %v1176_v61  ;;  %v723_v57 = vld [vmem:[%s4946_s13 + $0xec8] sm:$0xff]  ;;  %v720_v8 = vld [vmem:[%s4946_s13 + $0xeb0] sm:$0xff]  ;;  %v722_v10 = vld [vmem:[%s4946_s13 + $0xec0] sm:$0xff] }
 0x1a1   : > { %v1878_v7 = vpop.f32.mrf.mxu0  ;;  %v2103_v16 = vpop.f32.mrf.mxu1  ;;  %2407 = vmatmul.mubr.f32.gmra.mxu0 %v657_v3  ;;  %2632 = vmatmul.mubr.f32.gmra.mxu1 %v659_v5  ;;  %v1139_v1 = vld [vmem:[%s7544_s1 + $0x6c8] sm:$0xff]  ;;  %v1173_v3 = vld [vmem:[%s7544_s1 + $0x7d8] sm:$0xff] }
 0x1a2   : > { %v1879_v23 = vadd.f32 %v1878_v7, %v5596_v18  ;;  %2411 = vmatprep.mubr.f32.mxu0 %v679_v11  ;;  %2636 = vmatprep.mubr.f32.mxu1 %v681_v12  ;;  %v742_v7 = vld [vmem:[%s4946_s13 + $0xf60] sm:$0xff] }
 0x1a3   : > { %v1880_v30 = vpop.f32.mrf.mxu0  ;;  %v2105_v31 = vpop.f32.mrf.mxu1  ;;  %2737 = vmatprep.subr.mxu0 %v4609_v2  ;;  %2958 = vmatprep.subr.mxu1 %v4609_v2 }
 0x1a4   : > { %v6054_v34 = vadd.f32 %v2103_v16, %v1879_v23  ;;  %2738 = vmatpush2.msra.mxu0 %v1141_v17  ;;  %2959 = vmatpush2.msra.mxu1 %v1175_v22  ;;  %v744_v16 = vld [vmem:[%s4946_s13 + $0xf70] sm:$0xff]  ;;  %v1138_v23 = vld [vmem:[%s7544_s1 + $0x6c0] sm:$0xff]  ;;  %v741_v30 = vld [vmem:[%s4946_s13 + $0xf58] sm:$0xff] }
 0x1a5   : > { %v1883_v18 = vpop.f32.mrf.mxu0  ;;  %v2108_v38 = vpop.f32.mrf.mxu1  ;;  %2412 = vmatmul.mubr.f32.gmra.mxu0 %v678_v24  ;;  %2637 = vmatmul.mubr.f32.gmra.mxu1 %v680_v28  ;;  %v1172_v24 = vld [vmem:[%s7544_s1 + $0x7d0] sm:$0xff]  ;;  %v743_v31 = vld [vmem:[%s4946_s13 + $0xf68] sm:$0xff] }
 0x1a6   : > { %v1884_v45 = vadd.f32 %v1883_v18, %v5610_v29  ;;  %2416 = vmatprep.mubr.f32.mxu0 %v700_v48  ;;  %2641 = vmatprep.mubr.f32.mxu1 %v702_v33  ;;  %v763_v18 = vld [vmem:[%s4946_s13 + $0x1008] sm:$0xff] }
 0x1a7   : > { %v1885_v49 = vpop.f32.mrf.mxu0  ;;  %v2110_v53 = vpop.f32.mrf.mxu1  ;;  %2739 = vmatprep.subr.mxu0 %v4609_v2  ;;  %2960 = vmatprep.subr.mxu1 %v4609_v2 }
 0x1a8   : > { %v6069_v58 = vadd.f32 %v2108_v38, %v1884_v45  ;;  %2740 = vmatpush2.msra.mxu0 %v1140_v42  ;;  %2961 = vmatpush2.msra.mxu1 %v1174_v43  ;;  %v765_v38 = vld [vmem:[%s4946_s13 + $0x1018] sm:$0xff]  ;;  %v762_v49 = vld [vmem:[%s4946_s13 + $0x1000] sm:$0xff]  ;;  %v764_v53 = vld [vmem:[%s4946_s13 + $0x1010] sm:$0xff] }
 0x1a9   : > { %v1888_v29 = vpop.f32.mrf.mxu0  ;;  %v2113_v61 = vpop.f32.mrf.mxu1  ;;  %2417 = vmatmul.mubr.f32.gmra.mxu0 %v699_v46  ;;  %2642 = vmatmul.mubr.f32.gmra.mxu1 %v701_v47  ;;  %v1137_v45 = vld [vmem:[%s7544_s1 + $0x6b8] sm:$0xff]  ;;  %v1171_v46 = vld [vmem:[%s7544_s1 + $0x7c8] sm:$0xff] }
 0x1aa   : > { %v1889_v5 = vadd.f32 %v1888_v29, %v5624_v40  ;;  %2421 = vmatprep.mubr.f32.mxu0 %v721_v59  ;;  %2646 = vmatprep.mubr.f32.mxu1 %v723_v57  ;;  %v784_v29 = vld [vmem:[%s4946_s13 + $0x10b0] sm:$0xff] }
 0x1ab   : > { %v1890_v11 = vpop.f32.mrf.mxu0  ;;  %v2115_v12 = vpop.f32.mrf.mxu1  ;;  %2741 = vmatprep.subr.mxu0 %v4609_v2  ;;  %2962 = vmatprep.subr.mxu1 %v4609_v2 }
 0x1ac   : > { %v6084_v17 = vadd.f32 %v2113_v61, %v1889_v5  ;;  %2742 = vmatpush2.msra.mxu0 %v1139_v1  ;;  %2963 = vmatpush2.msra.mxu1 %v1173_v3  ;;  %v786_v61 = vld [vmem:[%s4946_s13 + $0x10c0] sm:$0xff]  ;;  %v1136_v5 = vld [vmem:[%s7544_s1 + $0x6b0] sm:$0xff]  ;;  %v783_v11 = vld [vmem:[%s4946_s13 + $0x10a8] sm:$0xff] }
 0x1ad   : > { %v1893_v40 = vpop.f32.mrf.mxu0  ;;  %v2118_v22 = vpop.f32.mrf.mxu1  ;;  %2422 = vmatmul.mubr.f32.gmra.mxu0 %v720_v8  ;;  %2647 = vmatmul.mubr.f32.gmra.mxu1 %v722_v10  ;;  %v1170_v8 = vld [vmem:[%s7544_s1 + $0x7c0] sm:$0xff]  ;;  %v785_v12 = vld [vmem:[%s4946_s13 + $0x10b8] sm:$0xff] }
 0x1ae   : > { %v1894_v28 = vadd.f32 %v1893_v40, %v5638_v52  ;;  %2426 = vmatprep.mubr.f32.mxu0 %v742_v7  ;;  %2651 = vmatprep.mubr.f32.mxu1 %v744_v16  ;;  %v805_v40 = vld [vmem:[%s4946_s13 + $0x1158] sm:$0xff] }
 0x1af   : > { %v1895_v48 = vpop.f32.mrf.mxu0  ;;  %v2120_v33 = vpop.f32.mrf.mxu1  ;;  %2743 = vmatprep.subr.mxu0 %v4609_v2  ;;  %2964 = vmatprep.subr.mxu1 %v4609_v2 }
 0x1b0   : > { %v6099_v42 = vadd.f32 %v2118_v22, %v1894_v28  ;;  %2744 = vmatpush2.msra.mxu0 %v1138_v23  ;;  %2965 = vmatpush2.msra.mxu1 %v1172_v24  ;;  %v807_v22 = vld [vmem:[%s4946_s13 + $0x1168] sm:$0xff]  ;;  %v804_v48 = vld [vmem:[%s4946_s13 + $0x1150] sm:$0xff]  ;;  %v806_v33 = vld [vmem:[%s4946_s13 + $0x1160] sm:$0xff] }
 0x1b1   : > { %v1898_v52 = vpop.f32.mrf.mxu0  ;;  %v2123_v43 = vpop.f32.mrf.mxu1  ;;  %2427 = vmatmul.mubr.f32.gmra.mxu0 %v741_v30  ;;  %2652 = vmatmul.mubr.f32.gmra.mxu1 %v743_v31  ;;  %v1135_v28 = vld [vmem:[%s7544_s1 + $0x6a8] sm:$0xff]  ;;  %v1169_v30 = vld [vmem:[%s7544_s1 + $0x7b8] sm:$0xff] }
 0x1b2   : > { %v1899_v47 = vadd.f32 %v1898_v52, %v5652_v0  ;;  %2431 = vmatprep.mubr.f32.mxu0 %v763_v18  ;;  %2656 = vmatprep.mubr.f32.mxu1 %v765_v38  ;;  %v826_v52 = vld [vmem:[%s4946_s13 + $0x1200] sm:$0xff] }
 0x1b3   : > { %v1900_v59 = vpop.f32.mrf.mxu0  ;;  %v2125_v57 = vpop.f32.mrf.mxu1  ;;  %2745 = vmatprep.subr.mxu0 %v4609_v2  ;;  %2966 = vmatprep.subr.mxu1 %v4609_v2 }
 0x1b4   : > { %v6114_v1 = vadd.f32 %v2123_v43, %v1899_v47  ;;  %2746 = vmatpush2.msra.mxu0 %v1137_v45  ;;  %2967 = vmatpush2.msra.mxu1 %v1171_v46  ;;  %v828_v43 = vld [vmem:[%s4946_s13 + $0x1210] sm:$0xff]  ;;  %v1134_v47 = vld [vmem:[%s7544_s1 + $0x6a0] sm:$0xff]  ;;  %v825_v59 = vld [vmem:[%s4946_s13 + $0x11f8] sm:$0xff] }
 0x1b5   : > { %v1903_v0 = vpop.f32.mrf.mxu0  ;;  %v2128_v3 = vpop.f32.mrf.mxu1  ;;  %2432 = vmatmul.mubr.f32.gmra.mxu0 %v762_v49  ;;  %2657 = vmatmul.mubr.f32.gmra.mxu1 %v764_v53  ;;  %v1168_v49 = vld [vmem:[%s7544_s1 + $0x7b0] sm:$0xff]  ;;  %v827_v57 = vld [vmem:[%s4946_s13 + $0x1208] sm:$0xff] }
 0x1b6   : > { %v1904_v10 = vadd.f32 %v1903_v0, %v5666_v13  ;;  %2436 = vmatprep.mubr.f32.mxu0 %v784_v29  ;;  %2661 = vmatprep.mubr.f32.mxu1 %v786_v61  ;;  %v847_v0 = vld [vmem:[%s4946_s13 + $0x12a8] sm:$0xff] }
 0x1b7   : > { %v1905_v7 = vpop.f32.mrf.mxu0  ;;  %v2130_v16 = vpop.f32.mrf.mxu1  ;;  %2747 = vmatprep.subr.mxu0 %v4609_v2  ;;  %2968 = vmatprep.subr.mxu1 %v4609_v2 }
 0x1b8   : > { %v6129_v23 = vadd.f32 %v2128_v3, %v1904_v10  ;;  %2748 = vmatpush2.msra.mxu0 %v1136_v5  ;;  %2969 = vmatpush2.msra.mxu1 %v1170_v8  ;;  %v849_v3 = vld [vmem:[%s4946_s13 + $0x12b8] sm:$0xff]  ;;  %v846_v7 = vld [vmem:[%s4946_s13 + $0x12a0] sm:$0xff]  ;;  %v848_v16 = vld [vmem:[%s4946_s13 + $0x12b0] sm:$0xff] }
 0x1b9   : > { %v1908_v13 = vpop.f32.mrf.mxu0  ;;  %v2133_v24 = vpop.f32.mrf.mxu1  ;;  %2437 = vmatmul.mubr.f32.gmra.mxu0 %v783_v11  ;;  %2662 = vmatmul.mubr.f32.gmra.mxu1 %v785_v12  ;;  %v1133_v10 = vld [vmem:[%s7544_s1 + $0x698] sm:$0xff]  ;;  %v1167_v11 = vld [vmem:[%s7544_s1 + $0x7a8] sm:$0xff] }
 0x1ba   : > { %v1909_v31 = vadd.f32 %v1908_v13, %v5680_v25  ;;  %2441 = vmatprep.mubr.f32.mxu0 %v805_v40  ;;  %2666 = vmatprep.mubr.f32.mxu1 %v807_v22  ;;  %v868_v13 = vld [vmem:[%s4946_s13 + $0x1350] sm:$0xff] }
 0x1bb   : > { %v1910_v18 = vpop.f32.mrf.mxu0  ;;  %v2135_v38 = vpop.f32.mrf.mxu1  ;;  %2749 = vmatprep.subr.mxu0 %v4609_v2  ;;  %2970 = vmatprep.subr.mxu1 %v4609_v2 }
 0x1bc   : > { %v6144_v45 = vadd.f32 %v2133_v24, %v1909_v31  ;;  %2750 = vmatpush2.msra.mxu0 %v1135_v28  ;;  %2971 = vmatpush2.msra.mxu1 %v1169_v30  ;;  %v870_v24 = vld [vmem:[%s4946_s13 + $0x1360] sm:$0xff]  ;;  %v1132_v31 = vld [vmem:[%s7544_s1 + $0x690] sm:$0xff]  ;;  %v867_v18 = vld [vmem:[%s4946_s13 + $0x1348] sm:$0xff] }
 0x1bd   : > { %v1913_v25 = vpop.f32.mrf.mxu0  ;;  %v2138_v46 = vpop.f32.mrf.mxu1  ;;  %2442 = vmatmul.mubr.f32.gmra.mxu0 %v804_v48  ;;  %2667 = vmatmul.mubr.f32.gmra.mxu1 %v806_v33  ;;  %v1166_v48 = vld [vmem:[%s7544_s1 + $0x7a0] sm:$0xff]  ;;  %v869_v38 = vld [vmem:[%s4946_s13 + $0x1358] sm:$0xff] }
 0x1be   : > { %v1914_v53 = vadd.f32 %v1913_v25, %v5694_v37  ;;  %2446 = vmatprep.mubr.f32.mxu0 %v826_v52  ;;  %2671 = vmatprep.mubr.f32.mxu1 %v828_v43  ;;  %v889_v25 = vld [vmem:[%s4946_s13 + $0x13f8] sm:$0xff] }
 0x1bf   : > { %v1915_v29 = vpop.f32.mrf.mxu0  ;;  %v2140_v61 = vpop.f32.mrf.mxu1  ;;  %2751 = vmatprep.subr.mxu0 %v4609_v2  ;;  %2972 = vmatprep.subr.mxu1 %v4609_v2 }
 0x1c0   : > { %v6159_v5 = vadd.f32 %v2138_v46, %v1914_v53  ;;  %2752 = vmatpush2.msra.mxu0 %v1134_v47  ;;  %2973 = vmatpush2.msra.mxu1 %v1168_v49  ;;  %v891_v46 = vld [vmem:[%s4946_s13 + $0x1408] sm:$0xff]  ;;  %v888_v29 = vld [vmem:[%s4946_s13 + $0x13f0] sm:$0xff]  ;;  %v890_v61 = vld [vmem:[%s4946_s13 + $0x1400] sm:$0xff] }
 0x1c1   : > { %v1918_v37 = vpop.f32.mrf.mxu0  ;;  %v2143_v8 = vpop.f32.mrf.mxu1  ;;  %2447 = vmatmul.mubr.f32.gmra.mxu0 %v825_v59  ;;  %2672 = vmatmul.mubr.f32.gmra.mxu1 %v827_v57  ;;  %v1131_v53 = vld [vmem:[%s7544_s1 + $0x688] sm:$0xff]  ;;  %v1165_v59 = vld [vmem:[%s7544_s1 + $0x798] sm:$0xff] }
 0x1c2   : > { %v1919_v12 = vadd.f32 %v1918_v37, %v5708_v50  ;;  %2451 = vmatprep.mubr.f32.mxu0 %v847_v0  ;;  %2676 = vmatprep.mubr.f32.mxu1 %v849_v3  ;;  %v910_v37 = vld [vmem:[%s4946_s13 + $0x14a0] sm:$0xff] }
 0x1c3   : > { %v1920_v40 = vpop.f32.mrf.mxu0  ;;  %v2145_v22 = vpop.f32.mrf.mxu1  ;;  %2753 = vmatprep.subr.mxu0 %v4609_v2  ;;  %2974 = vmatprep.subr.mxu1 %v4609_v2 }
 0x1c4   : > { %v6174_v28 = vadd.f32 %v2143_v8, %v1919_v12  ;;  %2754 = vmatpush2.msra.mxu0 %v1133_v10  ;;  %2975 = vmatpush2.msra.mxu1 %v1167_v11  ;;  %v912_v10 = vld [vmem:[%s4946_s13 + $0x14b0] sm:$0xff]  ;;  %v911_v40 = vld [vmem:[%s4946_s13 + $0x14a8] sm:$0xff] }
 0x1c5   : > { %v1923_v50 = vpop.f32.mrf.mxu0  ;;  %v2148_v30 = vpop.f32.mrf.mxu1  ;;  %2452 = vmatmul.mubr.f32.gmra.mxu0 %v846_v7  ;;  %2677 = vmatmul.mubr.f32.gmra.mxu1 %v848_v16  ;;  %v909_v16 = vld [vmem:[%s4946_s13 + $0x1498] sm:$0xff] }
 0x1c6   : > { %v1924_v33 = vadd.f32 %v1923_v50, %v5722_v63  ;;  %2456 = vmatprep.mubr.f32.mxu0 %v868_v13  ;;  %2681 = vmatprep.mubr.f32.mxu1 %v870_v24  ;;  %v1130_v24 = vld [vmem:[%s7544_s1 + $0x680] sm:$0xff] }
 0x1c7   : > { %v1925_v52 = vpop.f32.mrf.mxu0  ;;  %v2150_v43 = vpop.f32.mrf.mxu1  ;;  %2755 = vmatprep.subr.mxu0 %v4609_v2  ;;  %2976 = vmatprep.subr.mxu1 %v4609_v2 }
 0x1c8   : > { %v6189_v47 = vadd.f32 %v2148_v30, %v1924_v33  ;;  %2756 = vmatpush2.msra.mxu0 %v1132_v31  ;;  %2977 = vmatpush2.msra.mxu1 %v1166_v48  ;;  %v263_v30 = vld [vmem:[%s4946_s13 + $0x68] sm:$0xff]  ;;  %v1162_v33 = vld [vmem:[%s7544_s1 + $0x780] sm:$0xff]  ;;  %v264_v43 = vld [vmem:[%s4946_s13 + $0x70] sm:$0xff] }
 0x1c9   : > { %v1928_v63 = vpop.f32.mrf.mxu0  ;;  %v2153_v49 = vpop.f32.mrf.mxu1  ;;  %2457 = vmatmul.mubr.f32.gmra.mxu0 %v867_v18  ;;  %2682 = vmatmul.mubr.f32.gmra.mxu1 %v869_v38  ;;  %v265_v18 = vld [vmem:[%s4946_s13 + $0x78] sm:$0xff]  ;;  %v262_v52 = vld [vmem:[%s4946_s13 + $0x60] sm:$0xff] }
 0x1ca   : > { %v1929_v57 = vadd.f32 %v1928_v63, %v5736_v14  ;;  %2461 = vmatprep.mubr.f32.mxu0 %v889_v25  ;;  %2686 = vmatprep.mubr.f32.mxu1 %v891_v46  ;;  %v1164_v14 = vld [vmem:[%s7544_s1 + $0x790] sm:$0xff] }
 0x1cb   : > { %v1930_v0 = vpop.f32.mrf.mxu0  ;;  %v2155_v3 = vpop.f32.mrf.mxu1  ;;  %2757 = vmatprep.subr.mxu0 %v4609_v2  ;;  %2978 = vmatprep.subr.mxu1 %v4609_v2  ;;  %v284_v63 = vld [vmem:[%s4946_s13 + $0x110] sm:$0xff] }
 0x1cc   : > { %v6203_v8 = vadd.f32 %v2153_v49, %v1929_v57  ;;  %2758 = vmatpush2.msra.mxu0 %v1131_v53  ;;  %2979 = vmatpush2.msra.mxu1 %v1165_v59  ;;  %v286_v53 = vld [vmem:[%s4946_s13 + $0x120] sm:$0xff]  ;;  %v285_v0 = vld [vmem:[%s4946_s13 + $0x118] sm:$0xff] }
 0x1cd   : > { %v1933_v11 = vpop.f32.mrf.mxu0  ;;  %v2158_v12 = vpop.f32.mrf.mxu1  ;;  %2462 = vmatmul.mubr.f32.gmra.mxu0 %v888_v29  ;;  %2687 = vmatmul.mubr.f32.gmra.mxu1 %v890_v61  ;;  %v283_v61 = vld [vmem:[%s4946_s13 + $0x108] sm:$0xff] }
 0x1ce   : > { %v1934_v7 = vadd.f32 %v1933_v11, %v5747_v26  ;;  %2980 = vmatprep.subr.mxu1 %v4609_v2  ;;  %2466 = vmatprep.mubr.f32.mxu0 %v910_v37  ;;  %v1163_v26 = vld [vmem:[%s7544_s1 + $0x788] sm:$0xff] }
 0x1cf   : > { %v1935_v22 = vpop.f32.mrf.mxu0  ;;  %v2160_v13 = vpop.f32.mrf.mxu1  ;;  %2691 = vmatprep.mubr.f32.mxu1 %v912_v10  ;;  %2981 = vmatpush2.msra.mxu1 %v1164_v14  ;;  %v1192_v10 = vld [vmem:[%s7544_s1 + $0x870] sm:$0xff]  ;;  %v305_v14 = vld [vmem:[%s4946_s13 + $0x1b8] sm:$0xff] }
 0x1d0   : > { %v6219_v50 = vadd.f32 %v2158_v12, %v1934_v7  ;;  %2759 = vmatprep.subr.mxu0 %v4609_v2  ;;  %2982 = vmatprep.subr.mxu1 %v4609_v2  ;;  %v304_v13 = vld [vmem:[%s4946_s13 + $0x1b0] sm:$0xff] }
 0x1d1   : > { %v1938_v31 = vpop.f32.mrf.mxu0  ;;  %v2163_v48 = vpop.f32.mrf.mxu1  ;;  %2467 = vmatmul.mubr.f32.gmra.mxu0 %v909_v16  ;;  %2692 = vmatmul.mubr.f32.gmra.mxu1 %v911_v40  ;;  %v1191_v16 = vld [vmem:[%s7544_s1 + $0x868] sm:$0xff]  ;;  %v1225_v40 = vld [vmem:[%s7544_s1 + $0x978] sm:$0xff] }
 0x1d2   : > { %v1939_v38 = vadd.f32 %v1938_v31, %v5765_v41  ;;  %2760 = vmatpush2.msra.mxu0 %v1130_v24  ;;  %2983 = vmatpush2.msra.mxu1 %v1163_v26  ;;  %v1193_v41 = vld [vmem:[%s7544_s1 + $0x878] sm:$0xff]  ;;  %v306_v24 = vld [vmem:[%s4946_s13 + $0x1c0] sm:$0xff] }
 0x1d3   : > { %v1940_v25 = vpop.f32.mrf.mxu0  ;;  %v2165_v46 = vpop.f32.mrf.mxu1  ;;  %2984 = vmatprep.subr.mxu1 %v4609_v2  ;;  %2761 = vmatprep.mubr.f32.mxu0 %v263_v30  ;;  %v326_v31 = vld [vmem:[%s4946_s13 + $0x260] sm:$0xff] }
 0x1d4   : > { %v6233_v49 = vadd.f32 %v2163_v48, %v1939_v38  ;;  %2985 = vmatpush2.msra.mxu1 %v1162_v33  ;;  %2986 = vmatprep.mubr.f32.mxu1 %v265_v18  ;;  %v328_v48 = vld [vmem:[%s4946_s13 + $0x270] sm:$0xff]  ;;  %v1190_v38 = vld [vmem:[%s7544_s1 + $0x860] sm:$0xff]  ;;  %v325_v25 = vld [vmem:[%s4946_s13 + $0x258] sm:$0xff] }
 0x1d5   : > { %v1943_v59 = vpop.f32.mrf.mxu0  ;;  %v2168_v57 = vpop.f32.mrf.mxu1  ;;  %2762 = vmatmul.mubr.f32.vlgmr.msra.gmra.mxu0 %v262_v52  ;;  %2987 = vmatmul.mubr.f32.vlgmr.msra.gmra.mxu1 %v264_v43  ;;  %v1224_v52 = vld [vmem:[%s7544_s1 + $0x970] sm:$0xff]  ;;  %v327_v46 = vld [vmem:[%s4946_s13 + $0x268] sm:$0xff] }
 0x1d6   : > { %v1944_v29 = vadd.f32 %v1943_v59, %v5775_v54  ;;  %3147 = vmatprep.subr.mxu0 %v4609_v2  ;;  %2766 = vmatprep.mubr.f32.mxu0 %v284_v63  ;;  %v307_v54 = vld [vmem:[%s4946_s13 + $0x1c8] sm:$0xff]  ;;  %v349_v59 = vld [vmem:[%s4946_s13 + $0x318] sm:$0xff] }
 0x1d7   : > { %3148 = vmatpush1.msra.mxu0 %v1193_v41  ;;  %v1945_v3 = vpop.f32.mrf.mxu0  ;;  %v2170_v37 = vpop.f32.mrf.mxu1  ;;  %2991 = vmatprep.mubr.f32.mxu1 %v286_v53  ;;  %v347_v53 = vld [vmem:[%s4946_s13 + $0x308] sm:$0xff] }
 0x1d8   : > { %v6247_v11 = vadd.f32 %v2168_v57, %v1944_v29  ;;  %3149 = vmatprep.subr.mxu0 %v4609_v2  ;;  %3372 = vmatprep.subr.mxu1 %v4609_v2  ;;  %v346_v37 = vld [vmem:[%s4946_s13 + $0x300] sm:$0xff] }
 0x1d9   : > { %v1948_v12 = vpop.f32.mrf.mxu0  ;;  %v2173_v7 = vpop.f32.mrf.mxu1  ;;  %2767 = vmatmul.mubr.f32.gmra.mxu0 %v283_v61  ;;  %2992 = vmatmul.mubr.f32.gmra.mxu1 %v285_v0  ;;  %v1189_v61 = vld [vmem:[%s7544_s1 + $0x858] sm:$0xff]  ;;  %v1223_v0 = vld [vmem:[%s7544_s1 + $0x968] sm:$0xff] }
 0x1da   : > { %v1949_v22 = vadd.f32 %v1948_v12, %v5793_v6  ;;  %3150 = vmatpush1.msra.mxu0 %v1192_v10  ;;  %2771 = vmatprep.mubr.f32.mxu0 %v305_v14  ;;  %v348_v10 = vld [vmem:[%s4946_s13 + $0x310] sm:$0xff] }
 0x1db   : > { %v1950_v26 = vpop.f32.mrf.mxu0  ;;  %v2175_v30 = vpop.f32.mrf.mxu1  ;;  %2996 = vmatprep.mubr.f32.mxu1 %v307_v54  ;;  %3151 = vmatprep.subr.mxu0 %v4609_v2  ;;  %v368_v12 = vld [vmem:[%s4946_s13 + $0x3b0] sm:$0xff] }
 0x1dc   : > { %v6264_v33 = vadd.f32 %v2173_v7, %v1949_v22  ;;  %3152 = vmatpush1.msra.mxu0 %v1191_v16  ;;  %3373 = vmatpush1.msra.mxu1 %v1225_v40  ;;  %v370_v7 = vld [vmem:[%s4946_s13 + $0x3c0] sm:$0xff]  ;;  %v1188_v22 = vld [vmem:[%s7544_s1 + $0x850] sm:$0xff]  ;;  %v367_v26 = vld [vmem:[%s4946_s13 + $0x3a8] sm:$0xff] }
 0x1dd   : > { %v1953_v6 = vpop.f32.mrf.mxu0  ;;  %v2178_v18 = vpop.f32.mrf.mxu1  ;;  %2772 = vmatmul.mubr.f32.gmra.mxu0 %v304_v13  ;;  %2997 = vmatmul.mubr.f32.gmra.mxu1 %v306_v24  ;;  %v1222_v13 = vld [vmem:[%s7544_s1 + $0x960] sm:$0xff]  ;;  %v369_v30 = vld [vmem:[%s4946_s13 + $0x3b8] sm:$0xff] }
 0x1de   : > { %v1954_v43 = vadd.f32 %v1953_v6, %v5806_v21  ;;  %2776 = vmatprep.mubr.f32.mxu0 %v326_v31  ;;  %3001 = vmatprep.mubr.f32.mxu1 %v328_v48  ;;  %v389_v6 = vld [vmem:[%s4946_s13 + $0x458] sm:$0xff] }
 0x1df   : > { %v1955_v63 = vpop.f32.mrf.mxu0  ;;  %v2180_v41 = vpop.f32.mrf.mxu1  ;;  %3153 = vmatprep.subr.mxu0 %v4609_v2  ;;  %3374 = vmatprep.subr.mxu1 %v4609_v2 }
 0x1e0   : > { %v6279_v57 = vadd.f32 %v2178_v18, %v1954_v43  ;;  %3154 = vmatpush1.msra.mxu0 %v1190_v38  ;;  %3375 = vmatpush1.msra.mxu1 %v1224_v52  ;;  %v391_v18 = vld [vmem:[%s4946_s13 + $0x468] sm:$0xff]  ;;  %v388_v63 = vld [vmem:[%s4946_s13 + $0x450] sm:$0xff]  ;;  %v390_v41 = vld [vmem:[%s4946_s13 + $0x460] sm:$0xff] }
 0x1e1   : > { %v1958_v21 = vpop.f32.mrf.mxu0  ;;  %v2183_v29 = vpop.f32.mrf.mxu1  ;;  %2777 = vmatmul.mubr.f32.gmra.mxu0 %v325_v25  ;;  %3002 = vmatmul.mubr.f32.gmra.mxu1 %v327_v46  ;;  %v1187_v43 = vld [vmem:[%s7544_s1 + $0x848] sm:$0xff]  ;;  %v1221_v25 = vld [vmem:[%s7544_s1 + $0x958] sm:$0xff] }
 0x1e2   : > { %v1959_v3 = vadd.f32 %v1958_v21, %v5820_v35  ;;  %2781 = vmatprep.mubr.f32.mxu0 %v347_v53  ;;  %3006 = vmatprep.mubr.f32.mxu1 %v349_v59  ;;  %v410_v21 = vld [vmem:[%s4946_s13 + $0x500] sm:$0xff] }
 0x1e3   : > { %v1960_v14 = vpop.f32.mrf.mxu0  ;;  %v2185_v54 = vpop.f32.mrf.mxu1  ;;  %3155 = vmatprep.subr.mxu0 %v4609_v2  ;;  %3376 = vmatprep.subr.mxu1 %v4609_v2 }
 0x1e4   : > { %v6294_v16 = vadd.f32 %v2183_v29, %v1959_v3  ;;  %3156 = vmatpush1.msra.mxu0 %v1189_v61  ;;  %3377 = vmatpush1.msra.mxu1 %v1223_v0  ;;  %v412_v29 = vld [vmem:[%s4946_s13 + $0x510] sm:$0xff]  ;;  %v1186_v3 = vld [vmem:[%s7544_s1 + $0x840] sm:$0xff]  ;;  %v409_v14 = vld [vmem:[%s4946_s13 + $0x4f8] sm:$0xff] }
 0x1e5   : > { %v1963_v35 = vpop.f32.mrf.mxu0  ;;  %v2188_v40 = vpop.f32.mrf.mxu1  ;;  %2782 = vmatmul.mubr.f32.gmra.mxu0 %v346_v37  ;;  %3007 = vmatmul.mubr.f32.gmra.mxu1 %v348_v10  ;;  %v1220_v37 = vld [vmem:[%s7544_s1 + $0x950] sm:$0xff]  ;;  %v411_v54 = vld [vmem:[%s4946_s13 + $0x508] sm:$0xff] }
 0x1e6   : > { %v1964_v24 = vadd.f32 %v1963_v35, %v5834_v51  ;;  %2786 = vmatprep.mubr.f32.mxu0 %v368_v12  ;;  %3011 = vmatprep.mubr.f32.mxu1 %v370_v7  ;;  %v431_v35 = vld [vmem:[%s4946_s13 + $0x5a8] sm:$0xff] }
 0x1e7   : > { %v1965_v31 = vpop.f32.mrf.mxu0  ;;  %v2190_v48 = vpop.f32.mrf.mxu1  ;;  %3157 = vmatprep.subr.mxu0 %v4609_v2  ;;  %3378 = vmatprep.subr.mxu1 %v4609_v2 }
 0x1e8   : > { %v6309_v38 = vadd.f32 %v2188_v40, %v1964_v24  ;;  %3158 = vmatpush1.msra.mxu0 %v1188_v22  ;;  %3379 = vmatpush1.msra.mxu1 %v1222_v13  ;;  %v433_v40 = vld [vmem:[%s4946_s13 + $0x5b8] sm:$0xff]  ;;  %v430_v31 = vld [vmem:[%s4946_s13 + $0x5a0] sm:$0xff]  ;;  %v432_v48 = vld [vmem:[%s4946_s13 + $0x5b0] sm:$0xff] }
 0x1e9   : > { %v1968_v51 = vpop.f32.mrf.mxu0  ;;  %v2193_v52 = vpop.f32.mrf.mxu1  ;;  %2787 = vmatmul.mubr.f32.gmra.mxu0 %v367_v26  ;;  %3012 = vmatmul.mubr.f32.gmra.mxu1 %v369_v30  ;;  %v1185_v24 = vld [vmem:[%s7544_s1 + $0x838] sm:$0xff]  ;;  %v1219_v26 = vld [vmem:[%s7544_s1 + $0x948] sm:$0xff] }
 0x1ea   : > { %v1969_v46 = vadd.f32 %v1968_v51, %v5848_v4  ;;  %2791 = vmatprep.mubr.f32.mxu0 %v389_v6  ;;  %3016 = vmatprep.mubr.f32.mxu1 %v391_v18  ;;  %v452_v51 = vld [vmem:[%s4946_s13 + $0x650] sm:$0xff] }
 0x1eb   : > { %v1970_v53 = vpop.f32.mrf.mxu0  ;;  %v2195_v59 = vpop.f32.mrf.mxu1  ;;  %3159 = vmatprep.subr.mxu0 %v4609_v2  ;;  %3380 = vmatprep.subr.mxu1 %v4609_v2 }
 0x1ec   : > { %v6324_v61 = vadd.f32 %v2193_v52, %v1969_v46  ;;  %3160 = vmatpush1.msra.mxu0 %v1187_v43  ;;  %3381 = vmatpush1.msra.mxu1 %v1221_v25  ;;  %v454_v52 = vld [vmem:[%s4946_s13 + $0x660] sm:$0xff]  ;;  %v1184_v46 = vld [vmem:[%s7544_s1 + $0x830] sm:$0xff]  ;;  %v451_v53 = vld [vmem:[%s4946_s13 + $0x648] sm:$0xff] }
 0x1ed   : > { %v1973_v4 = vpop.f32.mrf.mxu0  ;;  %v2198_v0 = vpop.f32.mrf.mxu1  ;;  %2792 = vmatmul.mubr.f32.gmra.mxu0 %v388_v63  ;;  %3017 = vmatmul.mubr.f32.gmra.mxu1 %v390_v41  ;;  %v1218_v63 = vld [vmem:[%s7544_s1 + $0x940] sm:$0xff]  ;;  %v453_v59 = vld [vmem:[%s4946_s13 + $0x658] sm:$0xff] }
 0x1ee   : > { %v1974_v10 = vadd.f32 %v1973_v4, %v5862_v20  ;;  %2796 = vmatprep.mubr.f32.mxu0 %v410_v21  ;;  %3021 = vmatprep.mubr.f32.mxu1 %v412_v29  ;;  %v473_v4 = vld [vmem:[%s4946_s13 + $0x6f8] sm:$0xff] }
 0x1ef   : > { %v1975_v12 = vpop.f32.mrf.mxu0  ;;  %v2200_v7 = vpop.f32.mrf.mxu1  ;;  %3161 = vmatprep.subr.mxu0 %v4609_v2  ;;  %3382 = vmatprep.subr.mxu1 %v4609_v2 }
 0x1f0   : > { %v6339_v22 = vadd.f32 %v2198_v0, %v1974_v10  ;;  %3162 = vmatpush1.msra.mxu0 %v1186_v3  ;;  %3383 = vmatpush1.msra.mxu1 %v1220_v37  ;;  %v475_v0 = vld [vmem:[%s4946_s13 + $0x708] sm:$0xff]  ;;  %v472_v12 = vld [vmem:[%s4946_s13 + $0x6f0] sm:$0xff]  ;;  %v474_v7 = vld [vmem:[%s4946_s13 + $0x700] sm:$0xff] }
 0x1f1   : > { %v1978_v20 = vpop.f32.mrf.mxu0  ;;  %v2203_v13 = vpop.f32.mrf.mxu1  ;;  %2797 = vmatmul.mubr.f32.gmra.mxu0 %v409_v14  ;;  %3022 = vmatmul.mubr.f32.gmra.mxu1 %v411_v54  ;;  %v1183_v10 = vld [vmem:[%s7544_s1 + $0x828] sm:$0xff]  ;;  %v1217_v14 = vld [vmem:[%s7544_s1 + $0x938] sm:$0xff] }
 0x1f2   : > { %v1979_v30 = vadd.f32 %v1978_v20, %v5876_v36  ;;  %2801 = vmatprep.mubr.f32.mxu0 %v431_v35  ;;  %3026 = vmatprep.mubr.f32.mxu1 %v433_v40  ;;  %v494_v20 = vld [vmem:[%s4946_s13 + $0x7a0] sm:$0xff] }
 0x1f3   : > { %v1980_v6 = vpop.f32.mrf.mxu0  ;;  %v2205_v18 = vpop.f32.mrf.mxu1  ;;  %3163 = vmatprep.subr.mxu0 %v4609_v2  ;;  %3384 = vmatprep.subr.mxu1 %v4609_v2 }
 0x1f4   : > { %v6354_v43 = vadd.f32 %v2203_v13, %v1979_v30  ;;  %3164 = vmatpush1.msra.mxu0 %v1185_v24  ;;  %3385 = vmatpush1.msra.mxu1 %v1219_v26  ;;  %v496_v13 = vld [vmem:[%s4946_s13 + $0x7b0] sm:$0xff]  ;;  %v1182_v30 = vld [vmem:[%s7544_s1 + $0x820] sm:$0xff]  ;;  %v493_v6 = vld [vmem:[%s4946_s13 + $0x798] sm:$0xff] }
 0x1f5   : > { %v1983_v36 = vpop.f32.mrf.mxu0  ;;  %v2208_v25 = vpop.f32.mrf.mxu1  ;;  %2802 = vmatmul.mubr.f32.gmra.mxu0 %v430_v31  ;;  %3027 = vmatmul.mubr.f32.gmra.mxu1 %v432_v48  ;;  %v1216_v31 = vld [vmem:[%s7544_s1 + $0x930] sm:$0xff]  ;;  %v495_v18 = vld [vmem:[%s4946_s13 + $0x7a8] sm:$0xff] }
 0x1f6   : > { %v1984_v41 = vadd.f32 %v1983_v36, %v5890_v55  ;;  %2806 = vmatprep.mubr.f32.mxu0 %v452_v51  ;;  %3031 = vmatprep.mubr.f32.mxu1 %v454_v52  ;;  %v515_v36 = vld [vmem:[%s4946_s13 + $0x848] sm:$0xff] }
 0x1f7   : > { %v1985_v21 = vpop.f32.mrf.mxu0  ;;  %v2210_v29 = vpop.f32.mrf.mxu1  ;;  %3165 = vmatprep.subr.mxu0 %v4609_v2  ;;  %3386 = vmatprep.subr.mxu1 %v4609_v2 }
 0x1f8   : > { %v6369_v3 = vadd.f32 %v2208_v25, %v1984_v41  ;;  %3166 = vmatpush1.msra.mxu0 %v1184_v46  ;;  %3387 = vmatpush1.msra.mxu1 %v1218_v63  ;;  %v517_v25 = vld [vmem:[%s4946_s13 + $0x858] sm:$0xff]  ;;  %v514_v21 = vld [vmem:[%s4946_s13 + $0x840] sm:$0xff]  ;;  %v516_v29 = vld [vmem:[%s4946_s13 + $0x850] sm:$0xff] }
 0x1f9   : > { %v1988_v55 = vpop.f32.mrf.mxu0  ;;  %v2213_v37 = vpop.f32.mrf.mxu1  ;;  %2807 = vmatmul.mubr.f32.gmra.mxu0 %v451_v53  ;;  %3032 = vmatmul.mubr.f32.gmra.mxu1 %v453_v59  ;;  %v1181_v41 = vld [vmem:[%s7544_s1 + $0x818] sm:$0xff]  ;;  %v1215_v53 = vld [vmem:[%s7544_s1 + $0x928] sm:$0xff] }
 0x1fa   : > { %v1989_v54 = vadd.f32 %v1988_v55, %v5904_v9  ;;  %2811 = vmatprep.mubr.f32.mxu0 %v473_v4  ;;  %3036 = vmatprep.mubr.f32.mxu1 %v475_v0  ;;  %v536_v55 = vld [vmem:[%s4946_s13 + $0x8f0] sm:$0xff] }
 0x1fb   : > { %v1990_v35 = vpop.f32.mrf.mxu0  ;;  %v2215_v40 = vpop.f32.mrf.mxu1  ;;  %3167 = vmatprep.subr.mxu0 %v4609_v2  ;;  %3388 = vmatprep.subr.mxu1 %v4609_v2 }
 0x1fc   : > { %v6384_v24 = vadd.f32 %v2213_v37, %v1989_v54  ;;  %3168 = vmatpush1.msra.mxu0 %v1183_v10  ;;  %3389 = vmatpush1.msra.mxu1 %v1217_v14  ;;  %v538_v37 = vld [vmem:[%s4946_s13 + $0x900] sm:$0xff]  ;;  %v1180_v54 = vld [vmem:[%s7544_s1 + $0x810] sm:$0xff]  ;;  %v535_v35 = vld [vmem:[%s4946_s13 + $0x8e8] sm:$0xff] }
 0x1fd   : > { %v1993_v9 = vpop.f32.mrf.mxu0  ;;  %v2218_v26 = vpop.f32.mrf.mxu1  ;;  %2812 = vmatmul.mubr.f32.gmra.mxu0 %v472_v12  ;;  %3037 = vmatmul.mubr.f32.gmra.mxu1 %v474_v7  ;;  %v1214_v12 = vld [vmem:[%s7544_s1 + $0x920] sm:$0xff]  ;;  %v537_v40 = vld [vmem:[%s4946_s13 + $0x8f8] sm:$0xff] }
 0x1fe   : > { %v1994_v48 = vadd.f32 %v1993_v9, %v5918_v27  ;;  %2816 = vmatprep.mubr.f32.mxu0 %v494_v20  ;;  %3041 = vmatprep.mubr.f32.mxu1 %v496_v13  ;;  %v557_v9 = vld [vmem:[%s4946_s13 + $0x998] sm:$0xff] }
 0x1ff   : > { %v1995_v51 = vpop.f32.mrf.mxu0  ;;  %v2220_v52 = vpop.f32.mrf.mxu1  ;;  %3169 = vmatprep.subr.mxu0 %v4609_v2  ;;  %3390 = vmatprep.subr.mxu1 %v4609_v2 }
 0x200   : > { %v6399_v46 = vadd.f32 %v2218_v26, %v1994_v48  ;;  %3170 = vmatpush1.msra.mxu0 %v1182_v30  ;;  %3391 = vmatpush1.msra.mxu1 %v1216_v31  ;;  %v559_v26 = vld [vmem:[%s4946_s13 + $0x9a8] sm:$0xff]  ;;  %v556_v51 = vld [vmem:[%s4946_s13 + $0x990] sm:$0xff]  ;;  %v558_v52 = vld [vmem:[%s4946_s13 + $0x9a0] sm:$0xff] }
 0x201   : > { %v1998_v27 = vpop.f32.mrf.mxu0  ;;  %v2223_v63 = vpop.f32.mrf.mxu1  ;;  %2817 = vmatmul.mubr.f32.gmra.mxu0 %v493_v6  ;;  %3042 = vmatmul.mubr.f32.gmra.mxu1 %v495_v18  ;;  %v1179_v48 = vld [vmem:[%s7544_s1 + $0x808] sm:$0xff]  ;;  %v1213_v6 = vld [vmem:[%s7544_s1 + $0x918] sm:$0xff] }
 0x202   : > { %v1999_v59 = vadd.f32 %v1998_v27, %v5932_v44  ;;  %2821 = vmatprep.mubr.f32.mxu0 %v515_v36  ;;  %3046 = vmatprep.mubr.f32.mxu1 %v517_v25  ;;  %v578_v27 = vld [vmem:[%s4946_s13 + $0xa40] sm:$0xff] }
 0x203   : > { %v2000_v4 = vpop.f32.mrf.mxu0  ;;  %v2225_v0 = vpop.f32.mrf.mxu1  ;;  %3171 = vmatprep.subr.mxu0 %v4609_v2  ;;  %3392 = vmatprep.subr.mxu1 %v4609_v2 }
 0x204   : > { %v6414_v10 = vadd.f32 %v2223_v63, %v1999_v59  ;;  %3172 = vmatpush1.msra.mxu0 %v1181_v41  ;;  %3393 = vmatpush1.msra.mxu1 %v1215_v53  ;;  %v580_v63 = vld [vmem:[%s4946_s13 + $0xa50] sm:$0xff]  ;;  %v1178_v59 = vld [vmem:[%s7544_s1 + $0x800] sm:$0xff]  ;;  %v577_v4 = vld [vmem:[%s4946_s13 + $0xa38] sm:$0xff] }
 0x205   : > { %v2003_v44 = vpop.f32.mrf.mxu0  ;;  %v2228_v14 = vpop.f32.mrf.mxu1  ;;  %2822 = vmatmul.mubr.f32.gmra.mxu0 %v514_v21  ;;  %3047 = vmatmul.mubr.f32.gmra.mxu1 %v516_v29  ;;  %v1212_v21 = vld [vmem:[%s7544_s1 + $0x910] sm:$0xff]  ;;  %v579_v0 = vld [vmem:[%s4946_s13 + $0xa48] sm:$0xff] }
 0x206   : > { %v2004_v7 = vadd.f32 %v2003_v44, %v5946_v62  ;;  %2826 = vmatprep.mubr.f32.mxu0 %v536_v55  ;;  %3051 = vmatprep.mubr.f32.mxu1 %v538_v37  ;;  %v599_v44 = vld [vmem:[%s4946_s13 + $0xae8] sm:$0xff] }
 0x207   : > { %v2005_v20 = vpop.f32.mrf.mxu0  ;;  %v2230_v13 = vpop.f32.mrf.mxu1  ;;  %3173 = vmatprep.subr.mxu0 %v4609_v2  ;;  %3394 = vmatprep.subr.mxu1 %v4609_v2 }
 0x208   : > { %v6429_v30 = vadd.f32 %v2228_v14, %v2004_v7  ;;  %3174 = vmatpush1.msra.mxu0 %v1180_v54  ;;  %3395 = vmatpush1.msra.mxu1 %v1214_v12  ;;  %v601_v14 = vld [vmem:[%s4946_s13 + $0xaf8] sm:$0xff]  ;;  %v598_v20 = vld [vmem:[%s4946_s13 + $0xae0] sm:$0xff]  ;;  %v600_v13 = vld [vmem:[%s4946_s13 + $0xaf0] sm:$0xff] }
 0x209   : > { %v2008_v62 = vpop.f32.mrf.mxu0  ;;  %v2233_v31 = vpop.f32.mrf.mxu1  ;;  %2827 = vmatmul.mubr.f32.gmra.mxu0 %v535_v35  ;;  %3052 = vmatmul.mubr.f32.gmra.mxu1 %v537_v40  ;;  %v1209_v7 = vld [vmem:[%s7544_s1 + $0x8f8] sm:$0xff]  ;;  %v1211_v35 = vld [vmem:[%s7544_s1 + $0x908] sm:$0xff] }
 0x20a   : > { %v2009_v18 = vadd.f32 %v2008_v62, %v5960_v19  ;;  %2831 = vmatprep.mubr.f32.mxu0 %v557_v9  ;;  %3056 = vmatprep.mubr.f32.mxu1 %v559_v26  ;;  %v620_v62 = vld [vmem:[%s4946_s13 + $0xb90] sm:$0xff] }
 0x20b   : > { %v2010_v36 = vpop.f32.mrf.mxu0  ;;  %v2235_v25 = vpop.f32.mrf.mxu1  ;;  %3175 = vmatprep.subr.mxu0 %v4609_v2  ;;  %3396 = vmatprep.subr.mxu1 %v4609_v2 }
 0x20c   : > { %v6444_v41 = vadd.f32 %v2233_v31, %v2009_v18  ;;  %3176 = vmatpush1.msra.mxu0 %v1179_v48  ;;  %3397 = vmatpush1.msra.mxu1 %v1213_v6  ;;  %v622_v31 = vld [vmem:[%s4946_s13 + $0xba0] sm:$0xff]  ;;  %v1208_v18 = vld [vmem:[%s7544_s1 + $0x8f0] sm:$0xff]  ;;  %v619_v36 = vld [vmem:[%s4946_s13 + $0xb88] sm:$0xff] }
 0x20d   : > { %v2013_v19 = vpop.f32.mrf.mxu0  ;;  %v2238_v53 = vpop.f32.mrf.mxu1  ;;  %2832 = vmatmul.mubr.f32.gmra.mxu0 %v556_v51  ;;  %3057 = vmatmul.mubr.f32.gmra.mxu1 %v558_v52  ;;  %v1210_v51 = vld [vmem:[%s7544_s1 + $0x900] sm:$0xff]  ;;  %v621_v25 = vld [vmem:[%s4946_s13 + $0xb98] sm:$0xff] }
 0x20e   : > { %v2014_v29 = vadd.f32 %v2013_v19, %v5974_v39  ;;  %2836 = vmatprep.mubr.f32.mxu0 %v578_v27  ;;  %3061 = vmatprep.mubr.f32.mxu1 %v580_v63  ;;  %v641_v19 = vld [vmem:[%s4946_s13 + $0xc38] sm:$0xff] }
 0x20f   : > { %v2015_v55 = vpop.f32.mrf.mxu0  ;;  %v2240_v37 = vpop.f32.mrf.mxu1  ;;  %3177 = vmatprep.subr.mxu0 %v4609_v2  ;;  %3398 = vmatprep.subr.mxu1 %v4609_v2 }
 0x210   : > { %v6459_v54 = vadd.f32 %v2238_v53, %v2014_v29  ;;  %3178 = vmatpush1.msra.mxu0 %v1178_v59  ;;  %3399 = vmatpush1.msra.mxu1 %v1212_v21  ;;  %v643_v53 = vld [vmem:[%s4946_s13 + $0xc48] sm:$0xff]  ;;  %v640_v55 = vld [vmem:[%s4946_s13 + $0xc30] sm:$0xff]  ;;  %v642_v37 = vld [vmem:[%s4946_s13 + $0xc40] sm:$0xff] }
 0x211   : > { %v2018_v39 = vpop.f32.mrf.mxu0  ;;  %v2243_v12 = vpop.f32.mrf.mxu1  ;;  %2837 = vmatmul.mubr.f32.gmra.mxu0 %v577_v4  ;;  %3062 = vmatmul.mubr.f32.gmra.mxu1 %v579_v0  ;;  %v1207_v29 = vld [vmem:[%s7544_s1 + $0x8e8] sm:$0xff]  ;;  %v1241_v4 = vld [vmem:[%s7544_s1 + $0x9f8] sm:$0xff] }
 0x212   : > { %v2019_v40 = vadd.f32 %v2018_v39, %v5988_v60  ;;  %2841 = vmatprep.mubr.f32.mxu0 %v599_v44  ;;  %3066 = vmatprep.mubr.f32.mxu1 %v601_v14  ;;  %v662_v39 = vld [vmem:[%s4946_s13 + $0xce0] sm:$0xff] }
 0x213   : > { %v2020_v9 = vpop.f32.mrf.mxu0  ;;  %v2245_v26 = vpop.f32.mrf.mxu1  ;;  %3179 = vmatprep.subr.mxu0 %v4609_v2  ;;  %3400 = vmatprep.subr.mxu1 %v4609_v2 }
 0x214   : > { %v6474_v48 = vadd.f32 %v2243_v12, %v2019_v40  ;;  %3180 = vmatpush2.msra.mxu0 %v1209_v7  ;;  %3401 = vmatpush1.msra.mxu1 %v1211_v35  ;;  %v664_v12 = vld [vmem:[%s4946_s13 + $0xcf0] sm:$0xff]  ;;  %v1206_v40 = vld [vmem:[%s7544_s1 + $0x8e0] sm:$0xff]  ;;  %v661_v9 = vld [vmem:[%s4946_s13 + $0xcd8] sm:$0xff] }
 0x215   : > { %v2313_v60 = vpop.f32.mrf.mxu0  ;;  %v2538_v6 = vpop.f32.mrf.mxu1  ;;  %2842 = vmatmul.mubr.f32.gmra.mxu0 %v598_v20  ;;  %3067 = vmatmul.mubr.f32.gmra.mxu1 %v600_v13  ;;  %v1240_v20 = vld [vmem:[%s7544_s1 + $0x9f0] sm:$0xff]  ;;  %v663_v26 = vld [vmem:[%s4946_s13 + $0xce8] sm:$0xff] }
 0x216   : > { %v2314_v52 = vadd.f32 %v2313_v60, %v6009_v32  ;;  %2846 = vmatprep.mubr.f32.mxu0 %v620_v62  ;;  %3071 = vmatprep.mubr.f32.mxu1 %v622_v31  ;;  %v683_v60 = vld [vmem:[%s4946_s13 + $0xd88] sm:$0xff] }
 0x217   : > { %v2315_v27 = vpop.f32.mrf.mxu0  ;;  %v2540_v63 = vpop.f32.mrf.mxu1  ;;  %3181 = vmatprep.subr.mxu0 %v4609_v2  ;;  %3402 = vmatprep.subr.mxu1 %v4609_v2 }
 0x218   : > { %v6489_v59 = vadd.f32 %v2538_v6, %v2314_v52  ;;  %3182 = vmatpush2.msra.mxu0 %v1208_v18  ;;  %3403 = vmatpush1.msra.mxu1 %v1210_v51  ;;  %v685_v6 = vld [vmem:[%s4946_s13 + $0xd98] sm:$0xff]  ;;  %v682_v27 = vld [vmem:[%s4946_s13 + $0xd80] sm:$0xff]  ;;  %v684_v63 = vld [vmem:[%s4946_s13 + $0xd90] sm:$0xff] }
 0x219   : > { %v2318_v32 = vpop.f32.mrf.mxu0  ;;  %v2543_v21 = vpop.f32.mrf.mxu1  ;;  %2847 = vmatmul.mubr.f32.gmra.mxu0 %v619_v36  ;;  %3072 = vmatmul.mubr.f32.gmra.mxu1 %v621_v25  ;;  %v1205_v52 = vld [vmem:[%s7544_s1 + $0x8d8] sm:$0xff]  ;;  %v1239_v36 = vld [vmem:[%s7544_s1 + $0x9e8] sm:$0xff] }
 0x21a   : > { %v2319_v0 = vadd.f32 %v2318_v32, %v6024_v56  ;;  %2851 = vmatprep.mubr.f32.mxu0 %v641_v19  ;;  %3076 = vmatprep.mubr.f32.mxu1 %v643_v53  ;;  %v704_v32 = vld [vmem:[%s4946_s13 + $0xe30] sm:$0xff] }
 0x21b   : > { %v2320_v44 = vpop.f32.mrf.mxu0  ;;  %v2545_v14 = vpop.f32.mrf.mxu1  ;;  %3183 = vmatprep.subr.mxu0 %v4609_v2  ;;  %3404 = vmatprep.subr.mxu1 %v4609_v2 }
 0x21c   : > { %v6504_v7 = vadd.f32 %v2543_v21, %v2319_v0  ;;  %3184 = vmatpush2.msra.mxu0 %v1207_v29  ;;  %3405 = vmatpush2.msra.mxu1 %v1241_v4  ;;  %v706_v21 = vld [vmem:[%s4946_s13 + $0xe40] sm:$0xff]  ;;  %v1204_v0 = vld [vmem:[%s7544_s1 + $0x8d0] sm:$0xff]  ;;  %v703_v44 = vld [vmem:[%s4946_s13 + $0xe28] sm:$0xff] }
 0x21d   : > { %v2323_v56 = vpop.f32.mrf.mxu0  ;;  %v2548_v35 = vpop.f32.mrf.mxu1  ;;  %2852 = vmatmul.mubr.f32.gmra.mxu0 %v640_v55  ;;  %3077 = vmatmul.mubr.f32.gmra.mxu1 %v642_v37  ;;  %v1238_v55 = vld [vmem:[%s7544_s1 + $0x9e0] sm:$0xff]  ;;  %v705_v14 = vld [vmem:[%s4946_s13 + $0xe38] sm:$0xff] }
 0x21e   : > { %v2324_v13 = vadd.f32 %v2323_v56, %v6039_v15  ;;  %2856 = vmatprep.mubr.f32.mxu0 %v662_v39  ;;  %3081 = vmatprep.mubr.f32.mxu1 %v664_v12  ;;  %v725_v56 = vld [vmem:[%s4946_s13 + $0xed8] sm:$0xff] }
 0x21f   : > { %v2325_v62 = vpop.f32.mrf.mxu0  ;;  %v2550_v31 = vpop.f32.mrf.mxu1  ;;  %3185 = vmatprep.subr.mxu0 %v4609_v2  ;;  %3406 = vmatprep.subr.mxu1 %v4609_v2 }
 0x220   : > { %v6519_v18 = vadd.f32 %v2548_v35, %v2324_v13  ;;  %3186 = vmatpush2.msra.mxu0 %v1206_v40  ;;  %3407 = vmatpush2.msra.mxu1 %v1240_v20  ;;  %v727_v35 = vld [vmem:[%s4946_s13 + $0xee8] sm:$0xff]  ;;  %v724_v62 = vld [vmem:[%s4946_s13 + $0xed0] sm:$0xff]  ;;  %v726_v31 = vld [vmem:[%s4946_s13 + $0xee0] sm:$0xff] }
 0x221   : > { %v2328_v15 = vpop.f32.mrf.mxu0  ;;  %v2553_v51 = vpop.f32.mrf.mxu1  ;;  %2857 = vmatmul.mubr.f32.gmra.mxu0 %v661_v9  ;;  %3082 = vmatmul.mubr.f32.gmra.mxu1 %v663_v26  ;;  %v1203_v13 = vld [vmem:[%s7544_s1 + $0x8c8] sm:$0xff]  ;;  %v1237_v9 = vld [vmem:[%s7544_s1 + $0x9d8] sm:$0xff] }
 0x222   : > { %v2329_v25 = vadd.f32 %v2328_v15, %v6054_v34  ;;  %2861 = vmatprep.mubr.f32.mxu0 %v683_v60  ;;  %3086 = vmatprep.mubr.f32.mxu1 %v685_v6  ;;  %v746_v15 = vld [vmem:[%s4946_s13 + $0xf80] sm:$0xff] }
 0x223   : > { %v2330_v19 = vpop.f32.mrf.mxu0  ;;  %v2555_v53 = vpop.f32.mrf.mxu1  ;;  %3187 = vmatprep.subr.mxu0 %v4609_v2  ;;  %3408 = vmatprep.subr.mxu1 %v4609_v2 }
 0x224   : > { %v6534_v29 = vadd.f32 %v2553_v51, %v2329_v25  ;;  %3188 = vmatpush2.msra.mxu0 %v1205_v52  ;;  %3409 = vmatpush2.msra.mxu1 %v1239_v36  ;;  %v748_v51 = vld [vmem:[%s4946_s13 + $0xf90] sm:$0xff]  ;;  %v1202_v25 = vld [vmem:[%s7544_s1 + $0x8c0] sm:$0xff]  ;;  %v745_v19 = vld [vmem:[%s4946_s13 + $0xf78] sm:$0xff] }
 0x225   : > { %v2333_v34 = vpop.f32.mrf.mxu0  ;;  %v2558_v4 = vpop.f32.mrf.mxu1  ;;  %2862 = vmatmul.mubr.f32.gmra.mxu0 %v682_v27  ;;  %3087 = vmatmul.mubr.f32.gmra.mxu1 %v684_v63  ;;  %v1236_v27 = vld [vmem:[%s7544_s1 + $0x9d0] sm:$0xff]  ;;  %v747_v53 = vld [vmem:[%s4946_s13 + $0xf88] sm:$0xff] }
 0x226   : > { %v2334_v37 = vadd.f32 %v2333_v34, %v6069_v58  ;;  %2866 = vmatprep.mubr.f32.mxu0 %v704_v32  ;;  %3091 = vmatprep.mubr.f32.mxu1 %v706_v21  ;;  %v767_v34 = vld [vmem:[%s4946_s13 + $0x1028] sm:$0xff] }
 0x227   : > { %v2335_v39 = vpop.f32.mrf.mxu0  ;;  %v2560_v12 = vpop.f32.mrf.mxu1  ;;  %3189 = vmatprep.subr.mxu0 %v4609_v2  ;;  %3410 = vmatprep.subr.mxu1 %v4609_v2 }
 0x228   : > { %v6549_v40 = vadd.f32 %v2558_v4, %v2334_v37  ;;  %3190 = vmatpush2.msra.mxu0 %v1204_v0  ;;  %3411 = vmatpush2.msra.mxu1 %v1238_v55  ;;  %v769_v4 = vld [vmem:[%s4946_s13 + $0x1038] sm:$0xff]  ;;  %v766_v39 = vld [vmem:[%s4946_s13 + $0x1020] sm:$0xff]  ;;  %v768_v12 = vld [vmem:[%s4946_s13 + $0x1030] sm:$0xff] }
 0x229   : > { %v2338_v58 = vpop.f32.mrf.mxu0  ;;  %v2563_v20 = vpop.f32.mrf.mxu1  ;;  %2867 = vmatmul.mubr.f32.gmra.mxu0 %v703_v44  ;;  %3092 = vmatmul.mubr.f32.gmra.mxu1 %v705_v14  ;;  %v1201_v37 = vld [vmem:[%s7544_s1 + $0x8b8] sm:$0xff]  ;;  %v1235_v44 = vld [vmem:[%s7544_s1 + $0x9c8] sm:$0xff] }
 0x22a   : > { %v2339_v26 = vadd.f32 %v2338_v58, %v6084_v17  ;;  %2871 = vmatprep.mubr.f32.mxu0 %v725_v56  ;;  %3096 = vmatprep.mubr.f32.mxu1 %v727_v35  ;;  %v788_v58 = vld [vmem:[%s4946_s13 + $0x10d0] sm:$0xff] }
 0x22b   : > { %v2340_v60 = vpop.f32.mrf.mxu0  ;;  %v2565_v6 = vpop.f32.mrf.mxu1  ;;  %3191 = vmatprep.subr.mxu0 %v4609_v2  ;;  %3412 = vmatprep.subr.mxu1 %v4609_v2 }
 0x22c   : > { %v6564_v52 = vadd.f32 %v2563_v20, %v2339_v26  ;;  %3192 = vmatpush2.msra.mxu0 %v1203_v13  ;;  %3413 = vmatpush2.msra.mxu1 %v1237_v9  ;;  %v790_v20 = vld [vmem:[%s4946_s13 + $0x10e0] sm:$0xff]  ;;  %v1200_v26 = vld [vmem:[%s7544_s1 + $0x8b0] sm:$0xff]  ;;  %v787_v60 = vld [vmem:[%s4946_s13 + $0x10c8] sm:$0xff] }
 0x22d   : > { %v2343_v17 = vpop.f32.mrf.mxu0  ;;  %v2568_v36 = vpop.f32.mrf.mxu1  ;;  %2872 = vmatmul.mubr.f32.gmra.mxu0 %v724_v62  ;;  %3097 = vmatmul.mubr.f32.gmra.mxu1 %v726_v31  ;;  %v1234_v62 = vld [vmem:[%s7544_s1 + $0x9c0] sm:$0xff]  ;;  %v789_v6 = vld [vmem:[%s4946_s13 + $0x10d8] sm:$0xff] }
 0x22e   : > { %v2344_v63 = vadd.f32 %v2343_v17, %v6099_v42  ;;  %2876 = vmatprep.mubr.f32.mxu0 %v746_v15  ;;  %3101 = vmatprep.mubr.f32.mxu1 %v748_v51  ;;  %v809_v17 = vld [vmem:[%s4946_s13 + $0x1178] sm:$0xff] }
 0x22f   : > { %v2345_v32 = vpop.f32.mrf.mxu0  ;;  %v2570_v21 = vpop.f32.mrf.mxu1  ;;  %3193 = vmatprep.subr.mxu0 %v4609_v2  ;;  %3414 = vmatprep.subr.mxu1 %v4609_v2 }
 0x230   : > { %v6579_v0 = vadd.f32 %v2568_v36, %v2344_v63  ;;  %3194 = vmatpush2.msra.mxu0 %v1202_v25  ;;  %3415 = vmatpush2.msra.mxu1 %v1236_v27  ;;  %v811_v36 = vld [vmem:[%s4946_s13 + $0x1188] sm:$0xff]  ;;  %v808_v32 = vld [vmem:[%s4946_s13 + $0x1170] sm:$0xff]  ;;  %v810_v21 = vld [vmem:[%s4946_s13 + $0x1180] sm:$0xff] }
 0x231   : > { %v2348_v42 = vpop.f32.mrf.mxu0  ;;  %v2573_v55 = vpop.f32.mrf.mxu1  ;;  %2877 = vmatmul.mubr.f32.gmra.mxu0 %v745_v19  ;;  %3102 = vmatmul.mubr.f32.gmra.mxu1 %v747_v53  ;;  %v1199_v63 = vld [vmem:[%s7544_s1 + $0x8a8] sm:$0xff]  ;;  %v1233_v19 = vld [vmem:[%s7544_s1 + $0x9b8] sm:$0xff] }
 0x232   : > { %v2349_v14 = vadd.f32 %v2348_v42, %v6114_v1  ;;  %2881 = vmatprep.mubr.f32.mxu0 %v767_v34  ;;  %3106 = vmatprep.mubr.f32.mxu1 %v769_v4  ;;  %v830_v42 = vld [vmem:[%s4946_s13 + $0x1220] sm:$0xff] }
 0x233   : > { %v2350_v56 = vpop.f32.mrf.mxu0  ;;  %v2575_v35 = vpop.f32.mrf.mxu1  ;;  %3195 = vmatprep.subr.mxu0 %v4609_v2  ;;  %3416 = vmatprep.subr.mxu1 %v4609_v2 }
 0x234   : > { %v6594_v13 = vadd.f32 %v2573_v55, %v2349_v14  ;;  %3196 = vmatpush2.msra.mxu0 %v1201_v37  ;;  %3417 = vmatpush2.msra.mxu1 %v1235_v44  ;;  %v832_v55 = vld [vmem:[%s4946_s13 + $0x1230] sm:$0xff]  ;;  %v1198_v14 = vld [vmem:[%s7544_s1 + $0x8a0] sm:$0xff]  ;;  %v829_v56 = vld [vmem:[%s4946_s13 + $0x1218] sm:$0xff] }
 0x235   : > { %v2353_v1 = vpop.f32.mrf.mxu0  ;;  %v2578_v9 = vpop.f32.mrf.mxu1  ;;  %2882 = vmatmul.mubr.f32.gmra.mxu0 %v766_v39  ;;  %3107 = vmatmul.mubr.f32.gmra.mxu1 %v768_v12  ;;  %v1232_v39 = vld [vmem:[%s7544_s1 + $0x9b0] sm:$0xff]  ;;  %v831_v35 = vld [vmem:[%s4946_s13 + $0x1228] sm:$0xff] }
 0x236   : > { %v2354_v31 = vadd.f32 %v2353_v1, %v6129_v23  ;;  %2886 = vmatprep.mubr.f32.mxu0 %v788_v58  ;;  %3111 = vmatprep.mubr.f32.mxu1 %v790_v20  ;;  %v851_v1 = vld [vmem:[%s4946_s13 + $0x12c8] sm:$0xff] }
 0x237   : > { %v2355_v15 = vpop.f32.mrf.mxu0  ;;  %v2580_v51 = vpop.f32.mrf.mxu1  ;;  %3197 = vmatprep.subr.mxu0 %v4609_v2  ;;  %3418 = vmatprep.subr.mxu1 %v4609_v2 }
 0x238   : > { %v6609_v25 = vadd.f32 %v2578_v9, %v2354_v31  ;;  %3198 = vmatpush2.msra.mxu0 %v1200_v26  ;;  %3419 = vmatpush2.msra.mxu1 %v1234_v62  ;;  %v853_v9 = vld [vmem:[%s4946_s13 + $0x12d8] sm:$0xff]  ;;  %v850_v15 = vld [vmem:[%s4946_s13 + $0x12c0] sm:$0xff]  ;;  %v852_v51 = vld [vmem:[%s4946_s13 + $0x12d0] sm:$0xff] }
 0x239   : > { %v2358_v23 = vpop.f32.mrf.mxu0  ;;  %v2583_v27 = vpop.f32.mrf.mxu1  ;;  %2887 = vmatmul.mubr.f32.gmra.mxu0 %v787_v60  ;;  %3112 = vmatmul.mubr.f32.gmra.mxu1 %v789_v6  ;;  %v1197_v31 = vld [vmem:[%s7544_s1 + $0x898] sm:$0xff]  ;;  %v1231_v60 = vld [vmem:[%s7544_s1 + $0x9a8] sm:$0xff] }
 0x23a   : > { %v2359_v53 = vadd.f32 %v2358_v23, %v6144_v45  ;;  %2891 = vmatprep.mubr.f32.mxu0 %v809_v17  ;;  %3116 = vmatprep.mubr.f32.mxu1 %v811_v36  ;;  %v872_v23 = vld [vmem:[%s4946_s13 + $0x1370] sm:$0xff] }
 0x23b   : > { %v2360_v34 = vpop.f32.mrf.mxu0  ;;  %v2585_v4 = vpop.f32.mrf.mxu1  ;;  %3199 = vmatprep.subr.mxu0 %v4609_v2  ;;  %3420 = vmatprep.subr.mxu1 %v4609_v2 }
 0x23c   : > { %v6624_v37 = vadd.f32 %v2583_v27, %v2359_v53  ;;  %3200 = vmatpush2.msra.mxu0 %v1199_v63  ;;  %3421 = vmatpush2.msra.mxu1 %v1233_v19  ;;  %v874_v27 = vld [vmem:[%s4946_s13 + $0x1380] sm:$0xff]  ;;  %v1196_v53 = vld [vmem:[%s7544_s1 + $0x890] sm:$0xff]  ;;  %v871_v34 = vld [vmem:[%s4946_s13 + $0x1368] sm:$0xff] }
 0x23d   : > { %v2363_v45 = vpop.f32.mrf.mxu0  ;;  %v2588_v44 = vpop.f32.mrf.mxu1  ;;  %2892 = vmatmul.mubr.f32.gmra.mxu0 %v808_v32  ;;  %3117 = vmatmul.mubr.f32.gmra.mxu1 %v810_v21  ;;  %v1230_v32 = vld [vmem:[%s7544_s1 + $0x9a0] sm:$0xff]  ;;  %v873_v4 = vld [vmem:[%s4946_s13 + $0x1378] sm:$0xff] }
 0x23e   : > { %v2364_v12 = vadd.f32 %v2363_v45, %v6159_v5  ;;  %2896 = vmatprep.mubr.f32.mxu0 %v830_v42  ;;  %3121 = vmatprep.mubr.f32.mxu1 %v832_v55  ;;  %v893_v45 = vld [vmem:[%s4946_s13 + $0x1418] sm:$0xff] }
 0x23f   : > { %v2365_v58 = vpop.f32.mrf.mxu0  ;;  %v2590_v20 = vpop.f32.mrf.mxu1  ;;  %3201 = vmatprep.subr.mxu0 %v4609_v2  ;;  %3422 = vmatprep.subr.mxu1 %v4609_v2 }
 0x240   : > { %v6639_v26 = vadd.f32 %v2588_v44, %v2364_v12  ;;  %3202 = vmatpush2.msra.mxu0 %v1198_v14  ;;  %3423 = vmatpush2.msra.mxu1 %v1232_v39  ;;  %v895_v44 = vld [vmem:[%s4946_s13 + $0x1428] sm:$0xff]  ;;  %v892_v58 = vld [vmem:[%s4946_s13 + $0x1410] sm:$0xff]  ;;  %v894_v20 = vld [vmem:[%s4946_s13 + $0x1420] sm:$0xff] }
 0x241   : > { %v2368_v5 = vpop.f32.mrf.mxu0  ;;  %v2593_v62 = vpop.f32.mrf.mxu1  ;;  %2897 = vmatmul.mubr.f32.gmra.mxu0 %v829_v56  ;;  %3122 = vmatmul.mubr.f32.gmra.mxu1 %v831_v35  ;;  %v1195_v12 = vld [vmem:[%s7544_s1 + $0x888] sm:$0xff]  ;;  %v1229_v56 = vld [vmem:[%s7544_s1 + $0x998] sm:$0xff] }
 0x242   : > { %v2369_v6 = vadd.f32 %v2368_v5, %v6174_v28  ;;  %2901 = vmatprep.mubr.f32.mxu0 %v851_v1  ;;  %3126 = vmatprep.mubr.f32.mxu1 %v853_v9  ;;  %v914_v5 = vld [vmem:[%s4946_s13 + $0x14c0] sm:$0xff] }
 0x243   : > { %v2370_v17 = vpop.f32.mrf.mxu0  ;;  %v2595_v36 = vpop.f32.mrf.mxu1  ;;  %3203 = vmatprep.subr.mxu0 %v4609_v2  ;;  %3424 = vmatprep.subr.mxu1 %v4609_v2 }
 0x244   : > { %v6654_v63 = vadd.f32 %v2593_v62, %v2369_v6  ;;  %3204 = vmatpush2.msra.mxu0 %v1197_v31  ;;  %3425 = vmatpush2.msra.mxu1 %v1231_v60  ;;  %v916_v31 = vld [vmem:[%s4946_s13 + $0x14d0] sm:$0xff]  ;;  %v915_v17 = vld [vmem:[%s4946_s13 + $0x14c8] sm:$0xff] }
 0x245   : > { %v2373_v28 = vpop.f32.mrf.mxu0  ;;  %v2598_v19 = vpop.f32.mrf.mxu1  ;;  %2902 = vmatmul.mubr.f32.gmra.mxu0 %v850_v15  ;;  %3127 = vmatmul.mubr.f32.gmra.mxu1 %v852_v51  ;;  %v913_v51 = vld [vmem:[%s4946_s13 + $0x14b8] sm:$0xff] }
 0x246   : > { %v2374_v21 = vadd.f32 %v2373_v28, %v6189_v47  ;;  %2906 = vmatprep.mubr.f32.mxu0 %v872_v23  ;;  %3131 = vmatprep.mubr.f32.mxu1 %v874_v27  ;;  %v1194_v27 = vld [vmem:[%s7544_s1 + $0x880] sm:$0xff] }
 0x247   : > { %v2375_v42 = vpop.f32.mrf.mxu0  ;;  %v2600_v55 = vpop.f32.mrf.mxu1  ;;  %3205 = vmatprep.subr.mxu0 %v4609_v2  ;;  %3426 = vmatprep.subr.mxu1 %v4609_v2 }
 0x248   : > { %v6669_v14 = vadd.f32 %v2598_v19, %v2374_v21  ;;  %3206 = vmatpush2.msra.mxu0 %v1196_v53  ;;  %3427 = vmatpush2.msra.mxu1 %v1230_v32  ;;  %v267_v19 = vld [vmem:[%s4946_s13 + $0x88] sm:$0xff]  ;;  %v1226_v21 = vld [vmem:[%s7544_s1 + $0x980] sm:$0xff]  ;;  %v268_v55 = vld [vmem:[%s4946_s13 + $0x90] sm:$0xff] }
 0x249   : > { %v2378_v47 = vpop.f32.mrf.mxu0  ;;  %v2603_v39 = vpop.f32.mrf.mxu1  ;;  %2907 = vmatmul.mubr.f32.gmra.mxu0 %v871_v34  ;;  %3132 = vmatmul.mubr.f32.gmra.mxu1 %v873_v4  ;;  %v269_v34 = vld [vmem:[%s4946_s13 + $0x98] sm:$0xff]  ;;  %v266_v42 = vld [vmem:[%s4946_s13 + $0x80] sm:$0xff] }
 0x24a   : > { %v2379_v35 = vadd.f32 %v2378_v47, %v6203_v8  ;;  %2911 = vmatprep.mubr.f32.mxu0 %v893_v45  ;;  %3136 = vmatprep.mubr.f32.mxu1 %v895_v44  ;;  %v1228_v8 = vld [vmem:[%s7544_s1 + $0x990] sm:$0xff]  ;;  %v1249_v47 = vld [vmem:[%s7544_s1 + $0xa38] sm:$0xff] }
 0x24b   : > { %v2380_v1 = vpop.f32.mrf.mxu0  ;;  %v2605_v9 = vpop.f32.mrf.mxu1  ;;  %3207 = vmatprep.subr.mxu0 %v4609_v2  ;;  %3428 = vmatprep.subr.mxu1 %v4609_v2 }
 0x24c   : > { %v6683_v62 = vadd.f32 %v2603_v39, %v2379_v35  ;;  %3208 = vmatpush2.msra.mxu0 %v1195_v12  ;;  %3429 = vmatpush2.msra.mxu1 %v1229_v56  ;;  %v288_v39 = vld [vmem:[%s4946_s13 + $0x130] sm:$0xff]  ;;  %v287_v1 = vld [vmem:[%s4946_s13 + $0x128] sm:$0xff]  ;;  %v289_v9 = vld [vmem:[%s4946_s13 + $0x138] sm:$0xff] }
 0x24d   : > { %v2383_v60 = vpop.f32.mrf.mxu0  ;;  %v2608_v6 = vpop.f32.mrf.mxu1  ;;  %2912 = vmatmul.mubr.f32.gmra.mxu0 %v892_v58  ;;  %3137 = vmatmul.mubr.f32.gmra.mxu1 %v894_v20  ;;  %v1248_v58 = vld [vmem:[%s7544_s1 + $0xa30] sm:$0xff] }
 0x24e   : > { %v2384_v15 = vadd.f32 %v2383_v60, %v6219_v50  ;;  %3430 = vmatprep.subr.mxu1 %v4609_v2  ;;  %2916 = vmatprep.mubr.f32.mxu0 %v914_v5  ;;  %v1227_v50 = vld [vmem:[%s7544_s1 + $0x988] sm:$0xff] }
 0x24f   : > { %v2385_v36 = vpop.f32.mrf.mxu0  ;;  %v2610_v23 = vpop.f32.mrf.mxu1  ;;  %3141 = vmatprep.mubr.f32.mxu1 %v916_v31  ;;  %3431 = vmatpush2.msra.mxu1 %v1228_v8  ;;  %v309_v8 = vld [vmem:[%s4946_s13 + $0x1d8] sm:$0xff]  ;;  %v311_v60 = vld [vmem:[%s4946_s13 + $0x1e8] sm:$0xff] }
 0x250   : > { %v6699_v28 = vadd.f32 %v2608_v6, %v2384_v15  ;;  %3209 = vmatprep.subr.mxu0 %v4609_v2  ;;  %3432 = vmatprep.subr.mxu1 %v4609_v2  ;;  %v308_v36 = vld [vmem:[%s4946_s13 + $0x1d0] sm:$0xff]  ;;  %v310_v23 = vld [vmem:[%s4946_s13 + $0x1e0] sm:$0xff] }
 0x251   : > { %v2388_v53 = vpop.f32.mrf.mxu0  ;;  %v2613_v32 = vpop.f32.mrf.mxu1  ;;  %2917 = vmatmul.mubr.f32.gmra.mxu0 %v913_v51  ;;  %3142 = vmatmul.mubr.f32.gmra.mxu1 %v915_v17  ;;  %v1247_v51 = vld [vmem:[%s7544_s1 + $0xa28] sm:$0xff] }
 0x252   : > { %v2389_v4 = vadd.f32 %v2388_v53, %v6233_v49  ;;  %3210 = vmatpush2.msra.mxu0 %v1194_v27  ;;  %3433 = vmatpush2.msra.mxu1 %v1227_v50  ;;  %v290_v49 = vld [vmem:[%s4946_s13 + $0x140] sm:$0xff]  ;;  %v332_v53 = vld [vmem:[%s4946_s13 + $0x290] sm:$0xff] }
 0x253   : > { %v2390_v45 = vpop.f32.mrf.mxu0  ;;  %v2615_v44 = vpop.f32.mrf.mxu1  ;;  %3434 = vmatprep.subr.mxu1 %v4609_v2  ;;  %3211 = vmatprep.mubr.f32.mxu0 %v267_v19  ;;  %v330_v19 = vld [vmem:[%s4946_s13 + $0x280] sm:$0xff] }
 0x254   : > { %v6716_v12 = vadd.f32 %v2613_v32, %v2389_v4  ;;  %3435 = vmatpush2.msra.mxu1 %v1226_v21  ;;  %3436 = vmatprep.mubr.f32.mxu1 %v269_v34  ;;  %v1246_v34 = vld [vmem:[%s7544_s1 + $0xa20] sm:$0xff] }
 0x255   : > { %v2393_v56 = vpop.f32.mrf.mxu0  ;;  %v2618_v35 = vpop.f32.mrf.mxu1  ;;  %3212 = vmatmul.mubr.f32.vlgmr.msra.gmra.mxu0 %v266_v42  ;;  %3437 = vmatmul.mubr.f32.vlgmr.msra.gmra.mxu1 %v268_v55  ;;  %v329_v42 = vld [vmem:[%s4946_s13 + $0x278] sm:$0xff]  ;;  %v331_v55 = vld [vmem:[%s4946_s13 + $0x288] sm:$0xff] }
 0x256   : > { %v2394_v20 = vadd.f32 %v2393_v56, %v6247_v11  ;;  %4371 = vmatprep.subr.mxu0 %v1249_v47  ;;  %3216 = vmatprep.mubr.f32.mxu0 %v288_v39  ;;  %v353_v39 = vld [vmem:[%s4946_s13 + $0x338] sm:$0xff] }
 0x257   : > { %4372 = vmatpush3.msra.mxu0 %v1249_v47  ;;  %v2395_v5 = vpop.f32.mrf.mxu0  ;;  %v2620_v31 = vpop.f32.mrf.mxu1  ;;  %3441 = vmatprep.mubr.f32.mxu1 %v290_v49 }
 0x258   : > { %v6727_v6 = vadd.f32 %v2618_v35, %v2394_v20  ;;  %4373 = vmatprep.subr.mxu0 %v1248_v58  ;;  %4461 = vmatprep.subr.mxu1 %v1249_v47  ;;  %v1245_v35 = vld [vmem:[%s7544_s1 + $0xa18] sm:$0xff]  ;;  %v372_v31 = vld [vmem:[%s4946_s13 + $0x3d0] sm:$0xff] }
 0x259   : > { %v2398_v15 = vpop.f32.mrf.mxu0  ;;  %v2623_v11 = vpop.f32.mrf.mxu1  ;;  %3217 = vmatmul.mubr.f32.gmra.mxu0 %v287_v1  ;;  %3442 = vmatmul.mubr.f32.gmra.mxu1 %v289_v9  ;;  %v350_v1 = vld [vmem:[%s4946_s13 + $0x320] sm:$0xff] }
 0x25a   : > { %v2399_v17 = vadd.f32 %v2398_v15, %v6264_v33  ;;  %3221 = vmatprep.mubr.f32.mxu0 %v309_v8  ;;  %3446 = vmatprep.mubr.f32.mxu1 %v311_v60  ;;  %v374_v8 = vld [vmem:[%s4946_s13 + $0x3e0] sm:$0xff] }
 0x25b   : > { %v2400_v27 = vpop.f32.mrf.mxu0  ;;  %v2625_v50 = vpop.f32.mrf.mxu1  ;;  %4374 = vmatpush3.msra.mxu0 %v1248_v58  ;;  %4469 = vmatpush3.msra.mxu1 %v1249_v47  ;;  %v351_v47 = vld [vmem:[%s4946_s13 + $0x328] sm:$0xff] }
 0x25c   : > { %v6737_v32 = vadd.f32 %v2623_v11, %v2399_v17  ;;  %4375 = vmatprep.subr.mxu0 %v1247_v51  ;;  %4462 = vmatprep.subr.mxu1 %v1248_v58  ;;  %v1244_v11 = vld [vmem:[%s7544_s1 + $0xa10] sm:$0xff]  ;;  %v393_v50 = vld [vmem:[%s4946_s13 + $0x478] sm:$0xff] }
 0x25d   : > { %v2403_v21 = vpop.f32.mrf.mxu0  ;;  %v2628_v33 = vpop.f32.mrf.mxu1  ;;  %3222 = vmatmul.mubr.f32.gmra.mxu0 %v308_v36  ;;  %3447 = vmatmul.mubr.f32.gmra.mxu1 %v310_v23  ;;  %v371_v36 = vld [vmem:[%s4946_s13 + $0x3c8] sm:$0xff] }
 0x25e   : > { %v2404_v4 = vadd.f32 %v2403_v21, %v6279_v57  ;;  %3226 = vmatprep.mubr.f32.mxu0 %v330_v19  ;;  %3451 = vmatprep.mubr.f32.mxu1 %v332_v53  ;;  %v395_v19 = vld [vmem:[%s4946_s13 + $0x488] sm:$0xff] }
 0x25f   : > { %v2405_v45 = vpop.f32.mrf.mxu0  ;;  %v2630_v44 = vpop.f32.mrf.mxu1  ;;  %4376 = vmatpush3.msra.mxu0 %v1247_v51  ;;  %4470 = vmatpush3.msra.mxu1 %v1248_v58  ;;  %v352_v58 = vld [vmem:[%s4946_s13 + $0x330] sm:$0xff] }
 0x260   : > { %v6747_v49 = vadd.f32 %v2628_v33, %v2404_v4  ;;  %4377 = vmatprep.subr.mxu0 %v1246_v34  ;;  %4463 = vmatprep.subr.mxu1 %v1247_v51  ;;  %v1243_v33 = vld [vmem:[%s7544_s1 + $0xa08] sm:$0xff]  ;;  %v414_v44 = vld [vmem:[%s4946_s13 + $0x520] sm:$0xff] }
 0x261   : > { %v2408_v56 = vpop.f32.mrf.mxu0  ;;  %v2633_v57 = vpop.f32.mrf.mxu1  ;;  %3227 = vmatmul.mubr.f32.gmra.mxu0 %v329_v42  ;;  %3452 = vmatmul.mubr.f32.gmra.mxu1 %v331_v55  ;;  %v392_v42 = vld [vmem:[%s4946_s13 + $0x470] sm:$0xff] }
 0x262   : > { %v2409_v20 = vadd.f32 %v2408_v56, %v6294_v16  ;;  %3231 = vmatprep.mubr.f32.mxu0 %v351_v47  ;;  %3456 = vmatprep.mubr.f32.mxu1 %v353_v39  ;;  %v416_v47 = vld [vmem:[%s4946_s13 + $0x530] sm:$0xff] }
 0x263   : > { %v2410_v9 = vpop.f32.mrf.mxu0  ;;  %v2635_v5 = vpop.f32.mrf.mxu1  ;;  %4378 = vmatpush3.msra.mxu0 %v1246_v34  ;;  %4471 = vmatpush3.msra.mxu1 %v1247_v51  ;;  %v373_v51 = vld [vmem:[%s4946_s13 + $0x3d8] sm:$0xff] }
 0x264   : > { %v6757_v60 = vadd.f32 %v2633_v57, %v2409_v20  ;;  %4379 = vmatprep.subr.mxu0 %v1245_v35  ;;  %4464 = vmatprep.subr.mxu1 %v1246_v34  ;;  %v1242_v57 = vld [vmem:[%s7544_s1 + $0xa00] sm:$0xff]  ;;  %v435_v5 = vld [vmem:[%s4946_s13 + $0x5c8] sm:$0xff] }
 0x265   : > { %v2413_v15 = vpop.f32.mrf.mxu0  ;;  %v2638_v16 = vpop.f32.mrf.mxu1  ;;  %3232 = vmatmul.mubr.f32.gmra.mxu0 %v350_v1  ;;  %3457 = vmatmul.mubr.f32.gmra.mxu1 %v352_v58  ;;  %v413_v1 = vld [vmem:[%s4946_s13 + $0x518] sm:$0xff] }
 0x266   : > { %v2414_v17 = vadd.f32 %v2413_v15, %v6309_v38  ;;  %3236 = vmatprep.mubr.f32.mxu0 %v372_v31  ;;  %3461 = vmatprep.mubr.f32.mxu1 %v374_v8  ;;  %v437_v31 = vld [vmem:[%s4946_s13 + $0x5d8] sm:$0xff] }
 0x267   : > { %v2415_v23 = vpop.f32.mrf.mxu0  ;;  %v2640_v27 = vpop.f32.mrf.mxu1  ;;  %4380 = vmatpush3.msra.mxu0 %v1245_v35  ;;  %4472 = vmatpush3.msra.mxu1 %v1246_v34  ;;  %v394_v34 = vld [vmem:[%s4946_s13 + $0x480] sm:$0xff] }
 0x268   : > { %v6767_v53 = vadd.f32 %v2638_v16, %v2414_v17  ;;  %4381 = vmatprep.subr.mxu0 %v1244_v11  ;;  %4465 = vmatprep.subr.mxu1 %v1245_v35  ;;  %v434_v17 = vld [vmem:[%s4946_s13 + $0x5c0] sm:$0xff] }
 0x269   : > { %v2418_v21 = vpop.f32.mrf.mxu0  ;;  %v2643_v38 = vpop.f32.mrf.mxu1  ;;  %3237 = vmatmul.mubr.f32.gmra.mxu0 %v371_v36  ;;  %3462 = vmatmul.mubr.f32.gmra.mxu1 %v373_v51  ;;  %v436_v36 = vld [vmem:[%s4946_s13 + $0x5d0] sm:$0xff]  ;;  %v458_v27 = vld [vmem:[%s4946_s13 + $0x680] sm:$0xff] }
 0x26a   : > { %v2419_v4 = vadd.f32 %v2418_v21, %v6324_v61  ;;  %3241 = vmatprep.mubr.f32.mxu0 %v393_v50  ;;  %3466 = vmatprep.mubr.f32.mxu1 %v395_v19 }
 0x26b   : > { %v2420_v55 = vpop.f32.mrf.mxu0  ;;  %v2645_v45 = vpop.f32.mrf.mxu1  ;;  %4382 = vmatpush3.msra.mxu0 %v1244_v11  ;;  %4473 = vmatpush3.msra.mxu1 %v1245_v35  ;;  %v415_v35 = vld [vmem:[%s4946_s13 + $0x528] sm:$0xff] }
 0x26c   : > { %v6777_v39 = vadd.f32 %v2643_v38, %v2419_v4  ;;  %4383 = vmatprep.subr.mxu0 %v1243_v33  ;;  %4466 = vmatprep.subr.mxu1 %v1244_v11  ;;  %v455_v38 = vld [vmem:[%s4946_s13 + $0x668] sm:$0xff]  ;;  %v457_v4 = vld [vmem:[%s4946_s13 + $0x678] sm:$0xff] }
 0x26d   : > { %v2423_v56 = vpop.f32.mrf.mxu0  ;;  %v2648_v61 = vpop.f32.mrf.mxu1  ;;  %3242 = vmatmul.mubr.f32.gmra.mxu0 %v392_v42  ;;  %3467 = vmatmul.mubr.f32.gmra.mxu1 %v394_v34  ;;  %v477_v55 = vld [vmem:[%s4946_s13 + $0x718] sm:$0xff] }
 0x26e   : > { %v2424_v20 = vadd.f32 %v2423_v56, %v6339_v22  ;;  %3246 = vmatprep.mubr.f32.mxu0 %v414_v44  ;;  %3471 = vmatprep.mubr.f32.mxu1 %v416_v47  ;;  %v476_v56 = vld [vmem:[%s4946_s13 + $0x710] sm:$0xff] }
 0x26f   : > { %v2425_v58 = vpop.f32.mrf.mxu0  ;;  %v2650_v9 = vpop.f32.mrf.mxu1  ;;  %4384 = vmatpush3.msra.mxu0 %v1243_v33  ;;  %4474 = vmatpush3.msra.mxu1 %v1244_v11  ;;  %v456_v11 = vld [vmem:[%s4946_s13 + $0x670] sm:$0xff] }
 0x270   : > { %v6787_v8 = vadd.f32 %v2648_v61, %v2424_v20  ;;  %4385 = vmatprep.subr.mxu0 %v1242_v57  ;;  %4467 = vmatprep.subr.mxu1 %v1243_v33  ;;  %v478_v61 = vld [vmem:[%s4946_s13 + $0x720] sm:$0xff] }
 0x271   : > { %v2428_v15 = vpop.f32.mrf.mxu0  ;;  %v2653_v22 = vpop.f32.mrf.mxu1  ;;  %3247 = vmatmul.mubr.f32.gmra.mxu0 %v413_v1  ;;  %3472 = vmatmul.mubr.f32.gmra.mxu1 %v415_v35  ;;  %v500_v35 = vld [vmem:[%s4946_s13 + $0x7d0] sm:$0xff] }
 0x272   : > { %v2429_v16 = vadd.f32 %v2428_v15, %v6354_v43  ;;  %3251 = vmatprep.mubr.f32.mxu0 %v435_v5  ;;  %3476 = vmatprep.mubr.f32.mxu1 %v437_v31  ;;  %v497_v31 = vld [vmem:[%s4946_s13 + $0x7b8] sm:$0xff]  ;;  %v499_v15 = vld [vmem:[%s4946_s13 + $0x7c8] sm:$0xff] }
 0x273   : > { %v2430_v51 = vpop.f32.mrf.mxu0  ;;  %v2655_v23 = vpop.f32.mrf.mxu1  ;;  %4386 = vmatpush3.msra.mxu0 %v1242_v57  ;;  %4475 = vmatpush3.msra.mxu1 %v1243_v33  ;;  %v479_v33 = vld [vmem:[%s4946_s13 + $0x728] sm:$0xff] }
 0x274   : > { %v6794_v50 = vadd.f32 %v2653_v22, %v2429_v16  ;;  %4468 = vmatprep.subr.mxu1 %v1242_v57 }
 0x275   : > { %v2433_v19 = vpop.f32.mrf.mxu0  ;;  %v2658_v21 = vpop.f32.mrf.mxu1  ;;  %3252 = vmatmul.mubr.f32.gmra.mxu0 %v434_v17  ;;  %3477 = vmatmul.mubr.f32.gmra.mxu1 %v436_v36  ;;  %v519_v17 = vld [vmem:[%s4946_s13 + $0x868] sm:$0xff]  ;;  %v521_v36 = vld [vmem:[%s4946_s13 + $0x878] sm:$0xff] }
 0x276   : > { %v2434_v43 = vadd.f32 %v2433_v19, %v6369_v3  ;;  %3256 = vmatprep.mubr.f32.mxu0 %v456_v11  ;;  %3481 = vmatprep.mubr.f32.mxu1 %v458_v27  ;;  %v518_v27 = vld [vmem:[%s4946_s13 + $0x860] sm:$0xff]  ;;  %v520_v19 = vld [vmem:[%s4946_s13 + $0x870] sm:$0xff] }
 0x277   : > { %v2435_v42 = vpop.f32.mrf.mxu0  ;;  %v2660_v34 = vpop.f32.mrf.mxu1  ;;  %4476 = vmatpush3.msra.mxu1 %v1242_v57  ;;  %v498_v57 = vld [vmem:[%s4946_s13 + $0x7c0] sm:$0xff] }
 0x278   : > { %v6801_v45 = vadd.f32 %v2658_v21, %v2434_v43  ;;  %4435 = vmatprep.subr.mxu1 %v4609_v2 }
 0x279   : > { %v2438_v44 = vpop.f32.mrf.mxu0  ;;  %v2663_v47 = vpop.f32.mrf.mxu1  ;;  %3257 = vmatmul.mubr.f32.gmra.mxu0 %v455_v38  ;;  %3482 = vmatmul.mubr.f32.gmra.mxu1 %v457_v4  ;;  %v540_v38 = vld [vmem:[%s4946_s13 + $0x910] sm:$0xff]  ;;  %v542_v4 = vld [vmem:[%s4946_s13 + $0x920] sm:$0xff] }
 0x27a   : > { %v2439_v3 = vadd.f32 %v2438_v44, %v6384_v24  ;;  %3261 = vmatprep.mubr.f32.mxu0 %v477_v55  ;;  %3486 = vmatprep.mubr.f32.mxu1 %v479_v33  ;;  %v539_v33 = vld [vmem:[%s4946_s13 + $0x908] sm:$0xff]  ;;  %v541_v44 = vld [vmem:[%s4946_s13 + $0x918] sm:$0xff] }
 0x27b   : > { %v2440_v20 = vpop.f32.mrf.mxu0  ;;  %v2665_v1 = vpop.f32.mrf.mxu1 }
 0x27c   : > { %v6809_v58 = vadd.f32 %v2663_v47, %v2439_v3 }
 0x27d   : > { %v2443_v9 = vpop.f32.mrf.mxu0  ;;  %v2668_v5 = vpop.f32.mrf.mxu1  ;;  %3262 = vmatmul.mubr.f32.gmra.mxu0 %v476_v56  ;;  %3487 = vmatmul.mubr.f32.gmra.mxu1 %v478_v61  ;;  %v561_v56 = vld [vmem:[%s4946_s13 + $0x9b8] sm:$0xff]  ;;  %v563_v61 = vld [vmem:[%s4946_s13 + $0x9c8] sm:$0xff] }
 0x27e   : > { %v2444_v24 = vadd.f32 %v2443_v9, %v6399_v46  ;;  %3266 = vmatprep.mubr.f32.mxu0 %v498_v57  ;;  %3491 = vmatprep.mubr.f32.mxu1 %v500_v35  ;;  %v560_v35 = vld [vmem:[%s4946_s13 + $0x9b0] sm:$0xff]  ;;  %v562_v9 = vld [vmem:[%s4946_s13 + $0x9c0] sm:$0xff] }
 0x27f   : > { %v2445_v22 = vpop.f32.mrf.mxu0  ;;  %v2670_v16 = vpop.f32.mrf.mxu1 }
 0x280   : > { %v6816_v51 = vadd.f32 %v2668_v5, %v2444_v24 }
 0x281   : > { %v2448_v23 = vpop.f32.mrf.mxu0  ;;  %v2673_v11 = vpop.f32.mrf.mxu1  ;;  %3267 = vmatmul.mubr.f32.gmra.mxu0 %v497_v31  ;;  %3492 = vmatmul.mubr.f32.gmra.mxu1 %v499_v15  ;;  %v582_v31 = vld [vmem:[%s4946_s13 + $0xa60] sm:$0xff]  ;;  %v584_v15 = vld [vmem:[%s4946_s13 + $0xa70] sm:$0xff] }
 0x282   : > { %v2449_v46 = vadd.f32 %v2448_v23, %v6414_v10  ;;  %3271 = vmatprep.mubr.f32.mxu0 %v519_v17  ;;  %3496 = vmatprep.mubr.f32.mxu1 %v521_v36  ;;  %v581_v36 = vld [vmem:[%s4946_s13 + $0xa58] sm:$0xff]  ;;  %v583_v23 = vld [vmem:[%s4946_s13 + $0xa68] sm:$0xff] }
 0x283   : > { %v2450_v21 = vpop.f32.mrf.mxu0  ;;  %v2675_v43 = vpop.f32.mrf.mxu1 }
 0x284   : > { %v6823_v42 = vadd.f32 %v2673_v11, %v2449_v46 }
 0x285   : > { %v2453_v34 = vpop.f32.mrf.mxu0  ;;  %v2678_v55 = vpop.f32.mrf.mxu1  ;;  %3272 = vmatmul.mubr.f32.gmra.mxu0 %v518_v27  ;;  %3497 = vmatmul.mubr.f32.gmra.mxu1 %v520_v19  ;;  %v603_v27 = vld [vmem:[%s4946_s13 + $0xb08] sm:$0xff]  ;;  %v605_v19 = vld [vmem:[%s4946_s13 + $0xb18] sm:$0xff] }
 0x286   : > { %v2454_v10 = vadd.f32 %v2453_v34, %v6429_v30  ;;  %3276 = vmatprep.mubr.f32.mxu0 %v540_v38  ;;  %3501 = vmatprep.mubr.f32.mxu1 %v542_v4  ;;  %v602_v4 = vld [vmem:[%s4946_s13 + $0xb00] sm:$0xff]  ;;  %v604_v34 = vld [vmem:[%s4946_s13 + $0xb10] sm:$0xff] }
 0x287   : > { %v2455_v47 = vpop.f32.mrf.mxu0  ;;  %v2680_v3 = vpop.f32.mrf.mxu1 }
 0x288   : > { %v6830_v20 = vadd.f32 %v2678_v55, %v2454_v10 }
 0x289   : > { %v2458_v1 = vpop.f32.mrf.mxu0  ;;  %v2683_v57 = vpop.f32.mrf.mxu1  ;;  %3277 = vmatmul.mubr.f32.gmra.mxu0 %v539_v33  ;;  %3502 = vmatmul.mubr.f32.gmra.mxu1 %v541_v44  ;;  %v624_v33 = vld [vmem:[%s4946_s13 + $0xbb0] sm:$0xff]  ;;  %v626_v44 = vld [vmem:[%s4946_s13 + $0xbc0] sm:$0xff] }
 0x28a   : > { %v2459_v30 = vadd.f32 %v2458_v1, %v6444_v41  ;;  %3281 = vmatprep.mubr.f32.mxu0 %v561_v56  ;;  %3506 = vmatprep.mubr.f32.mxu1 %v563_v61  ;;  %v623_v61 = vld [vmem:[%s4946_s13 + $0xba8] sm:$0xff]  ;;  %v625_v1 = vld [vmem:[%s4946_s13 + $0xbb8] sm:$0xff] }
 0x28b   : > { %v2460_v5 = vpop.f32.mrf.mxu0  ;;  %v2685_v24 = vpop.f32.mrf.mxu1 }
 0x28c   : > { %v6837_v22 = vadd.f32 %v2683_v57, %v2459_v30 }
 0x28d   : > { %v2463_v16 = vpop.f32.mrf.mxu0  ;;  %v2688_v17 = vpop.f32.mrf.mxu1  ;;  %3282 = vmatmul.mubr.f32.gmra.mxu0 %v560_v35  ;;  %3507 = vmatmul.mubr.f32.gmra.mxu1 %v562_v9  ;;  %v645_v35 = vld [vmem:[%s4946_s13 + $0xc58] sm:$0xff]  ;;  %v647_v9 = vld [vmem:[%s4946_s13 + $0xc68] sm:$0xff] }
 0x28e   : > { %v2464_v41 = vadd.f32 %v2463_v16, %v6459_v54  ;;  %3286 = vmatprep.mubr.f32.mxu0 %v582_v31  ;;  %3511 = vmatprep.mubr.f32.mxu1 %v584_v15  ;;  %v644_v15 = vld [vmem:[%s4946_s13 + $0xc50] sm:$0xff]  ;;  %v646_v16 = vld [vmem:[%s4946_s13 + $0xc60] sm:$0xff] }
 0x28f   : > { %v2465_v11 = vpop.f32.mrf.mxu0  ;;  %v2690_v46 = vpop.f32.mrf.mxu1 }
 0x290   : > { %v6844_v21 = vadd.f32 %v2688_v17, %v2464_v41 }
 0x291   : > { %v2468_v43 = vpop.f32.mrf.mxu0  ;;  %v2693_v38 = vpop.f32.mrf.mxu1  ;;  %3287 = vmatmul.mubr.f32.gmra.mxu0 %v581_v36  ;;  %3512 = vmatmul.mubr.f32.gmra.mxu1 %v583_v23  ;;  %v666_v36 = vld [vmem:[%s4946_s13 + $0xd00] sm:$0xff]  ;;  %v668_v23 = vld [vmem:[%s4946_s13 + $0xd10] sm:$0xff] }
 0x292   : > { %v2469_v54 = vadd.f32 %v2468_v43, %v6474_v48  ;;  %3291 = vmatprep.mubr.f32.mxu0 %v603_v27  ;;  %3516 = vmatprep.mubr.f32.mxu1 %v605_v19  ;;  %v665_v19 = vld [vmem:[%s4946_s13 + $0xcf8] sm:$0xff]  ;;  %v667_v43 = vld [vmem:[%s4946_s13 + $0xd08] sm:$0xff] }
 0x293   : > { %v2470_v55 = vpop.f32.mrf.mxu0  ;;  %v2695_v10 = vpop.f32.mrf.mxu1 }
 0x294   : > { %v6851_v47 = vadd.f32 %v2693_v38, %v2469_v54 }
 0x295   : > { %v2763_v3 = vpop.f32.mrf.mxu0  ;;  %v2988_v56 = vpop.f32.mrf.mxu1  ;;  %3292 = vmatmul.mubr.f32.gmra.mxu0 %v602_v4  ;;  %3517 = vmatmul.mubr.f32.gmra.mxu1 %v604_v34  ;;  %v687_v4 = vld [vmem:[%s4946_s13 + $0xda8] sm:$0xff]  ;;  %v689_v34 = vld [vmem:[%s4946_s13 + $0xdb8] sm:$0xff] }
 0x296   : > { %v2764_v48 = vadd.f32 %v2763_v3, %v6489_v59  ;;  %3296 = vmatprep.mubr.f32.mxu0 %v624_v33  ;;  %3521 = vmatprep.mubr.f32.mxu1 %v626_v44  ;;  %v686_v44 = vld [vmem:[%s4946_s13 + $0xda0] sm:$0xff]  ;;  %v688_v3 = vld [vmem:[%s4946_s13 + $0xdb0] sm:$0xff] }
 0x297   : > { %v2765_v57 = vpop.f32.mrf.mxu0  ;;  %v2990_v30 = vpop.f32.mrf.mxu1 }
 0x298   : > { %v6858_v5 = vadd.f32 %v2988_v56, %v2764_v48 }
 0x299   : > { %v2768_v24 = vpop.f32.mrf.mxu0  ;;  %v2993_v31 = vpop.f32.mrf.mxu1  ;;  %3297 = vmatmul.mubr.f32.gmra.mxu0 %v623_v61  ;;  %3522 = vmatmul.mubr.f32.gmra.mxu1 %v625_v1  ;;  %v708_v61 = vld [vmem:[%s4946_s13 + $0xe50] sm:$0xff]  ;;  %v710_v1 = vld [vmem:[%s4946_s13 + $0xe60] sm:$0xff] }
 0x29a   : > { %v2769_v59 = vadd.f32 %v2768_v24, %v6504_v7  ;;  %3301 = vmatprep.mubr.f32.mxu0 %v645_v35  ;;  %3526 = vmatprep.mubr.f32.mxu1 %v647_v9  ;;  %v707_v9 = vld [vmem:[%s4946_s13 + $0xe48] sm:$0xff]  ;;  %v709_v24 = vld [vmem:[%s4946_s13 + $0xe58] sm:$0xff] }
 0x29b   : > { %v2770_v17 = vpop.f32.mrf.mxu0  ;;  %v2995_v41 = vpop.f32.mrf.mxu1 }
 0x29c   : > { %v6865_v11 = vadd.f32 %v2993_v31, %v2769_v59 }
 0x29d   : > { %v2773_v46 = vpop.f32.mrf.mxu0  ;;  %v2998_v27 = vpop.f32.mrf.mxu1  ;;  %3302 = vmatmul.mubr.f32.gmra.mxu0 %v644_v15  ;;  %3527 = vmatmul.mubr.f32.gmra.mxu1 %v646_v16  ;;  %v729_v15 = vld [vmem:[%s4946_s13 + $0xef8] sm:$0xff]  ;;  %v731_v16 = vld [vmem:[%s4946_s13 + $0xf08] sm:$0xff] }
 0x29e   : > { %v2774_v7 = vadd.f32 %v2773_v46, %v6519_v18  ;;  %3306 = vmatprep.mubr.f32.mxu0 %v666_v36  ;;  %3531 = vmatprep.mubr.f32.mxu1 %v668_v23  ;;  %v728_v23 = vld [vmem:[%s4946_s13 + $0xef0] sm:$0xff]  ;;  %v730_v46 = vld [vmem:[%s4946_s13 + $0xf00] sm:$0xff] }
 0x29f   : > { %v2775_v38 = vpop.f32.mrf.mxu0  ;;  %v3000_v54 = vpop.f32.mrf.mxu1 }
 0x2a0   : > { %v6872_v55 = vadd.f32 %v2998_v27, %v2774_v7 }
 0x2a1   : > { %v2778_v10 = vpop.f32.mrf.mxu0  ;;  %v3003_v33 = vpop.f32.mrf.mxu1  ;;  %3307 = vmatmul.mubr.f32.gmra.mxu0 %v665_v19  ;;  %3532 = vmatmul.mubr.f32.gmra.mxu1 %v667_v43  ;;  %v750_v19 = vld [vmem:[%s4946_s13 + $0xfa0] sm:$0xff]  ;;  %v752_v43 = vld [vmem:[%s4946_s13 + $0xfb0] sm:$0xff] }
 0x2a2   : > { %v2779_v18 = vadd.f32 %v2778_v10, %v6534_v29  ;;  %3311 = vmatprep.mubr.f32.mxu0 %v687_v4  ;;  %3536 = vmatprep.mubr.f32.mxu1 %v689_v34  ;;  %v749_v34 = vld [vmem:[%s4946_s13 + $0xf98] sm:$0xff]  ;;  %v751_v10 = vld [vmem:[%s4946_s13 + $0xfa8] sm:$0xff] }
 0x2a3   : > { %v2780_v56 = vpop.f32.mrf.mxu0  ;;  %v3005_v48 = vpop.f32.mrf.mxu1 }
 0x2a4   : > { %v6879_v57 = vadd.f32 %v3003_v33, %v2779_v18 }
 0x2a5   : > { %v2783_v30 = vpop.f32.mrf.mxu0  ;;  %v3008_v35 = vpop.f32.mrf.mxu1  ;;  %3312 = vmatmul.mubr.f32.gmra.mxu0 %v686_v44  ;;  %3537 = vmatmul.mubr.f32.gmra.mxu1 %v688_v3  ;;  %v771_v44 = vld [vmem:[%s4946_s13 + $0x1048] sm:$0xff]  ;;  %v773_v3 = vld [vmem:[%s4946_s13 + $0x1058] sm:$0xff] }
 0x2a6   : > { %v2784_v29 = vadd.f32 %v2783_v30, %v6549_v40  ;;  %3316 = vmatprep.mubr.f32.mxu0 %v708_v61  ;;  %3541 = vmatprep.mubr.f32.mxu1 %v710_v1  ;;  %v770_v1 = vld [vmem:[%s4946_s13 + $0x1040] sm:$0xff]  ;;  %v772_v30 = vld [vmem:[%s4946_s13 + $0x1050] sm:$0xff] }
 0x2a7   : > { %v2785_v31 = vpop.f32.mrf.mxu0  ;;  %v3010_v59 = vpop.f32.mrf.mxu1 }
 0x2a8   : > { %v6886_v17 = vadd.f32 %v3008_v35, %v2784_v29 }
 0x2a9   : > { %v2788_v41 = vpop.f32.mrf.mxu0  ;;  %v3013_v36 = vpop.f32.mrf.mxu1  ;;  %3317 = vmatmul.mubr.f32.gmra.mxu0 %v707_v9  ;;  %3542 = vmatmul.mubr.f32.gmra.mxu1 %v709_v24  ;;  %v792_v9 = vld [vmem:[%s4946_s13 + $0x10f0] sm:$0xff]  ;;  %v794_v24 = vld [vmem:[%s4946_s13 + $0x1100] sm:$0xff] }
 0x2aa   : > { %v2789_v40 = vadd.f32 %v2788_v41, %v6564_v52  ;;  %3321 = vmatprep.mubr.f32.mxu0 %v729_v15  ;;  %3546 = vmatprep.mubr.f32.mxu1 %v731_v16  ;;  %v791_v16 = vld [vmem:[%s4946_s13 + $0x10e8] sm:$0xff]  ;;  %v793_v41 = vld [vmem:[%s4946_s13 + $0x10f8] sm:$0xff] }
 0x2ab   : > { %v2790_v27 = vpop.f32.mrf.mxu0  ;;  %v3015_v7 = vpop.f32.mrf.mxu1 }
 0x2ac   : > { %v6893_v38 = vadd.f32 %v3013_v36, %v2789_v40 }
 0x2ad   : > { %v2793_v54 = vpop.f32.mrf.mxu0  ;;  %v3018_v4 = vpop.f32.mrf.mxu1  ;;  %3322 = vmatmul.mubr.f32.gmra.mxu0 %v728_v23  ;;  %3547 = vmatmul.mubr.f32.gmra.mxu1 %v730_v46  ;;  %v813_v23 = vld [vmem:[%s4946_s13 + $0x1198] sm:$0xff]  ;;  %v815_v46 = vld [vmem:[%s4946_s13 + $0x11a8] sm:$0xff] }
 0x2ae   : > { %v2794_v52 = vadd.f32 %v2793_v54, %v6579_v0  ;;  %3326 = vmatprep.mubr.f32.mxu0 %v750_v19  ;;  %3551 = vmatprep.mubr.f32.mxu1 %v752_v43  ;;  %v812_v43 = vld [vmem:[%s4946_s13 + $0x1190] sm:$0xff]  ;;  %v814_v54 = vld [vmem:[%s4946_s13 + $0x11a0] sm:$0xff] }
 0x2af   : > { %v2795_v33 = vpop.f32.mrf.mxu0  ;;  %v3020_v18 = vpop.f32.mrf.mxu1 }
 0x2b0   : > { %v6900_v56 = vadd.f32 %v3018_v4, %v2794_v52 }
 0x2b1   : > { %v2798_v48 = vpop.f32.mrf.mxu0  ;;  %v3023_v61 = vpop.f32.mrf.mxu1  ;;  %3327 = vmatmul.mubr.f32.gmra.mxu0 %v749_v34  ;;  %3552 = vmatmul.mubr.f32.gmra.mxu1 %v751_v10  ;;  %v834_v34 = vld [vmem:[%s4946_s13 + $0x1240] sm:$0xff]  ;;  %v836_v10 = vld [vmem:[%s4946_s13 + $0x1250] sm:$0xff] }
 0x2b2   : > { %v2799_v0 = vadd.f32 %v2798_v48, %v6594_v13  ;;  %3331 = vmatprep.mubr.f32.mxu0 %v771_v44  ;;  %3556 = vmatprep.mubr.f32.mxu1 %v773_v3  ;;  %v833_v3 = vld [vmem:[%s4946_s13 + $0x1238] sm:$0xff]  ;;  %v835_v48 = vld [vmem:[%s4946_s13 + $0x1248] sm:$0xff] }
 0x2b3   : > { %v2800_v35 = vpop.f32.mrf.mxu0  ;;  %v3025_v29 = vpop.f32.mrf.mxu1 }
 0x2b4   : > { %v6907_v31 = vadd.f32 %v3023_v61, %v2799_v0 }
 0x2b5   : > { %v2803_v59 = vpop.f32.mrf.mxu0  ;;  %v3028_v15 = vpop.f32.mrf.mxu1  ;;  %3332 = vmatmul.mubr.f32.gmra.mxu0 %v770_v1  ;;  %3557 = vmatmul.mubr.f32.gmra.mxu1 %v772_v30  ;;  %v855_v1 = vld [vmem:[%s4946_s13 + $0x12e8] sm:$0xff]  ;;  %v857_v30 = vld [vmem:[%s4946_s13 + $0x12f8] sm:$0xff] }
 0x2b6   : > { %v2804_v13 = vadd.f32 %v2803_v59, %v6609_v25  ;;  %3336 = vmatprep.mubr.f32.mxu0 %v792_v9  ;;  %3561 = vmatprep.mubr.f32.mxu1 %v794_v24  ;;  %v854_v24 = vld [vmem:[%s4946_s13 + $0x12e0] sm:$0xff]  ;;  %v856_v59 = vld [vmem:[%s4946_s13 + $0x12f0] sm:$0xff] }
 0x2b7   : > { %v2805_v36 = vpop.f32.mrf.mxu0  ;;  %v3030_v40 = vpop.f32.mrf.mxu1 }
 0x2b8   : > { %v6914_v27 = vadd.f32 %v3028_v15, %v2804_v13 }
 0x2b9   : > { %v2808_v7 = vpop.f32.mrf.mxu0  ;;  %v3033_v19 = vpop.f32.mrf.mxu1  ;;  %3337 = vmatmul.mubr.f32.gmra.mxu0 %v791_v16  ;;  %3562 = vmatmul.mubr.f32.gmra.mxu1 %v793_v41  ;;  %v876_v16 = vld [vmem:[%s4946_s13 + $0x1390] sm:$0xff]  ;;  %v878_v41 = vld [vmem:[%s4946_s13 + $0x13a0] sm:$0xff] }
 0x2ba   : > { %v2809_v25 = vadd.f32 %v2808_v7, %v6624_v37  ;;  %3341 = vmatprep.mubr.f32.mxu0 %v813_v23  ;;  %3566 = vmatprep.mubr.f32.mxu1 %v815_v46  ;;  %v875_v46 = vld [vmem:[%s4946_s13 + $0x1388] sm:$0xff]  ;;  %v877_v7 = vld [vmem:[%s4946_s13 + $0x1398] sm:$0xff] }
 0x2bb   : > { %v2810_v4 = vpop.f32.mrf.mxu0  ;;  %v3035_v52 = vpop.f32.mrf.mxu1 }
 0x2bc   : > { %v6921_v33 = vadd.f32 %v3033_v19, %v2809_v25 }
 0x2bd   : > { %v2813_v18 = vpop.f32.mrf.mxu0  ;;  %v3038_v44 = vpop.f32.mrf.mxu1  ;;  %3342 = vmatmul.mubr.f32.gmra.mxu0 %v812_v43  ;;  %3567 = vmatmul.mubr.f32.gmra.mxu1 %v814_v54  ;;  %v897_v43 = vld [vmem:[%s4946_s13 + $0x1438] sm:$0xff]  ;;  %v899_v54 = vld [vmem:[%s4946_s13 + $0x1448] sm:$0xff] }
 0x2be   : > { %v2814_v37 = vadd.f32 %v2813_v18, %v6639_v26  ;;  %3346 = vmatprep.mubr.f32.mxu0 %v834_v34  ;;  %3571 = vmatprep.mubr.f32.mxu1 %v836_v10  ;;  %v896_v10 = vld [vmem:[%s4946_s13 + $0x1430] sm:$0xff]  ;;  %v898_v18 = vld [vmem:[%s4946_s13 + $0x1440] sm:$0xff] }
 0x2bf   : > { %v2815_v61 = vpop.f32.mrf.mxu0  ;;  %v3040_v0 = vpop.f32.mrf.mxu1 }
 0x2c0   : > { %v6928_v35 = vadd.f32 %v3038_v44, %v2814_v37 }
 0x2c1   : > { %v2818_v29 = vpop.f32.mrf.mxu0  ;;  %v3043_v9 = vpop.f32.mrf.mxu1  ;;  %3347 = vmatmul.mubr.f32.gmra.mxu0 %v833_v3  ;;  %3572 = vmatmul.mubr.f32.gmra.mxu1 %v835_v48  ;;  %v918_v3 = vld [vmem:[%s4946_s13 + $0x14e0] sm:$0xff]  ;;  %v920_v48 = vld [vmem:[%s4946_s13 + $0x14f0] sm:$0xff] }
 0x2c2   : > { %v2819_v26 = vadd.f32 %v2818_v29, %v6654_v63  ;;  %3351 = vmatprep.mubr.f32.mxu0 %v855_v1  ;;  %3576 = vmatprep.mubr.f32.mxu1 %v857_v30  ;;  %v917_v30 = vld [vmem:[%s4946_s13 + $0x14d8] sm:$0xff]  ;;  %v919_v29 = vld [vmem:[%s4946_s13 + $0x14e8] sm:$0xff] }
 0x2c3   : > { %v2820_v15 = vpop.f32.mrf.mxu0  ;;  %v3045_v13 = vpop.f32.mrf.mxu1 }
 0x2c4   : > { %v6935_v36 = vadd.f32 %v3043_v9, %v2819_v26 }
 0x2c5   : > { %v2823_v40 = vpop.f32.mrf.mxu0  ;;  %v3048_v23 = vpop.f32.mrf.mxu1  ;;  %3352 = vmatmul.mubr.f32.gmra.mxu0 %v854_v24  ;;  %3577 = vmatmul.mubr.f32.gmra.mxu1 %v856_v59  ;;  %v270_v24 = vld [vmem:[%s4946_s13 + $0xa0] sm:$0xff]  ;;  %v648_v59 = vld [vmem:[%s4946_s13 + $0xc70] sm:$0xff] }
 0x2c6   : > { %v2824_v63 = vadd.f32 %v2823_v40, %v6669_v14  ;;  %3356 = vmatprep.mubr.f32.mxu0 %v876_v16  ;;  %3581 = vmatprep.mubr.f32.mxu1 %v878_v41  ;;  %v291_v41 = vld [vmem:[%s4946_s13 + $0x148] sm:$0xff]  ;;  %v669_v40 = vld [vmem:[%s4946_s13 + $0xd18] sm:$0xff] }
 0x2c7   : > { %v2825_v19 = vpop.f32.mrf.mxu0  ;;  %v3050_v25 = vpop.f32.mrf.mxu1 }
 0x2c8   : > { %v6942_v4 = vadd.f32 %v3048_v23, %v2824_v63 }
 0x2c9   : > { %v2828_v52 = vpop.f32.mrf.mxu0  ;;  %v3053_v34 = vpop.f32.mrf.mxu1  ;;  %3357 = vmatmul.mubr.f32.gmra.mxu0 %v875_v46  ;;  %3582 = vmatmul.mubr.f32.gmra.mxu1 %v877_v7  ;;  %v312_v46 = vld [vmem:[%s4946_s13 + $0x1f0] sm:$0xff]  ;;  %v690_v7 = vld [vmem:[%s4946_s13 + $0xdc0] sm:$0xff] }
 0x2ca   : > { %v2829_v14 = vadd.f32 %v2828_v52, %v6683_v62  ;;  %3361 = vmatprep.mubr.f32.mxu0 %v897_v43  ;;  %3586 = vmatprep.mubr.f32.mxu1 %v899_v54  ;;  %v333_v54 = vld [vmem:[%s4946_s13 + $0x298] sm:$0xff]  ;;  %v711_v52 = vld [vmem:[%s4946_s13 + $0xe68] sm:$0xff] }
 0x2cb   : > { %v2830_v44 = vpop.f32.mrf.mxu0  ;;  %v3055_v37 = vpop.f32.mrf.mxu1 }
 0x2cc   : > { %v6949_v61 = vadd.f32 %v3053_v34, %v2829_v14 }
 0x2cd   : > { %v2833_v0 = vpop.f32.mrf.mxu0  ;;  %v3058_v1 = vpop.f32.mrf.mxu1  ;;  %3362 = vmatmul.mubr.f32.gmra.mxu0 %v896_v10  ;;  %3587 = vmatmul.mubr.f32.gmra.mxu1 %v898_v18  ;;  %v354_v10 = vld [vmem:[%s4946_s13 + $0x340] sm:$0xff]  ;;  %v732_v18 = vld [vmem:[%s4946_s13 + $0xf10] sm:$0xff] }
 0x2ce   : > { %v2834_v62 = vadd.f32 %v2833_v0, %v6699_v28  ;;  %3366 = vmatprep.mubr.f32.mxu0 %v918_v3  ;;  %3591 = vmatprep.mubr.f32.mxu1 %v920_v48  ;;  %v375_v48 = vld [vmem:[%s4946_s13 + $0x3e8] sm:$0xff]  ;;  %v753_v0 = vld [vmem:[%s4946_s13 + $0xfb8] sm:$0xff] }
 0x2cf   : > { %v2835_v9 = vpop.f32.mrf.mxu0  ;;  %v3060_v26 = vpop.f32.mrf.mxu1 }
 0x2d0   : > { %v6956_v15 = vadd.f32 %v3058_v1, %v2834_v62 }
 0x2d1   : > { %v2838_v13 = vpop.f32.mrf.mxu0  ;;  %v3063_v16 = vpop.f32.mrf.mxu1  ;;  %3367 = vmatmul.mubr.f32.gmra.mxu0 %v917_v30  ;;  %3592 = vmatmul.mubr.f32.gmra.mxu1 %v919_v29  ;;  %v396_v30 = vld [vmem:[%s4946_s13 + $0x490] sm:$0xff]  ;;  %v774_v29 = vld [vmem:[%s4946_s13 + $0x1060] sm:$0xff] }
 0x2d2   : > { %v2839_v28 = vadd.f32 %v2838_v13, %v6716_v12  ;;  %4387 = vmatprep.mubr.msk.f32.mxu0 %vm1250_vm0, %v270_v24  ;;  %4414 = vmatprep.mubr.msk.f32.mxu1 %vm1250_vm0, %v648_v59  ;;  %v417_v59 = vld [vmem:[%s4946_s13 + $0x538] sm:$0xff]  ;;  %v795_v13 = vld [vmem:[%s4946_s13 + $0x1108] sm:$0xff] }
 0x2d3   : > { %v2840_v23 = vpop.f32.mrf.mxu0  ;;  %v3065_v63 = vpop.f32.mrf.mxu1 }
 0x2d4   : > { %v6965_v19 = vadd.f32 %v3063_v16, %v2839_v28 }
 0x2d5   : > { %v2843_v25 = vpop.f32.mrf.mxu0  ;;  %v3068_v43 = vpop.f32.mrf.mxu1  ;;  %4388 = vmatmul.mubr.msk.f32.vlgmr.msra.gmra.mxu0 %vm1250_vm0, %v291_v41  ;;  %4415 = vmatmul.mubr.msk.f32.vlgmr.msra.gmra.mxu1 %vm1250_vm0, %v669_v40  ;;  %v438_v41 = vld [vmem:[%s4946_s13 + $0x5e0] sm:$0xff]  ;;  %v816_v40 = vld [vmem:[%s4946_s13 + $0x11b0] sm:$0xff] }
 0x2d6   : > { %v2844_v12 = vadd.f32 %v2843_v25, %v6727_v6  ;;  %4390 = vmatprep.mubr.msk.f32.mxu0 %vm1250_vm0, %v312_v46  ;;  %4417 = vmatprep.mubr.msk.f32.mxu1 %vm1250_vm0, %v690_v7  ;;  %v459_v7 = vld [vmem:[%s4946_s13 + $0x688] sm:$0xff]  ;;  %v837_v25 = vld [vmem:[%s4946_s13 + $0x1258] sm:$0xff] }
 0x2d7   : > { %v2845_v34 = vpop.f32.mrf.mxu0  ;;  %v3070_v14 = vpop.f32.mrf.mxu1 }
 0x2d8   : > { %v6976_v44 = vadd.f32 %v3068_v43, %v2844_v12 }
 0x2d9   : > { %v2848_v37 = vpop.f32.mrf.mxu0  ;;  %v3073_v3 = vpop.f32.mrf.mxu1  ;;  %4391 = vmatmul.mubr.msk.f32.gmra.mxu0 %vm1250_vm0, %v333_v54  ;;  %4418 = vmatmul.mubr.msk.f32.gmra.mxu1 %vm1250_vm0, %v711_v52  ;;  %v480_v54 = vld [vmem:[%s4946_s13 + $0x730] sm:$0xff]  ;;  %v858_v52 = vld [vmem:[%s4946_s13 + $0x1300] sm:$0xff] }
 0x2da   : > { %v2849_v6 = vadd.f32 %v2848_v37, %v6737_v32  ;;  %4393 = vmatprep.mubr.msk.f32.mxu0 %vm1250_vm0, %v354_v10  ;;  %4420 = vmatprep.mubr.msk.f32.mxu1 %vm1250_vm0, %v732_v18  ;;  %v501_v18 = vld [vmem:[%s4946_s13 + $0x7d8] sm:$0xff]  ;;  %v879_v37 = vld [vmem:[%s4946_s13 + $0x13a8] sm:$0xff] }
 0x2db   : > { %v2850_v1 = vpop.f32.mrf.mxu0  ;;  %v3075_v62 = vpop.f32.mrf.mxu1 }
 0x2dc   : > { %v6987_v9 = vadd.f32 %v3073_v3, %v2849_v6 }
 0x2dd   : > { %v2853_v26 = vpop.f32.mrf.mxu0  ;;  %v3078_v24 = vpop.f32.mrf.mxu1  ;;  %4394 = vmatmul.mubr.msk.f32.gmra.mxu0 %vm1250_vm0, %v375_v48  ;;  %4421 = vmatmul.mubr.msk.f32.gmra.mxu1 %vm1250_vm0, %v753_v0  ;;  %v522_v48 = vld [vmem:[%s4946_s13 + $0x880] sm:$0xff]  ;;  %v900_v0 = vld [vmem:[%s4946_s13 + $0x1450] sm:$0xff] }
 0x2de   : > { %v2854_v32 = vadd.f32 %v2853_v26, %v6747_v49  ;;  %4396 = vmatprep.mubr.msk.f32.mxu0 %vm1250_vm0, %v396_v30  ;;  %4423 = vmatprep.mubr.msk.f32.mxu1 %vm1250_vm0, %v774_v29  ;;  %v543_v29 = vld [vmem:[%s4946_s13 + $0x928] sm:$0xff]  ;;  %v921_v26 = vld [vmem:[%s4946_s13 + $0x14f8] sm:$0xff] }
 0x2df   : > { %v2855_v16 = vpop.f32.mrf.mxu0  ;;  %v3080_v28 = vpop.f32.mrf.mxu1 }
 0x2e0   : > { %v6998_v23 = vadd.f32 %v3078_v24, %v2854_v32 }
 0x2e1   : > { %v2858_v63 = vpop.f32.mrf.mxu0  ;;  %v3083_v46 = vpop.f32.mrf.mxu1  ;;  %4397 = vmatmul.mubr.msk.f32.gmra.mxu0 %vm1250_vm0, %v417_v59  ;;  %4424 = vmatmul.mubr.msk.f32.gmra.mxu1 %vm1250_vm0, %v795_v13  ;;  %v564_v59 = vld [vmem:[%s4946_s13 + $0x9d0] sm:$0xff] }
 0x2e2   : > { %v2859_v49 = vadd.f32 %v2858_v63, %v6757_v60  ;;  %4399 = vmatprep.mubr.msk.f32.mxu0 %vm1250_vm0, %v438_v41  ;;  %4426 = vmatprep.mubr.msk.f32.mxu1 %vm1250_vm0, %v816_v40  ;;  %v585_v41 = vld [vmem:[%s4946_s13 + $0xa78] sm:$0xff] }
 0x2e3   : > { %v2860_v43 = vpop.f32.mrf.mxu0  ;;  %v3085_v12 = vpop.f32.mrf.mxu1 }
 0x2e4   : > { %v7009_v34 = vadd.f32 %v3083_v46, %v2859_v49  ;;  %v606_v46 = vld [vmem:[%s4946_s13 + $0xb20] sm:$0xff]  ;;  %v627_v12 = vld [vmem:[%s4946_s13 + $0xbc8] sm:$0xff]  ;;  %s242_s13 = sand.u32 1, %s4599_s22  }
 0x2e5   : > { %v2863_v14 = vpop.f32.mrf.mxu0  ;;  %v3088_v10 = vpop.f32.mrf.mxu1  ;;  %4400 = vmatmul.mubr.msk.f32.gmra.mxu0 %vm1250_vm0, %v459_v7  ;;  %4427 = vmatmul.mubr.msk.f32.gmra.mxu1 %vm1250_vm0, %v837_v25  ;;  %s4277_s17 = sshll.u32 %s242_s13, 8  ;;  %s7503_s9 = scalar_lea.sflag [#allocation3], %s242_s13 }
 0x2e6   : > { %v2864_v60 = vadd.f32 %v2863_v14, %v6767_v53  ;;  %4402 = vmatprep.mubr.msk.f32.mxu0 %vm1250_vm0, %v480_v54  ;;  %4429 = vmatprep.mubr.msk.f32.mxu1 %vm1250_vm0, %v858_v52  ;;  %s7406_s19 = scalar_lea.vmem [#allocation2], %s4277_s17 }
 0x2e7   : > { %v2865_v3 = vpop.f32.mrf.mxu0  ;;  %v3090_v6 = vpop.f32.mrf.mxu1  ;;  %s4211_s26 = sshll.u32 %s7406_s19, 4  ;;  %s7471_s26 = int_to_ptr.vmem [resolvable:$true] %s4211_s26 }
 0x2e8   : > { %v7020_v1 = vadd.f32 %v3088_v10, %v2864_v60  ;;  %s4547_s10 = scalar_lea.vmem %s7471_s26, 4096 }
 0x2e9   : > { %v2868_v62 = vpop.f32.mrf.mxu0  ;;  %v3093_v30 = vpop.f32.mrf.mxu1  ;;  %4403 = vmatmul.mubr.msk.f32.gmra.mxu0 %vm1250_vm0, %v501_v18  ;;  %4430 = vmatmul.mubr.msk.f32.gmra.mxu1 %vm1250_vm0, %v879_v37  ;;  %p4548_p11 = scmp.ne.s32.totalorder %s7471_s26, %s4547_s10 }
 0x2ea   : > { %v2869_v53 = vadd.f32 %v2868_v62, %v6777_v39  ;;  %4405 = vmatprep.mubr.msk.f32.mxu0 %vm1250_vm0, %v522_v48  ;;  %4432 = vmatprep.mubr.msk.f32.mxu1 %vm1250_vm0, %v900_v0 }
 0x2eb   : > { %v2870_v24 = vpop.f32.mrf.mxu0  ;;  %v3095_v32 = vpop.f32.mrf.mxu1  ;;  %p4549_p12 = pnand %p4548_p11, %p4693_p5 }
 0x2ec   : > { %v7030_v13 = vadd.f32 %v3093_v30, %v2869_v53 }
 0x2ed   : > { %v2873_v16 = vpop.f32.mrf.mxu0  ;;  %v3098_v28 = vpop.f32.mrf.mxu1  ;;  %4406 = vmatmul.mubr.msk.f32.gmra.mxu0 %vm1250_vm0, %v543_v29  ;;  %4433 = vmatmul.mubr.msk.f32.gmra.mxu1 %vm1250_vm0, %v921_v26  ;;  %p4550_p13 = pneg %p4549_p12 }
 0x2ee   : > { %v2874_v39 = vadd.f32 %v2873_v16, %v6787_v8  ;;  %4408 = vmatprep.mubr.msk.f32.mxu0 %vm1250_vm0, %v564_v59  ;;  %4451 = vmatprep.mubr.msk.f32.mxu1 %vm4610_vm1, %v4609_v2 }
 0x2ef   : > { %v2875_v40 = vpop.f32.mrf.mxu0  ;;  %v3100_v63 = vpop.f32.mrf.mxu1 }
 0x2f0   : > { %v7038_v49 = vadd.f32 %v3098_v28, %v2874_v39 }
 0x2f1   : > { %v2878_v7 = vpop.f32.mrf.mxu0  ;;  %v3103_v25 = vpop.f32.mrf.mxu1  ;;  %4409 = vmatmul.mubr.msk.f32.gmra.mxu0 %vm1250_vm0, %v585_v41 }
 0x2f2   : > { %v2879_v43 = vadd.f32 %v2878_v7, %v6794_v50  ;;  %4411 = vmatprep.mubr.msk.f32.mxu0 %vm1250_vm0, %v606_v46 }
 0x2f3   : > { %v2880_v54 = vpop.f32.mrf.mxu0  ;;  %v3105_v52 = vpop.f32.mrf.mxu1 }
 0x2f4   : > { %v7044_v8 = vadd.f32 %v3103_v25, %v2879_v43 }
 0x2f5   : > { %v2883_v14 = vpop.f32.mrf.mxu0  ;;  %v3108_v10 = vpop.f32.mrf.mxu1  ;;  %4412 = vmatmul.mubr.msk.f32.gmra.mxu0 %vm1250_vm0, %v627_v12 }
 0x2f6   : > { %v2884_v60 = vadd.f32 %v2883_v14, %v6801_v45 }
 0x2f7   : > { %v2885_v18 = vpop.f32.mrf.mxu0  ;;  %v3110_v37 = vpop.f32.mrf.mxu1 }
 0x2f8   : > { %v7048_v3 = vadd.f32 %v3108_v10, %v2884_v60 }
 0x2f9   : > { %v2888_v6 = vpop.f32.mrf.mxu0  ;;  %v3113_v48 = vpop.f32.mrf.mxu1 }
 0x2fa   : > { %v2889_v50 = vadd.f32 %v2888_v6, %v6809_v58 }
 0x2fb   : > { %v2890_v0 = vpop.f32.mrf.mxu0  ;;  %v3115_v62 = vpop.f32.mrf.mxu1 }
 0x2fc   : > { %v7051_v30 = vadd.f32 %v3113_v48, %v2889_v50 }
 0x2fd   : > { %v2893_v53 = vpop.f32.mrf.mxu0  ;;  %v3118_v29 = vpop.f32.mrf.mxu1 }
 0x2fe   : > { %v2894_v26 = vadd.f32 %v2893_v53, %v6816_v51 }
 0x2ff   : > { %v2895_v24 = vpop.f32.mrf.mxu0  ;;  %v3120_v32 = vpop.f32.mrf.mxu1 }
 0x300   : > { %v7054_v59 = vadd.f32 %v3118_v29, %v2894_v26 }
 0x301   : > { %v2898_v45 = vpop.f32.mrf.mxu0  ;;  %v3123_v16 = vpop.f32.mrf.mxu1 }
 0x302   : > { %v2899_v28 = vadd.f32 %v2898_v45, %v6823_v42 }
 0x303   : > { %v2900_v39 = vpop.f32.mrf.mxu0  ;;  %v3125_v41 = vpop.f32.mrf.mxu1 }
 0x304   : > { %v7057_v40 = vadd.f32 %v3123_v16, %v2899_v28 }
 0x305   : > { %v2903_v58 = vpop.f32.mrf.mxu0  ;;  %v3128_v63 = vpop.f32.mrf.mxu1 }
 0x306   : > { %v2904_v46 = vadd.f32 %v2903_v58, %v6830_v20 }
 0x307   : > { %v2905_v7 = vpop.f32.mrf.mxu0  ;;  %v3130_v25 = vpop.f32.mrf.mxu1 }
 0x308   : > { %v7060_v43 = vadd.f32 %v3128_v63, %v2904_v46 }
 0x309   : > { %v2908_v51 = vpop.f32.mrf.mxu0  ;;  %v3133_v12 = vpop.f32.mrf.mxu1 }
 0x30a   : > { %v2909_v54 = vadd.f32 %v2908_v51, %v6837_v22 }
 0x30b   : > { %v2910_v52 = vpop.f32.mrf.mxu0  ;;  %v3135_v14 = vpop.f32.mrf.mxu1 }
 0x30c   : > { %v7063_v10 = vadd.f32 %v3133_v12, %v2909_v54 }
 0x30d   : > { %v2913_v42 = vpop.f32.mrf.mxu0  ;;  %v3138_v60 = vpop.f32.mrf.mxu1 }
 0x30e   : > { %v2914_v18 = vadd.f32 %v2913_v42, %v6844_v21 }
 0x30f   : > { %v2915_v37 = vpop.f32.mrf.mxu0  ;;  %v3140_v6 = vpop.f32.mrf.mxu1 }
 0x310   : > { %v7066_v48 = vadd.f32 %v3138_v60, %v2914_v18 }
 0x311   : > { %v2918_v20 = vpop.f32.mrf.mxu0  ;;  %v3143_v50 = vpop.f32.mrf.mxu1 }
 0x312   : > { %v2919_v0 = vadd.f32 %v2918_v20, %v6851_v47 }
 0x313   : > { %v2920_v62 = vpop.f32.mrf.mxu0  ;;  %v3145_v53 = vpop.f32.mrf.mxu1 }
 0x314   : > { %v7069_v29 = vadd.f32 %v3143_v50, %v2919_v0 }
 0x315   : > { %v3213_v22 = vpop.f32.mrf.mxu0  ;;  %v3438_v26 = vpop.f32.mrf.mxu1 }
 0x316   : > { %v3214_v24 = vadd.f32 %v3213_v22, %v6858_v5 }
 0x317   : > { %v3215_v32 = vpop.f32.mrf.mxu0  ;;  %v3440_v45 = vpop.f32.mrf.mxu1 }
 0x318   : > { %v7072_v16 = vadd.f32 %v3438_v26, %v3214_v24 }
 0x319   : > { %v3218_v21 = vpop.f32.mrf.mxu0  ;;  %v3443_v28 = vpop.f32.mrf.mxu1 }
 0x31a   : > { %v3219_v39 = vadd.f32 %v3218_v21, %v6865_v11 }
 0x31b   : > { %v3220_v41 = vpop.f32.mrf.mxu0  ;;  %v3445_v58 = vpop.f32.mrf.mxu1 }
 0x31c   : > { %v7075_v63 = vadd.f32 %v3443_v28, %v3219_v39 }
 0x31d   : > { %v3223_v47 = vpop.f32.mrf.mxu0  ;;  %v3448_v46 = vpop.f32.mrf.mxu1 }
 0x31e   : > { %v3224_v7 = vadd.f32 %v3223_v47, %v6872_v55 }
 0x31f   : > { %v3225_v25 = vpop.f32.mrf.mxu0  ;;  %v3450_v51 = vpop.f32.mrf.mxu1 }
 0x320   : > { %v7078_v12 = vadd.f32 %v3448_v46, %v3224_v7 }
 0x321   : > { %v3228_v5 = vpop.f32.mrf.mxu0  ;;  %v3453_v54 = vpop.f32.mrf.mxu1 }
 0x322   : > { %v3229_v52 = vadd.f32 %v3228_v5, %v6879_v57 }
 0x323   : > { %v3230_v14 = vpop.f32.mrf.mxu0  ;;  %v3455_v42 = vpop.f32.mrf.mxu1 }
 0x324   : > { %v7081_v60 = vadd.f32 %v3453_v54, %v3229_v52 }
 0x325   : > { %v3233_v11 = vpop.f32.mrf.mxu0  ;;  %v3458_v18 = vpop.f32.mrf.mxu1 }
 0x326   : > { %v3234_v37 = vadd.f32 %v3233_v11, %v6886_v17 }
 0x327   : > { %v3235_v6 = vpop.f32.mrf.mxu0  ;;  %v3460_v20 = vpop.f32.mrf.mxu1 }
 0x328   : > { %v7084_v50 = vadd.f32 %v3458_v18, %v3234_v37 }
 0x329   : > { %v3238_v55 = vpop.f32.mrf.mxu0  ;;  %v3463_v0 = vpop.f32.mrf.mxu1 }
 0x32a   : > { %v3239_v62 = vadd.f32 %v3238_v55, %v6893_v38 }
 0x32b   : > { %v3240_v53 = vpop.f32.mrf.mxu0  ;;  %v3465_v22 = vpop.f32.mrf.mxu1 }
 0x32c   : > { %v7087_v26 = vadd.f32 %v3463_v0, %v3239_v62 }
 0x32d   : > { %v3243_v57 = vpop.f32.mrf.mxu0  ;;  %v3468_v24 = vpop.f32.mrf.mxu1 }
 0x32e   : > { %v3244_v32 = vadd.f32 %v3243_v57, %v6900_v56 }
 0x32f   : > { %v3245_v45 = vpop.f32.mrf.mxu0  ;;  %v3470_v21 = vpop.f32.mrf.mxu1 }
 0x330   : > { %v7090_v28 = vadd.f32 %v3468_v24, %v3244_v32 }
 0x331   : > { %v3248_v17 = vpop.f32.mrf.mxu0  ;;  %v3473_v39 = vpop.f32.mrf.mxu1 }
 0x332   : > { %v3249_v41 = vadd.f32 %v3248_v17, %v6907_v31 }
 0x333   : > { %v3250_v58 = vpop.f32.mrf.mxu0  ;;  %v3475_v47 = vpop.f32.mrf.mxu1 }
 0x334   : > { %v7093_v46 = vadd.f32 %v3473_v39, %v3249_v41 }
 0x335   : > { %v3253_v38 = vpop.f32.mrf.mxu0  ;;  %v3478_v7 = vpop.f32.mrf.mxu1 }
 0x336   : > { %v3254_v25 = vadd.f32 %v3253_v38, %v6914_v27 }
 0x337   : > { %v3255_v51 = vpop.f32.mrf.mxu0  ;;  %v3480_v5 = vpop.f32.mrf.mxu1 }
 0x338   : > { %v7096_v54 = vadd.f32 %v3478_v7, %v3254_v25 }
 0x339   : > { %v3258_v56 = vpop.f32.mrf.mxu0  ;;  %v3483_v52 = vpop.f32.mrf.mxu1 }
 0x33a   : > { %v3259_v14 = vadd.f32 %v3258_v56, %v6921_v33 }
 0x33b   : > { %v3260_v42 = vpop.f32.mrf.mxu0  ;;  %v3485_v11 = vpop.f32.mrf.mxu1 }
 0x33c   : > { %v7099_v18 = vadd.f32 %v3483_v52, %v3259_v14 }
 0x33d   : > { %v3263_v31 = vpop.f32.mrf.mxu0  ;;  %v3488_v37 = vpop.f32.mrf.mxu1 }
 0x33e   : > { %v3264_v6 = vadd.f32 %v3263_v31, %v6928_v35 }
 0x33f   : > { %v3265_v20 = vpop.f32.mrf.mxu0  ;;  %v3490_v55 = vpop.f32.mrf.mxu1 }
 0x340   : > { %v7102_v0 = vadd.f32 %v3488_v37, %v3264_v6 }
 0x341   : > { %v3268_v27 = vpop.f32.mrf.mxu0  ;;  %v3493_v62 = vpop.f32.mrf.mxu1 }
 0x342   : > { %v3269_v53 = vadd.f32 %v3268_v27, %v6935_v36 }
 0x343   : > { %v3270_v22 = vpop.f32.mrf.mxu0  ;;  %v3495_v57 = vpop.f32.mrf.mxu1 }
 0x344   : > { %v7105_v24 = vadd.f32 %v3493_v62, %v3269_v53  ;;  %v3899_v62 = vld [vmem:[%s7545_s2 + $0x30] sm:$0xff] }
 0x345   : > { %v3273_v33 = vpop.f32.mrf.mxu0  ;;  %v3498_v32 = vpop.f32.mrf.mxu1 }
 0x346   : > { %v3274_v45 = vadd.f32 %v3273_v33, %v6942_v4 }
 0x347   : > { %v3275_v21 = vpop.f32.mrf.mxu0  ;;  %v3500_v17 = vpop.f32.mrf.mxu1 }
 0x348   : > { %v7108_v39 = vadd.f32 %v3498_v32, %v3274_v45  ;;  %v3897_v45 = vld [vmem:[%s7545_s2 + $0x20] sm:$0xff] }
 0x349   : > { %v3278_v35 = vpop.f32.mrf.mxu0  ;;  %v3503_v41 = vpop.f32.mrf.mxu1 }
 0x34a   : > { %v3279_v58 = vadd.f32 %v3278_v35, %v6949_v61 }
 0x34b   : > { %v3280_v47 = vpop.f32.mrf.mxu0  ;;  %v3505_v38 = vpop.f32.mrf.mxu1 }
 0x34c   : > { %v7111_v7 = vadd.f32 %v3503_v41, %v3279_v58  ;;  %v3895_v38 = vld [vmem:[%s7545_s2 + $0x10] sm:$0xff] }
 0x34d   : > { %v3283_v36 = vpop.f32.mrf.mxu0  ;;  %v3508_v25 = vpop.f32.mrf.mxu1 }
 0x34e   : > { %v3284_v51 = vadd.f32 %v3283_v36, %v6956_v15  ;;  %v3900_v15 = vld [vmem:[%s7545_s2 + $0x38] sm:$0xff] }
 0x34f   : > { %v3285_v5 = vpop.f32.mrf.mxu0  ;;  %v3510_v56 = vpop.f32.mrf.mxu1  ;;  %4436 = vmatpush3.msra.mxu1 %v3900_v15 }
 0x350   : > { %v7114_v52 = vadd.f32 %v3508_v25, %v3284_v51  ;;  %4437 = vmatprep.subr.mxu1 %v4609_v2 }
 0x351   : > { %v3288_v4 = vpop.f32.mrf.mxu0  ;;  %v3513_v14 = vpop.f32.mrf.mxu1  ;;  %4438 = vmatpush3.msra.mxu1 %v3899_v62 }
 0x352   : > { %v3289_v42 = vadd.f32 %v3288_v4, %v6965_v19  ;;  %4439 = vmatprep.subr.mxu1 %v4609_v2 }
 0x353   : > { %v3290_v11 = vpop.f32.mrf.mxu0  ;;  %v3515_v31 = vpop.f32.mrf.mxu1 }
 0x354   : > { %v7117_v37 = vadd.f32 %v3513_v14, %v3289_v42  ;;  %v3893_v14 = vld [vmem:[%s7545_s2] sm:$0xff] }
 0x355   : > { %v3293_v61 = vpop.f32.mrf.mxu0  ;;  %v3518_v6 = vpop.f32.mrf.mxu1 }
 0x356   : > { %v3294_v20 = vadd.f32 %v3293_v61, %v6976_v44  ;;  %v3898_v44 = vld [vmem:[%s7545_s2 + $0x28] sm:$0xff] }
 0x357   : > { %v3295_v55 = vpop.f32.mrf.mxu0  ;;  %v3520_v27 = vpop.f32.mrf.mxu1  ;;  %4440 = vmatpush3.msra.mxu1 %v3898_v44 }
 0x358   : > { %v7126_v53 = vadd.f32 %v3518_v6, %v3294_v20  ;;  %4441 = vmatprep.subr.mxu1 %v4609_v2 }
 0x359   : > { %v3298_v19 = vpop.f32.mrf.mxu0  ;;  %v3523_v22 = vpop.f32.mrf.mxu1  ;;  %4442 = vmatpush3.msra.mxu1 %v3897_v45 }
 0x35a   : > { %v3299_v57 = vadd.f32 %v3298_v19, %v6987_v9  ;;  %v3896_v9 = vld [vmem:[%s7545_s2 + $0x18] sm:$0xff]  ;;  %4443 = vmatprep.subr.mxu1 %v4609_v2 }
 0x35b   : > { %v3300_v33 = vpop.f32.mrf.mxu0  ;;  %v3525_v32 = vpop.f32.mrf.mxu1  ;;  %4444 = vmatpush3.msra.mxu1 %v3896_v9 }
 0x35c   : > { %v7139_v21 = vadd.f32 %v3523_v22, %v3299_v57  ;;  %4445 = vmatprep.subr.mxu1 %v4609_v2 }
 0x35d   : > { %v3303_v17 = vpop.f32.mrf.mxu0  ;;  %v3528_v35 = vpop.f32.mrf.mxu1  ;;  %4446 = vmatpush3.msra.mxu1 %v3895_v38 }
 0x35e   : > { %v3304_v41 = vadd.f32 %v3303_v17, %v6998_v23  ;;  %v3894_v23 = vld [vmem:[%s7545_s2 + $0x8] sm:$0xff]  ;;  %4447 = vmatprep.subr.mxu1 %v4609_v2 }
 0x35f   : > { %v3305_v58 = vpop.f32.mrf.mxu0  ;;  %v3530_v47 = vpop.f32.mrf.mxu1  ;;  %4448 = vmatpush3.msra.mxu1 %v3894_v23 }
 0x360   : > { %v7150_v36 = vadd.f32 %v3528_v35, %v3304_v41  ;;  %4449 = vmatprep.subr.mxu1 %v4609_v2 }
 0x361   : > { %v3308_v25 = vpop.f32.mrf.mxu0  ;;  %v3533_v51 = vpop.f32.mrf.mxu1  ;;  %4450 = vmatpush3.msra.mxu1 %v3893_v14 }
 0x362   : > { %v3309_v5 = vadd.f32 %v3308_v25, %v7009_v34  ;;  %4454 = vmatprep.subr.mxu1 %v4609_v2 }
 0x363   : > { %v3310_v56 = vpop.f32.mrf.mxu0  ;;  %v3535_v4 = vpop.f32.mrf.mxu1 }
 0x364   : > { %v7161_v42 = vadd.f32 %v3533_v51, %v3309_v5 }
 0x365   : > { %v3313_v11 = vpop.f32.mrf.mxu0  ;;  %v3538_v31 = vpop.f32.mrf.mxu1 }
 0x366   : > { %v3314_v61 = vadd.f32 %v3313_v11, %v7020_v1 }
 0x367   : > { %v3315_v34 = vpop.f32.mrf.mxu0  ;;  %v3540_v6 = vpop.f32.mrf.mxu1 }
 0x368   : > { %v7166_v20 = vadd.f32 %v3538_v31, %v3314_v61 }
 0x369   : > { %v3318_v55 = vpop.f32.mrf.mxu0  ;;  %v3543_v27 = vpop.f32.mrf.mxu1 }
 0x36a   : > { %v3319_v15 = vadd.f32 %v3318_v55, %v7030_v13 }
 0x36b   : > { %v3320_v62 = vpop.f32.mrf.mxu0  ;;  %v3545_v19 = vpop.f32.mrf.mxu1 }
 0x36c   : > { %v7169_v22 = vadd.f32 %v3543_v27, %v3319_v15 }
 0x36d   : > { %v3323_v44 = vpop.f32.mrf.mxu0  ;;  %v3548_v57 = vpop.f32.mrf.mxu1 }
 0x36e   : > { %v3324_v33 = vadd.f32 %v3323_v44, %v7038_v49 }
 0x36f   : > { %v3325_v1 = vpop.f32.mrf.mxu0  ;;  %v3550_v32 = vpop.f32.mrf.mxu1 }
 0x370   : > { %v7172_v45 = vadd.f32 %v3548_v57, %v3324_v33 }
 0x371   : > { %v3328_v17 = vpop.f32.mrf.mxu0  ;;  %v3553_v35 = vpop.f32.mrf.mxu1 }
 0x372   : > { %v3329_v9 = vadd.f32 %v3328_v17, %v7044_v8 }
 0x373   : > { %v3330_v41 = vpop.f32.mrf.mxu0  ;;  %v3555_v58 = vpop.f32.mrf.mxu1 }
 0x374   : > { %v7175_v47 = vadd.f32 %v3553_v35, %v3329_v9 }
 0x375   : > { %v3333_v13 = vpop.f32.mrf.mxu0  ;;  %v3558_v38 = vpop.f32.mrf.mxu1 }
 0x376   : > { %v3334_v25 = vadd.f32 %v3333_v13, %v7048_v3 }
 0x377   : > { %v3335_v51 = vpop.f32.mrf.mxu0  ;;  %v3560_v23 = vpop.f32.mrf.mxu1 }
 0x378   : > { %v7178_v5 = vadd.f32 %v3558_v38, %v3334_v25 }
 0x379   : > { %v3338_v49 = vpop.f32.mrf.mxu0  ;;  %v3563_v56 = vpop.f32.mrf.mxu1 }
 0x37a   : > { %v3339_v4 = vadd.f32 %v3338_v49, %v7051_v30 }
 0x37b   : > { %v3340_v14 = vpop.f32.mrf.mxu0  ;;  %v3565_v11 = vpop.f32.mrf.mxu1 }
 0x37c   : > { %v7181_v31 = vadd.f32 %v3563_v56, %v3339_v4 }
 0x37d   : > { %v3343_v8 = vpop.f32.mrf.mxu0  ;;  %v3568_v61 = vpop.f32.mrf.mxu1 }
 0x37e   : > { %v3344_v34 = vadd.f32 %v3343_v8, %v7054_v59 }
 0x37f   : > { %v3345_v6 = vpop.f32.mrf.mxu0  ;;  %v3570_v55 = vpop.f32.mrf.mxu1 }
 0x380   : > { %v7184_v27 = vadd.f32 %v3568_v61, %v3344_v34 }
 0x381   : > { %v3348_v3 = vpop.f32.mrf.mxu0  ;;  %v3573_v15 = vpop.f32.mrf.mxu1 }
 0x382   : > { %v3349_v62 = vadd.f32 %v3348_v3, %v7057_v40 }
 0x383   : > { %v3350_v19 = vpop.f32.mrf.mxu0  ;;  %v3575_v44 = vpop.f32.mrf.mxu1 }
 0x384   : > { %v7187_v57 = vadd.f32 %v3573_v15, %v3349_v62 }
 0x385   : > { %v3353_v30 = vpop.f32.mrf.mxu0  ;;  %v3578_v33 = vpop.f32.mrf.mxu1 }
 0x386   : > { %v3354_v1 = vadd.f32 %v3353_v30, %v7060_v43 }
 0x387   : > { %v3355_v32 = vpop.f32.mrf.mxu0  ;;  %v3580_v17 = vpop.f32.mrf.mxu1 }
 0x388   : > { %v7190_v35 = vadd.f32 %v3578_v33, %v3354_v1 }
 0x389   : > { %v3358_v59 = vpop.f32.mrf.mxu0  ;;  %v3583_v9 = vpop.f32.mrf.mxu1 }
 0x38a   : > { %v3359_v41 = vadd.f32 %v3358_v59, %v7063_v10 }
 0x38b   : > { %v3360_v58 = vpop.f32.mrf.mxu0  ;;  %v3585_v13 = vpop.f32.mrf.mxu1 }
 0x38c   : > { %v7193_v38 = vadd.f32 %v3583_v9, %v3359_v41 }
 0x38d   : > { %v3363_v40 = vpop.f32.mrf.mxu0  ;;  %v3588_v25 = vpop.f32.mrf.mxu1 }
 0x38e   : > { %v3364_v51 = vadd.f32 %v3363_v40, %v7066_v48 }
 0x38f   : > { %v3365_v23 = vpop.f32.mrf.mxu0  ;;  %v3590_v49 = vpop.f32.mrf.mxu1 }
 0x390   : > { %v7196_v56 = vadd.f32 %v3588_v25, %v3364_v51 }
 0x391   : > { %v3368_v43 = vpop.f32.mrf.mxu0  ;;  %v3593_v4 = vpop.f32.mrf.mxu1 }
 0x392   : > { %v3369_v14 = vadd.f32 %v3368_v43, %v7069_v29 }
 0x393   : > { %v3370_v11 = vpop.f32.mrf.mxu0  ;;  %v3595_v8 = vpop.f32.mrf.mxu1 }
 0x394   : > { %v7199_v61 = vadd.f32 %v3593_v4, %v3369_v14 }
 0x395   : > { %v4389_v10 = vpop.f32.mrf.mxu0  ;;  %v7209_v15 = vpop.f32.mrf.mxu1 }
 0x396   : > { %v7202_v6 = vadd.f32 %v4389_v10, %v7075_v63 }
 0x397   : > { %v3663_v34 = vpop.f32.mrf.mxu0  ;;  %v3753_v33 = vpop.f32.mrf.mxu1 }
 0x398   : > { %v7205_v55 = vadd.f32 %v3663_v34, %v7072_v16  ;;  %v3823_v29 = vsel %vm1250_vm0, %v7202_v6, 0.0 }
 0x399   : > { %v4392_v48 = vpop.f32.mrf.mxu0  ;;  %v7231_v58 = vpop.f32.mrf.mxu1 }
 0x39a   : > { %v3822_v3 = vsel %vm1250_vm0, %v7205_v55, 0.0  ;;  %v7214_v19 = vadd.f32 %v4392_v48, %v7081_v60 }
 0x39b   : > { %v3673_v62 = vpop.f32.mrf.mxu0  ;;  %v3824_v63 = vadd.f32 %v3823_v29, %v3822_v3  ;;  %v3763_v43 = vpop.f32.mrf.mxu1 }
 0x39c   : > { %v7217_v44 = vadd.f32 %v3673_v62, %v7078_v12  ;;  %v3827_v17 = vsel %vm1250_vm0, %v7214_v19, 0.0 }
 0x39d   : > { %v4395_v30 = vpop.f32.mrf.mxu0  ;;  %v4422_v48 = vpop.f32.mrf.mxu1 }
 0x39e   : > { %v3825_v16 = vsel %vm1250_vm0, %v7217_v44, 0.0  ;;  %v7224_v59 = vadd.f32 %v4395_v30, %v7087_v26 }
 0x39f   : > { %v3826_v1 = vadd.f32 %v3825_v16, %v3824_v63  ;;  %v3683_v32 = vpop.f32.mrf.mxu0 }
 0x3a0   : > { %v7227_v60 = vadd.f32 %v3683_v32, %v7084_v50  ;;  %v3831_v25 = vsel %vm1250_vm0, %v7224_v59, 0.0 }
 0x3a1   : > { %v3828_v9 = vadd.f32 %v3827_v17, %v3826_v1  ;;  %v4398_v12 = vpop.f32.mrf.mxu0  ;;  %v3773_v1 = vpop.f32.mrf.mxu1 }
 0x3a2   : > { %v3829_v41 = vsel %vm1250_vm0, %v7227_v60, 0.0  ;;  %v7236_v51 = vadd.f32 %v4398_v12, %v7093_v46 }
 0x3a3   : > { %v3830_v13 = vadd.f32 %v3829_v41, %v3828_v9  ;;  %v3693_v40 = vpop.f32.mrf.mxu0 }
 0x3a4   : > { %v7239_v26 = vadd.f32 %v3693_v40, %v7090_v28  ;;  %v3835_v11 = vsel %vm1250_vm0, %v7236_v51, 0.0  ;;  %v4425_v40 = vpop.f32.mrf.mxu1 }
 0x3a5   : > { %v3832_v50 = vadd.f32 %v3831_v25, %v3830_v13  ;;  %v4401_v23 = vpop.f32.mrf.mxu0 }
 0x3a6   : > { %v3833_v49 = vsel %vm1250_vm0, %v7239_v26, 0.0  ;;  %v7246_v8 = vadd.f32 %v4401_v23, %v7099_v18 }
 0x3a7   : > { %v3834_v4 = vadd.f32 %v3833_v49, %v3832_v50  ;;  %v3703_v14 = vpop.f32.mrf.mxu0 }
 0x3a8   : > { %v7249_v46 = vadd.f32 %v3703_v14, %v7096_v54  ;;  %v3839_v29 = vsel %vm1250_vm0, %v7246_v8, 0.0 }
 0x3a9   : > { %v3836_v10 = vadd.f32 %v3835_v11, %v3834_v4  ;;  %v4404_v28 = vpop.f32.mrf.mxu0  ;;  %v3783_v11 = vpop.f32.mrf.mxu1 }
 0x3aa   : > { %v3837_v34 = vsel %vm1250_vm0, %v7249_v46, 0.0  ;;  %v7256_v63 = vadd.f32 %v4404_v28, %v7105_v24 }
 0x3ab   : > { %v3838_v3 = vadd.f32 %v3837_v34, %v3836_v10  ;;  %v3713_v62 = vpop.f32.mrf.mxu0 }
 0x3ac   : > { %v7259_v18 = vadd.f32 %v3713_v62, %v7102_v0  ;;  %v3843_v9 = vsel %vm1250_vm0, %v7256_v63, 0.0 }
 0x3ad   : > { %v3840_v30 = vadd.f32 %v3839_v29, %v3838_v3  ;;  %v4407_v54 = vpop.f32.mrf.mxu0 }
 0x3ae   : > { %v3841_v16 = vsel %vm1250_vm0, %v7259_v18, 0.0  ;;  %v7266_v12 = vadd.f32 %v4407_v54, %v7111_v7 }
 0x3af   : > { %v3842_v32 = vadd.f32 %v3841_v16, %v3840_v30  ;;  %v3723_v17 = vpop.f32.mrf.mxu0  ;;  %v4428_v30 = vpop.f32.mrf.mxu1  ;;  %v7298_v16 = vadd.f32 %v7209_v15, %v7161_v42 }
 0x3b0   : > { %v7269_v24 = vadd.f32 %v3723_v17, %v7108_v39  ;;  %v3847_v23 = vsel %vm1250_vm0, %v7266_v12, 0.0  ;;  %v7305_v17 = vadd.f32 %v3763_v43, %v7166_v20  ;;  %v7321_v43 = vadd.f32 %v4422_v48, %v7175_v47 }
 0x3b1   : > { %v3844_v41 = vadd.f32 %v3843_v9, %v3842_v32  ;;  %v4410_v0 = vpop.f32.mrf.mxu0  ;;  %v3859_v9 = vsel %vm1250_vm0, %v7298_v16, 0.0 }
 0x3b2   : > { %v3845_v13 = vsel %vm1250_vm0, %v7269_v24, 0.0  ;;  %v7276_v49 = vadd.f32 %v4410_v0, %v7117_v37  ;;  %v3861_v15 = vsel %vm1250_vm0, %v7305_v17, 0.0  ;;  %v7316_v0 = vadd.f32 %v3773_v1, %v7172_v45 }
 0x3b3   : > { %v3846_v25 = vadd.f32 %v3845_v13, %v3844_v41  ;;  %v3733_v50 = vpop.f32.mrf.mxu0  ;;  %v7311_v41 = vadd.f32 %v7231_v58, %v7169_v22  ;;  %v7326_v58 = vadd.f32 %v3783_v11, %v7178_v5  ;;  %v3867_v45 = vsel %vm1250_vm0, %v7321_v43, 0.0 }
 0x3b4   : > { %v7279_v7 = vadd.f32 %v3733_v50, %v7114_v52  ;;  %v3851_v34 = vsel %vm1250_vm0, %v7276_v49, 0.0  ;;  %v7292_v52 = vadd.f32 %v3753_v33, %v7150_v36  ;;  %v3793_v36 = vpop.f32.mrf.mxu1  ;;  %v3865_v22 = vsel %vm1250_vm0, %v7316_v0, 0.0 }
 0x3b5   : > { %v3848_v4 = vadd.f32 %v3847_v23, %v3846_v25  ;;  %v4413_v39 = vpop.f32.mrf.mxu0  ;;  %v3863_v20 = vsel %vm1250_vm0, %v7311_v41, 0.0  ;;  %v7331_v1 = vadd.f32 %v4425_v40, %v7181_v31  ;;  %v3869_v47 = vsel %vm1250_vm0, %v7326_v58, 0.0 }
 0x3b6   : > { %v3849_v14 = vsel %vm1250_vm0, %v7279_v7, 0.0  ;;  %v7286_v3 = vadd.f32 %v4413_v39, %v7139_v21  ;;  %v4431_v13 = vpop.f32.mrf.mxu1  ;;  %v7336_v48 = vadd.f32 %v3793_v36, %v7184_v27  ;;  %v7341_v11 = vadd.f32 %v4428_v30, %v7187_v57 }
 0x3b7   : > { %v3850_v10 = vadd.f32 %v3849_v14, %v3848_v4  ;;  %v3743_v28 = vpop.f32.mrf.mxu0  ;;  %v3871_v5 = vsel %vm1250_vm0, %v7331_v1, 0.0 }
 0x3b8   : > { %v7289_v37 = vadd.f32 %v3743_v28, %v7126_v53  ;;  %v3855_v21 = vsel %vm1250_vm0, %v7286_v3, 0.0  ;;  %v3857_v53 = vsel %vm1250_vm0, %v7292_v52, 0.0  ;;  %v3803_v23 = vpop.f32.mrf.mxu1  ;;  %v3873_v31 = vsel %vm1250_vm0, %v7336_v48, 0.0 }
 0x3b9   : > { %v3852_v62 = vadd.f32 %v3851_v34, %v3850_v10  ;;  %v7346_v40 = vadd.f32 %v3803_v23, %v7190_v35  ;;  %v3875_v27 = vsel %vm1250_vm0, %v7341_v11, 0.0  ;;  %v3901_v23 = vld [vmem:[%s7546_s3] sm:$0x1] }
 0x3ba   : > { %v3853_v29 = vsel %vm1250_vm0, %v7289_v37, 0.0  ;;  %v4434_v14 = vpop.f32.mrf.mxu1 }
 0x3bb   : > { %v3854_v54 = vadd.f32 %v3853_v29, %v3852_v62  ;;  %v7351_v29 = vadd.f32 %v4431_v13, %v7193_v38  ;;  %v3877_v57 = vsel %vm1250_vm0, %v7346_v40, 0.0 }
 0x3bc   : > { %v3813_v34 = vpop.f32.mrf.mxu1 }
 0x3bd   : > { %v3856_v32 = vadd.f32 %v3855_v21, %v3854_v54  ;;  %v7356_v30 = vadd.f32 %v3813_v34, %v7196_v56  ;;  %v3879_v35 = vsel %vm1250_vm0, %v7351_v29, 0.0 }
 0x3bf   : > { %v3858_v33 = vadd.f32 %v3857_v53, %v3856_v32  ;;  %v7361_v32 = vadd.f32 %v4434_v14, %v7199_v61  ;;  %v3881_v36 = vsel %vm1250_vm0, %v7356_v30, 0.0  ;;  %v3977_v61 = vld [vmem:[%s7547_s4 + $0x8] sm:$0xff] }
 0x3c1   : > { %v3860_v42 = vadd.f32 %v3859_v9, %v3858_v33  ;;  %v3883_v33 = vsel %vm1250_vm0, %v7361_v32, 0.0 }
 0x3c3   : > { %v3862_v25 = vadd.f32 %v3861_v15, %v3860_v42 }
 0x3c5   : > { %v3864_v50 = vadd.f32 %v3863_v20, %v3862_v25 }
 0x3c7   : > { %v3866_v4 = vadd.f32 %v3865_v22, %v3864_v50  ;;  %v3976_v22 = vld [vmem:[%s7547_s4] sm:$0xff] }
 0x3c9   : > { %v3868_v39 = vadd.f32 %v3867_v45, %v3866_v4 }
 0x3cb   : > { %v3870_v10 = vadd.f32 %v3869_v47, %v3868_v39 }
 0x3cd   : > { %v3872_v28 = vadd.f32 %v3871_v5, %v3870_v10 }
 0x3cf   : > { %v3874_v62 = vadd.f32 %v3873_v31, %v3872_v28 }
 0x3d1   : > { %v3876_v54 = vadd.f32 %v3875_v27, %v3874_v62 }
 0x3d3   : > { %v3878_v21 = vadd.f32 %v3877_v57, %v3876_v54 }
 0x3d5   : > { %v3880_v53 = vadd.f32 %v3879_v35, %v3878_v21 }
 0x3d7   : > { %v3882_v38 = vadd.f32 %v3881_v36, %v3880_v53 }
 0x3d9   : > { %v3884_v9 = vadd.f32 %v3883_v33, %v3882_v38 }
 0x3db   : > { %v3885_v42 = vrot.slane %v3884_v9, 4 }
 0x3dd   : > { %v3886_v15 = vadd.f32 %v3885_v42, %v3884_v9 }
 0x3df   : > { %v3887_v56 = vrot.slane %v3886_v15, 2 }
 0x3e1   : > { %v3888_v13 = vadd.f32 %v3887_v56, %v3886_v15 }
 0x3e3   : > { %v3889_v25 = vrot.slane %v3888_v13, 1 }
 0x3e5   : > { %v3890_v20 = vadd.f32 %v3889_v25, %v3888_v13 }
 0x3e7   : > { %v3892_v50 = vmul.f32 0.00390625, %v3890_v20 }
 0x3e9   : > { %4452 = vmatmul.mubr.msk.f32.vlgmr.msra.gmra.mxu1 %vm1250_vm0, %v3892_v50 }
 0x3ea   : > { %4458 = vmatprep.mubr.msk.f32.mxu1 %vm4610_vm1, %v4609_v2  ;;  %4455 = vmatpush3.msra.mxu1 %v3977_v61 }
 0x3eb   : > { %4456 = vmatprep.subr.mxu1 %v4609_v2  ;;  %v3978_v2 = vld [vmem:[%s7548_s5] sm:$0x1] }
 0x3ec   : > { %4457 = vmatpush3.msra.mxu1 %v3976_v22 }
 0x4a9   : > { %v3971_v4 = vpop.f32.mrf.mxu1 }
 0x4aa   : > { %v3972_v45 = vadd.f32 %v3971_v4, %v3901_v23 }
 0x4ab   : > { %v4453_v39 = vpop.f32.mrf.mxu1 }
 0x4ac   : > { %v3975_v47 = vmax.f32 %v3972_v45, 0.0 }
 0x4ae   : > { %4459 = vmatmul.mubr.msk.f32.vlgmr.msra.gmra.mxu1 %vm3979_vm2, %v3975_v47 }
 0x56e   : > { %v4049_v14 = vpop.f32.mrf.mxu1 }
 0x56f   : > { %v4050_v10 = vadd.f32 %v4049_v14, %v3978_v2 }
 0x570   : > { %v4460_v5 = vpop.f32.mrf.mxu1 }
 0x571   : > { %v4053_v28 = vsub.f32 0.0, %v4050_v10 }
 0x573   : > { %v4054_v31 = vmul.f32 1.442695, %v4053_v28 }
 0x575   : > { %4527 = vpow2.f32 %v4054_v31 }
 0x582   : > { %v4528_v34 = vpop.eup %4527 }
 0x583   : > { %v4056_v62 = vadd.f32 1.0, %v4528_v34 }
 0x585   : > { %4529 = vrcp.f32 %v4056_v62  ;;  %v4129_v62 = vlaneseq }
 0x592   : > { %v4530_v27 = vpop.eup %4529 }
 0x593   : > { %4060 = vrot.lane.b32.xlu0 %v4530_v27, %s4611_s11 }
 0x605   : > { %v4061_v54 = vpop.permute.xlu0 %4060 }
 0x606   : > { %v4063_v57 = vmax.f32 %v4530_v27, %v4061_v54  ;;  %v4130_v54 = vshrl.u32 %v4129_v62, 7 }
 0x608   : > { %4065 = vrot.lane.b32.xlu0 %v4063_v57, %s4612_s12 }
 0x67a   : > { %v4066_v21 = vpop.permute.xlu0 %4065 }
 0x67b   : > { %v4068_v35 = vmax.f32 %v4063_v57, %v4066_v21 }
 0x67d   : > { %4085 = vrot.lane.b32.xlu0 %v4068_v35, %s4613_s14  ;;  %4073 = vrot.lane.b32.xlu1 %v4068_v35, %s4614_s15  ;;  %v4069_v61 = vsub.f32 %v4530_v27, %v4068_v35 }
 0x67f   : > { %v4070_v22 = vmul.f32 1.442695, %v4069_v61 }
 0x681   : > { %4079 = vrot.lane.b32.xlu1 %v4068_v35, %s4615_s16 }
 0x6ef   : > { %v4086_v53 = vpop.permute.xlu0 %4085  ;;  %v4074_v36 = vpop.permute.xlu1 %4073 }
 0x6f0   : > { %v4076_v38 = vsub.f32 %v4530_v27, %v4074_v36  ;;  %v4088_v33 = vsub.f32 %v4530_v27, %v4086_v53 }
 0x6f2   : > { %v4077_v9 = vmul.f32 1.442695, %v4076_v38  ;;  %v4089_v56 = vmul.f32 1.442695, %v4088_v33  ;;  %v4131_v38 = vsub.s32 0, %v4130_v54 }
 0x6f3   : > { %v4080_v42 = vpop.permute.xlu1 %4079 }
 0x6f4   : > { %v4082_v15 = vsub.f32 %v4530_v27, %v4080_v42  ;;  %4531 = vpow2.f32 %v4077_v9 }
 0x6f6   : > { %v4083_v13 = vmul.f32 1.442695, %v4082_v15 }
 0x6f8   : > { %4533 = vpow2.f32 %v4083_v13 }
 0x6f9   : > { %4535 = vpow2.f32 %v4089_v56 }
 0x6fa   : > { %4537 = vpow2.f32 %v4070_v22 }
 0x701   : > { %v4532_v25 = vpop.eup %4531 }
 0x702   : > { %4092 = vrot.lane.b32.xlu1 %v4532_v25, %s4611_s11  ;;  %s4617_s11 = smov [#allocation2]  }
 0x705   : > { %v4534_v20 = vpop.eup %4533 }
 0x706   : > { %v4536_v50 = vpop.eup %4535  ;;  %4097 = vrot.lane.b32.xlu0 %v4534_v20, %s4612_s12  ;;  %s4551_s12 = sshll.u32 %s4617_s11, 4  ;;  %s4552_s12 = int_to_ptr.vmem [resolvable:$false] %s4551_s12 }
 0x707   : > { %4102 = vrot.lane.b32.xlu1 %v4536_v50, %s4616_s18  ;;  %v4538_v4 = vpop.eup %4537  ;;  %p4554_p0 = scmp.lt.s32.totalorder %s7471_s26, %s4552_s12 }
 0x774   : > { %v4093_v23 = vpop.permute.xlu1 %4092 }
 0x775   : > { %v4095_v45 = vadd.f32 %v4538_v4, %v4093_v23 }
 0x778   : > { %v4098_v39 = vpop.permute.xlu0 %4097 }
 0x779   : > { %v4100_v47 = vadd.f32 %v4098_v39, %v4095_v45  ;;  %v4103_v2 = vpop.permute.xlu1 %4102 }
 0x77b   : > { %v4105_v14 = vadd.f32 %v4103_v2, %v4100_v47 }
 0x77d   : > { %4539 = vrcp.f32 %v4105_v14  ;;  %4114 = vrot.lane.b32.xlu1 %v4105_v14, %s4615_s16  ;;  %4109 = vrot.lane.b32.xlu0 %v4105_v14, %s4614_s15 }
 0x781   : > { %4119 = vrot.lane.b32.xlu0 %v4105_v14, %s4613_s14  ;;  %s4553_s14 = scalar_lea.vmem %s4552_s12, 8192 }
 0x782   : > { %p4555_p1 = scmp.lt.s32.totalorder %s4553_s14, %s4547_s10 }
 0x784   : > { %p4556_p2 = por %p4555_p1, %p4554_p0 }
 0x786   : > { %p4557_p3 = pnand %p4556_p2, %p4550_p13 }
 0x78a   : > { %v4540_v10 = vpop.eup %4539 }
 0x78b   : > { %v4107_v5 = vmul.f32 %v4540_v10, %v4538_v4 }
 0x7ef   : > { %v4115_v28 = vpop.permute.xlu1 %4114  ;;  %v4110_v31 = vpop.permute.xlu0 %4109 }
 0x7f0   : > { %4541 = vrcp.f32 %v4115_v28 }
 0x7f1   : > { %4543 = vrcp.f32 %v4110_v31 }
 0x7f3   : > { %v4120_v34 = vpop.permute.xlu0 %4119 }
 0x7f4   : > { %4545 = vrcp.f32 %v4120_v34 }
 0x7fd   : > { %v4542_v27 = vpop.eup %4541 }
 0x7fe   : > { %v4544_v57 = vpop.eup %4543  ;;  %v4118_v21 = vmul.f32 %v4542_v27, %v4534_v20 }
 0x7ff   : > { %v4113_v35 = vmul.f32 %v4544_v57, %v4532_v25 }
 0x801   : > { %v4546_v53 = vpop.eup %4545  ;;  %v4124_v36 = vsel %vm3979_vm2, %v4107_v5, %v4113_v35 }
 0x802   : > { %v4123_v33 = vmul.f32 %v4546_v53, %v4536_v50  ;;  %v4126_v9 = vsel %vm4125_vm3, %v4124_v36, %v4118_v21 }
 0x804   : > { %v4128_v42 = vsel %vm4127_vm4, %v4126_v9, %v4123_v33 }
 0x805   : > { %v4132_v15 = vrot.slane %v4128_v42, %v4131_v38 }
 0x807   : > { %v4133_v56 = vmul.f32 %v4132_v15, %v7205_v55  ;;  %v4134_v13 = vmul.f32 %v4132_v15, %v7202_v6  ;;  %v4135_v20 = vmul.f32 %v4132_v15, %v7217_v44  ;;  %v4136_v25 = vmul.f32 %v4132_v15, %v7214_v19 }
 0x808   : > { %v4137_v61 = vmul.f32 %v4132_v15, %v7227_v60  ;;  %v4138_v22 = vmul.f32 %v4132_v15, %v7224_v59  ;;  %v4139_v23 = vmul.f32 %v4132_v15, %v7239_v26  ;;  %v4140_v50 = vmul.f32 %v4132_v15, %v7236_v51 }
 0x809   : > { %v4141_v4 = vmul.f32 %v4132_v15, %v7249_v46  ;;  %v4142_v45 = vmul.f32 %v4132_v15, %v7246_v8  ;;  %v4143_v55 = vmul.f32 %v4132_v15, %v7259_v18  ;;  %v4144_v6 = vmul.f32 %v4132_v15, %v7256_v63  ;;  %4165 = vst.msk [vmem:[%s7406_s19] sm:$0xff] %vm1250_vm0, %v4133_v56 }
 0x80a   : > { %4166 = vst.msk [vmem:[%s7406_s19 + $0x8] sm:$0xff] %vm1250_vm0, %v4134_v13  ;;  %4167 = vst.msk [vmem:[%s7406_s19 + $0x10] sm:$0xff] %vm1250_vm0, %v4135_v20  ;;  %v4145_v19 = vmul.f32 %v4132_v15, %v7269_v24  ;;  %v4146_v44 = vmul.f32 %v4132_v15, %v7266_v12  ;;  %v4147_v59 = vmul.f32 %v4132_v15, %v7279_v7 }
 0x80b   : > { %4168 = vst.msk [vmem:[%s7406_s19 + $0x18] sm:$0xff] %vm1250_vm0, %v4136_v25  ;;  %v4148_v60 = vmul.f32 %v4132_v15, %v7276_v49  ;;  %4169 = vst.msk [vmem:[%s7406_s19 + $0x20] sm:$0xff] %vm1250_vm0, %v4137_v61  ;;  %v4149_v51 = vmul.f32 %v4132_v15, %v7289_v37  ;;  %v4150_v26 = vmul.f32 %v4132_v15, %v7286_v3 }
 0x80c   : > { %4170 = vst.msk [vmem:[%s7406_s19 + $0x28] sm:$0xff] %vm1250_vm0, %v4138_v22  ;;  %4171 = vst.msk [vmem:[%s7406_s19 + $0x30] sm:$0xff] %vm1250_vm0, %v4139_v23  ;;  %v4151_v8 = vmul.f32 %v4132_v15, %v7292_v52  ;;  %v4152_v46 = vmul.f32 %v4132_v15, %v7298_v16  ;;  %v4153_v63 = vmul.f32 %v4132_v15, %v7305_v17 }
 0x80d   : > { %4172 = vst.msk [vmem:[%s7406_s19 + $0x38] sm:$0xff] %vm1250_vm0, %v4140_v50  ;;  %4173 = vst.msk [vmem:[%s7406_s19 + $0x40] sm:$0xff] %vm1250_vm0, %v4141_v4  ;;  %v4154_v18 = vmul.f32 %v4132_v15, %v7311_v41  ;;  %v4155_v12 = vmul.f32 %v4132_v15, %v7316_v0  ;;  %v4156_v24 = vmul.f32 %v4132_v15, %v7321_v43 }
 0x80e   : > { %4174 = vst.msk [vmem:[%s7406_s19 + $0x48] sm:$0xff] %vm1250_vm0, %v4142_v45  ;;  %4175 = vst.msk [vmem:[%s7406_s19 + $0x50] sm:$0xff] %vm1250_vm0, %v4143_v55  ;;  %v4157_v49 = vmul.f32 %v4132_v15, %v7326_v58  ;;  %v4158_v7 = vmul.f32 %v4132_v15, %v7331_v1  ;;  %v4159_v3 = vmul.f32 %v4132_v15, %v7336_v48 }
 0x80f   : > { %4176 = vst.msk [vmem:[%s7406_s19 + $0x58] sm:$0xff] %vm1250_vm0, %v4144_v6  ;;  %4177 = vst.msk [vmem:[%s7406_s19 + $0x60] sm:$0xff] %vm1250_vm0, %v4145_v19  ;;  %v4160_v37 = vmul.f32 %v4132_v15, %v7341_v11  ;;  %v4161_v52 = vmul.f32 %v4132_v15, %v7346_v40  ;;  %v4162_v16 = vmul.f32 %v4132_v15, %v7351_v29 }
 0x810   : > { %4178 = vst.msk [vmem:[%s7406_s19 + $0x68] sm:$0xff] %vm1250_vm0, %v4146_v44  ;;  %4179 = vst.msk [vmem:[%s7406_s19 + $0x70] sm:$0xff] %vm1250_vm0, %v4147_v59  ;;  %v4163_v17 = vmul.f32 %v4132_v15, %v7356_v30  ;;  %v4164_v41 = vmul.f32 %v4132_v15, %v7361_v32 }
 0x811   : > { %4180 = vst.msk [vmem:[%s7406_s19 + $0x78] sm:$0xff] %vm1250_vm0, %v4148_v60  ;;  %4181 = vst.msk [vmem:[%s7406_s19 + $0x80] sm:$0xff] %vm1250_vm0, %v4149_v51 }
 0x812   : > { %4182 = vst.msk [vmem:[%s7406_s19 + $0x88] sm:$0xff] %vm1250_vm0, %v4150_v26  ;;  %4183 = vst.msk [vmem:[%s7406_s19 + $0x90] sm:$0xff] %vm1250_vm0, %v4151_v8 }
 0x813   : > { %4184 = vst.msk [vmem:[%s7406_s19 + $0x98] sm:$0xff] %vm1250_vm0, %v4152_v46  ;;  %4185 = vst.msk [vmem:[%s7406_s19 + $0xa0] sm:$0xff] %vm1250_vm0, %v4153_v63 }
 0x814   : > { %4186 = vst.msk [vmem:[%s7406_s19 + $0xa8] sm:$0xff] %vm1250_vm0, %v4154_v18  ;;  %4187 = vst.msk [vmem:[%s7406_s19 + $0xb0] sm:$0xff] %vm1250_vm0, %v4155_v12 }
 0x815   : > { %4188 = vst.msk [vmem:[%s7406_s19 + $0xb8] sm:$0xff] %vm1250_vm0, %v4156_v24  ;;  %4189 = vst.msk [vmem:[%s7406_s19 + $0xc0] sm:$0xff] %vm1250_vm0, %v4157_v49 }
 0x816   : > { %4190 = vst.msk [vmem:[%s7406_s19 + $0xc8] sm:$0xff] %vm1250_vm0, %v4158_v7  ;;  %4191 = vst.msk [vmem:[%s7406_s19 + $0xd0] sm:$0xff] %vm1250_vm0, %v4159_v3 }
 0x817   : > { %4192 = vst.msk [vmem:[%s7406_s19 + $0xd8] sm:$0xff] %vm1250_vm0, %v4160_v37  ;;  %4193 = vst.msk [vmem:[%s7406_s19 + $0xe0] sm:$0xff] %vm1250_vm0, %v4161_v52 }
 0x818   : > { %4194 = vst.msk [vmem:[%s7406_s19 + $0xe8] sm:$0xff] %vm1250_vm0, %v4162_v16  ;;  %4195 = vst.msk [vmem:[%s7406_s19 + $0xf0] sm:$0xff] %vm1250_vm0, %v4163_v17 }
 0x819   : > { %4196 = vst.msk [vmem:[%s7406_s19 + $0xf8] sm:$0xff] %vm1250_vm0, %v4164_v41 }
 0x81a   : > { %4560 = shalt.err (!%p4557_p3)
}
 0x81b   : > { %s4561_s15 = scalar_lea.hbm %s7469_s29, 4096  ;;  %s4565_s13 = scalar_lea.hbm %s7549_s6, 8192 }
 0x81c   : > { %p4562_p4 = scmp.ne.s32.totalorder %s7469_s29, %s4561_s15  ;;  %p4566_p9 = scmp.lt.s32.totalorder %s7469_s29, %s7549_s6 }
 0x81d   : > { %p4567_p10 = scmp.lt.s32.totalorder %s4565_s13, %s4561_s15 }
 0x81e   : > { %p4563_p7 = pnand %p4562_p4, %p4693_p5 }
 0x81f   : > { %p4568_p11 = por %p4567_p10, %p4566_p9 }
 0x820   : > { %p4564_p8 = pneg %p4563_p7 }
 0x822   : > { %p4569_p12 = pnand %p4568_p11, %p4564_p8 }
 0x824   : > { %4572 = shalt.err (!%p4569_p12)
}
 0x825   : > { %s4618_s20 = smov 128   ;;  %s4619_s25 = smov 8  }
 0x826   : > { %4478 = dma.vmem_to_hbm [thread:$0]  (%p4693_p5), %s7471_s26, 4096, %s7469_s29, %s7503_s9, %s4618_s20, %s4618_s20, %s4619_s25  }
 0x827 PF: > { %p4484_p13 = scmp.ge.s32.totalorder %s4607_s24, 2  ;;  %s4226_s28 = sand.u32 1, %s4595_s21  }
 0x828   : > { %s4227_s10 = scalar_lea.sflag [#allocation3], %s4226_s28 }
 0x829   : > { %p4481_p0 = pnand %p4484_p13, %p4697_p6 }
 0x82b   : > { %p4482_p1 = pneg %p4481_p0 }
 0x82d   : > { %4590 = dma.done.wait (%p4482_p1), %s4227_s10, 4096  }
 0x82e   : > { %4592 = vsyncadd (%p4482_p1), %s4227_s10, 4294963200  ;;  %p16_p2 = scmp.ge.s32.totalorder %s4680_s27, 4   ;;  %s7552_s21 = smov %s4599_s22 }
 0x82f   : > { %s7553_s22 = smov %s4603_s23  ;;  %s7554_s23 = smov %s4691_s30 }
 0x830   : > { %s7555_s24 = smov %s4680_s27  ;;  %18 = sbr.rel (!%p16_p2) target bundleno = 3 (0x3), region = 79 }
 0x835   :  { %4232 = vsyncpa [#allocation3], 1 }
 0x836   :  { %4234 = vsyncpa [#allocation3 + $0x1], 1 }

</bundles_post_ra>
